<compile_context>
chip_gen: v6e
topology: v6e:2x2x1
jax: 0.10.0
libtpu: 0.0.40
codegen_flags: <defaults>
</compile_context>

<pallas_src>
import numpy as np
import jax
import jax.numpy as jnp
from jax.experimental import pallas as pl
from jax.experimental.pallas import tpu as pltpu

# ----------------------------------------------------------------------------
# Config (small demo shapes consistent with BLT_net.__init__)
# ----------------------------------------------------------------------------
CFG = dict(
    batch=2,
    n_blocks=2,
    n_layers=2,
    image_size=16,
    n_classes=10,
    is_lateral_enabled=True,
    is_topdown_enabled=True,
    LT_interaction="additive",
    timesteps=3,
    in_channels=3,
    n_start_filters=8,
    kernel_size=3,
)

_LN_EPS = 1e-5
_LOG_CLAMP = float(np.log(1e-10))
_LANE = 128  # every activation container is (H, 128); W*C == 128 per block here


# ----------------------------------------------------------------------------
# Host-side constant / weight matrix builders (lane layout: lane = x*C + c)
# ----------------------------------------------------------------------------
def _shift_matrices(h):
    """Stacked [U; D] (2h, h):  (U@x)[y] = x[y-1] (row 0 -> 0),  (D@x)[y] = x[y+1]."""
    ud = np.zeros((2 * h, h), np.float32)
    for y in range(1, h):
        ud[y, y - 1] = 1.0          # U: shift down (previous row)
    for y in range(h - 1):
        ud[h + y, y + 1] = 1.0      # D: shift up (next row)
    return ud


def _interleave_matrix(h_out):
    """(h_out, h_out): out[2r] = in[r], out[2r+1] = in[h_out//2 + r]."""
    half = h_out // 2
    m = np.zeros((h_out, h_out), np.float32)
    for r in range(half):
        m[2 * r, r] = 1.0
        m[2 * r + 1, half + r] = 1.0
    return m


def _pool_row_matrix(h):
    """(h, h): rows 0..h/2-1 select even input rows, rows h/2..h-1 select odd rows."""
    half = h // 2
    m = np.zeros((h, h), np.float32)
    for r in range(half):
        m[r, 2 * r] = 1.0
        m[half + r, 2 * r + 1] = 1.0
    return m


def _pool_col_matrices(width, channels):
    """(W*C, W*C) 0/1 selections: even / odd columns land in lanes 0..(W/2)*C-1, rest zero."""
    half = width // 2
    pe = np.zeros((width * channels, width * channels), np.float32)
    po = np.zeros((width * channels, width * channels), np.float32)
    for c in range(half):
        for ch in range(channels):
            pe[(2 * c) * channels + ch, c * channels + ch] = 1.0
            po[(2 * c + 1) * channels + ch, c * channels + ch] = 1.0
    return pe, po


def _chan_mean_matrix(width, channels):
    s = np.zeros((width * channels, channels), np.float32)
    for w in range(width):
        for ch in range(channels):
            s[w * channels + ch, ch] = 1.0 / width
    return s


def _conv_weight_stacked(taps, width, band_pad):
    """taps (3,3,cin,cout) -> (3*band_pad, width*cout) so a 'same' 3x3 conv row-image is
       out = concat([x_up, x, x_dn], lanes) @ W  (cross-correlation, zero padding)."""
    K, _, cin, cout = taps.shape
    p = (K - 1) // 2
    assert width * cin <= band_pad and width * cout <= _LANE
    w = np.zeros((K * band_pad, width * cout), np.float32)
    for dy in range(K):
        for xo in range(width):
            for dx in range(K):
                xi = xo + dx - p
                if 0 <= xi < width:
                    w[dy * band_pad + xi * cin: dy * band_pad + (xi + 1) * cin,
                      xo * cout:(xo + 1) * cout] = taps[dy, dx]
    return w


def _td_matrices(taps, w_in):
    """taps (3,3,c2,c) for ConvTranspose2d(stride=2, padding=1, output_padding=1).
       mats[ky]: (w_in*c2, 2*w_in*c) column-banded matrices."""
    K, _, c2, c = taps.shape
    w_out = 2 * w_in
    mats = np.zeros((K, w_in * c2, w_out * c), np.float32)
    for ky in range(K):
        for ox in range(w_out):
            if ox % 2 == 0:
                pairs = [(ox // 2, 1)]
            else:
                cc = (ox - 1) // 2
                pairs = [(cc + 1, 0), (cc, 2)]
            for ix, kx in pairs:
                if 0 <= ix < w_in:
                    mats[ky, ix * c2:(ix + 1) * c2, ox * c:(ox + 1) * c] = taps[ky, kx]
    return mats


def _td_weights(taps, w_in):
    """Returns (W_ev, W_od), each (2*w_in*c2, 2*w_in*c), applied to [a | a_down]:
       even output rows: ev = a @ M[1];  odd output rows: od = a @ M[2] + a_down @ M[0]."""
    mats = _td_matrices(taps, w_in)
    n, m = mats.shape[1], mats.shape[2]
    assert 2 * n <= 2 * _LANE and m <= _LANE
    w_ev = np.zeros((2 * n, m), np.float32)
    w_od = np.zeros((2 * n, m), np.float32)
    w_ev[:n] = mats[1]
    w_od[:n] = mats[2]
    w_od[n:] = mats[0]
    return w_ev, w_od


# ----------------------------------------------------------------------------
# Parameter packing: everything into ONE (R, 128) f32 slab + static layout dict
# ----------------------------------------------------------------------------
class _Packer:
    def __init__(self, lanes):
        self.lanes = lanes
        self.chunks = []
        self.layout = {}
        self.rows = 0

    def add(self, name, arr):
        arr = np.asarray(arr, np.float32)
        assert arr.ndim == 2 and arr.shape[1] <= self.lanes, (name, arr.shape)
        r, c = arr.shape
        rpad = ((r + 7) // 8) * 8
        buf = np.zeros((rpad, self.lanes), np.float32)
        buf[:r, :c] = arr
        self.layout[name] = (self.rows, r, c)
        self.chunks.append(buf)
        self.rows += rpad

    def pack(self):
        return np.concatenate(self.chunks, axis=0)


def init_params(key, cfg):
    K = cfg["kernel_size"]
    assert K == 3, "weight packing below assumes 3x3 kernels"
    assert cfg["image_size"] * cfg["n_start_filters"] == _LANE, \
        "this packing keeps every activation exactly 128 lanes wide (W*C == 128)"
    T = cfg["timesteps"]
    nb, nl = cfg["n_blocks"], cfg["n_layers"]

    def nxt():
        nonlocal key
        key, sub = jax.random.split(key)
        return sub

    def randn(shape):
        return 0.1 * np.asarray(jax.random.normal(nxt(), shape, jnp.float32))

    pk = _Packer(_LANE)

    # Constant shift / interleave matrices per spatial size.
    for h in sorted({cfg["image_size"] // 2 ** b for b in range(nb)}, reverse=True):
        pk.add(f"ud{h}", _shift_matrices(h))
    for b in range(nb - 1):
        h = cfg["image_size"] // 2 ** b
        if f"ilv{h}" not in pk.layout:
            pk.add(f"ilv{h}", _interleave_matrix(h))

    in_ch = cfg["in_channels"]
    for b in range(nb):
        out_ch = cfg["n_start_filters"] * 2 ** b
        hw = cfg["image_size"] // 2 ** b
        for li in range(nl):
            cin = in_ch if li == 0 else out_ch
            pfx = f"b{b}l{li}_"
            taps = randn((K, K, cin, out_ch))
            bias = randn((out_ch,))
            pk.add(pfx + "bu_w", _conv_weight_stacked(taps, hw, _LANE))
            pk.add(pfx + "bu_b", np.tile(np.tile(bias, hw)[None, :], (hw, 1)))
            pk.add(pfx + "ln_g", np.ones((hw, hw * out_ch), np.float32))   # torch default
            pk.add(pfx + "ln_b", np.zeros((hw, hw * out_ch), np.float32))  # torch default
            is_last_layer = li == nl - 1
            if cfg["is_lateral_enabled"] and is_last_layer:
                ltaps = randn((K, K, out_ch, out_ch))
                lbias = randn((out_ch,))
                pk.add(pfx + "lat_w", _conv_weight_stacked(ltaps, hw, _LANE))
                pk.add(pfx + "lat_b", np.tile(np.tile(lbias, hw)[None, :], (hw, 1)))
            if cfg["is_topdown_enabled"] and is_last_layer and b < nb - 1:
                ttaps = randn((K, K, out_ch * 2, out_ch))
                tbias = randn((out_ch,))
                w_ev, w_od = _td_weights(ttaps, hw // 2)
                pk.add(pfx + "td_we", w_ev)
                pk.add(pfx + "td_wo", w_od)
                pk.add(pfx + "td_b", np.tile(np.tile(tbias, hw)[None, :], (hw, 1)))
        in_ch = out_ch

    for b in range(nb - 1):
        out_ch = cfg["n_start_filters"] * 2 ** b
        hw = cfg["image_size"] // 2 ** b
        pk.add(f"pool{b}_seo", _pool_row_matrix(hw))
        pe, po = _pool_col_matrices(hw, out_ch)
        pk.add(f"pool{b}_pe", pe)
        pk.add(f"pool{b}_po", po)

    c_last = cfg["n_start_filters"] * 2 ** (nb - 1)
    h_last = cfg["image_size"] // 2 ** (nb - 1)
    ro_w = randn((c_last, cfg["n_classes"]))
    ro_b = randn((cfg["n_classes"],))
    pk.add("head_w", _chan_mean_matrix(h_last, c_last) @ ro_w)     # avg-pool(W) fused into readout
    pk.add("head_b", np.tile(ro_b[None, :], (T, 1)))
    rm = np.zeros((T, T * h_last), np.float32)
    for t in range(T):
        rm[t, t * h_last:(t + 1) * h_last] = 1.0 / h_last          # avg-pool(H), all timesteps at once
    pk.add("rowmean", rm)

    return jnp.asarray(pk.pack()), pk.layout


# ----------------------------------------------------------------------------
# The single fused kernel (whole recurrent forward for one batch element)
# ----------------------------------------------------------------------------
def _make_kernel(cfg, layout):
    T = cfg["timesteps"]
    nb, nl = cfg["n_blocks"], cfg["n_layers"]
    lateral = cfg["is_lateral_enabled"]
    topdown = cfg["is_topdown_enabled"]
    multiplicative = cfg["LT_interaction"] == "multiplicative"

    def kernel(x_ref, pk_ref, o_ref):
        def P(name):  # static slice into the packed parameter slab
            off, r, c = layout[name]
            return pk_ref[off:off + r, 0:c]

        def conv(x, w_name, b_name):
            # 'same' 3x3 conv as ONE matmul on the lane-aligned [x_up | x | x_dn] operand.
            h = x.shape[0]
            udx = jnp.dot(P(f"ud{h}"), x, preferred_element_type=jnp.float32)   # [x_up ; x_dn]
            op = jnp.concatenate([udx[0:h, :], x, udx[h:2 * h, :]], axis=1)     # (h, 384)
            return jnp.dot(op, P(w_name), preferred_element_type=jnp.float32) + P(b_name)

        def transposed_conv(a, pfx):
            # stride-2 ConvTranspose2d: even/odd output rows via two matmuls on [a | a_down],
            # then one constant interleave matmul (no per-row stores, no zero dilation).
            h = a.shape[0]
            udx = jnp.dot(P(f"ud{h}"), a, preferred_element_type=jnp.float32)
            op = jnp.concatenate([a, udx[h:2 * h, :]], axis=1)                  # (h, 256)
            ev = jnp.dot(op, P(pfx + "td_we"), preferred_element_type=jnp.float32)
            od = jnp.dot(op, P(pfx + "td_wo"), preferred_element_type=jnp.float32)
            stacked = jnp.concatenate([ev, od], axis=0)                         # (2h, 128)
            full = jnp.dot(P(f"ilv{2 * h}"), stacked, preferred_element_type=jnp.float32)
            return full + P(pfx + "td_b")

        def layer_norm_relu(x, g_name, b_name):
            # torch LayerNorm([C, H, W]) -> normalize over the whole (H, W*C) tile.
            mu = jnp.mean(x)
            var = jnp.mean(x * x) - mu * mu
            y = (x - mu) * jax.lax.rsqrt(var + _LN_EPS)
            y = y * P(g_name) + P(b_name)
            return jnp.maximum(y, 0.0)

        def max_pool(x, b):
            # 2x2 maxpool: row-pair selection matmul + even/odd column selection matmuls.
            rs = jnp.dot(P(f"pool{b}_seo"), x, preferred_element_type=jnp.float32)
            h2 = rs.shape[0] // 2
            rmax = jnp.maximum(rs[0:h2, :], rs[h2:, :])
            ce = jnp.dot(rmax, P(f"pool{b}_pe"), preferred_element_type=jnp.float32)
            co = jnp.dot(rmax, P(f"pool{b}_po"), preferred_element_type=jnp.float32)
            return jnp.maximum(ce, co)          # (h/2, 128) with lanes >= (W/2)*C zero

        x_in = x_ref[0]                         # (H, 128) zero-padded lane-flattened image
        last_acts = [None] * nb
        feats = []
        for t in range(T):
            x = x_in
            for b in range(nb):
                for li in range(nl):
                    pfx = f"b{b}l{li}_"
                    is_last_layer = li == nl - 1
                    is_last_block = b == nb - 1
                    pre = conv(x, pfx + "bu_w", pfx + "bu_b")
                    extra = None
                    if lateral and is_last_layer and last_acts[b] is not None:
                        extra = conv(last_acts[b], pfx + "lat_w", pfx + "lat_b")
                    if (topdown and is_last_layer and not is_last_block
                            and last_acts[b + 1] is not None):
                        td = transposed_conv(last_acts[b + 1], pfx)
                        extra = td if extra is None else extra + td
                    if extra is not None:
                        pre = pre * (1.0 + extra) if multiplicative else pre + extra
                    x = layer_norm_relu(pre, pfx + "ln_g", pfx + "ln_b")
                last_acts[b] = x
                if b < nb - 1:
                    x = max_pool(x, b)
            feats.append(x)                     # last-block activation for this timestep

        # Deferred head: one stack, one row-mean matmul, one readout matmul, one log-softmax.
        xcat = jnp.concatenate(feats, axis=0)                                   # (T*h_last, 128)
        pooled = jnp.dot(P("rowmean"), xcat, preferred_element_type=jnp.float32)  # (T, 128)
        logits = jnp.dot(pooled, P("head_w"), preferred_element_type=jnp.float32) + P("head_b")
        m = jnp.max(logits, axis=-1, keepdims=True)
        z = logits - m
        lse = jnp.log(jnp.sum(jnp.exp(z), axis=-1, keepdims=True))
        o_ref[0] = jnp.maximum(z - lse, _LOG_CLAMP)   # log(clamp(softmax, 1e-10, 1))

    return kernel


# ----------------------------------------------------------------------------
# Wrapper: one pallas_call for the whole forward, batch on a "parallel" grid
# ----------------------------------------------------------------------------
def build_forward(cfg, layout):
    kernel = _make_kernel(cfg, layout)
    T, nc = cfg["timesteps"], cfg["n_classes"]

    def forward(packed, x_nhwc):
        N, H, W, Cin = x_nhwc.shape
        x_rows = x_nhwc.reshape(N, H, W * Cin)
        x_pad = jnp.pad(x_rows, ((0, 0), (0, 0), (0, _LANE - W * Cin)))
        R = packed.shape[0]
        out = pl.pallas_call(
            kernel,
            out_shape=jax.ShapeDtypeStruct((N, T, nc), jnp.float32),
            grid=(N,),
            in_specs=[
                pl.BlockSpec((1, H, _LANE), lambda b: (b, 0, 0)),   # per-batch image
                pl.BlockSpec((R, _LANE), lambda b: (0, 0)),         # one packed param slab
            ],
            out_specs=pl.BlockSpec((1, T, nc), lambda b: (b, 0, 0)),
            compiler_params=pltpu.CompilerParams(
                dimension_semantics=("parallel",),
            ),
        )(x_pad, packed)
        return [out[:, t, :] for t in range(T)]

    return forward


if __name__ == "__main__":
    key = jax.random.PRNGKey(0)
    kx, kp = jax.random.split(key)
    x = jax.random.normal(
        kx,
        (CFG["batch"], CFG["image_size"], CFG["image_size"], CFG["in_channels"]),
        jnp.float32,
    )  # NHWC
    packed, layout = init_params(kp, CFG)

    fwd = jax.jit(build_forward(CFG, layout))
    outs = jax.block_until_ready(fwd(packed, x))

    assert len(outs) == CFG["timesteps"]
    for o in outs:
        assert o.shape == (CFG["batch"], CFG["n_classes"])
        assert bool(jnp.all(jnp.isfinite(o)))
        # log-probabilities after clamp: must be <= 0
        assert bool(jnp.all(o <= 0.0))
    print("KERNEL_OK")
</pallas_src>

<mosaic_0001>
module attributes {stable_mosaic.version = 11 : i64} {
  func.func @kernel(%arg0: i32, %arg1: memref<1x16x128xf32, #tpu.memory_space<vmem>>, %arg2: memref<3480x128xf32, #tpu.memory_space<vmem>>, %arg3: memref<1x3x10xf32, #tpu.memory_space<vmem>>) attributes {dimension_semantics = [#tpu.dimension_semantics<parallel>], iteration_bounds = array<i64: 2>, scalar_prefetch = 0 : i64, scratch_operands = 0 : i64, tpu.core_type = #tpu.core_type<tc>, window_params = [{transform_indices = @transform_0, window_bounds = array<i64: 1, 16, 128>}, {pipeline_mode = #tpu.pipeline_mode<synchronous>, transform_indices = @transform_1, window_bounds = array<i64: 3480, 128>}, {transform_indices = @transform_2, window_bounds = array<i64: 1, 3, 10>}]} {
    %c0 = arith.constant 0 : index
    %c0_0 = arith.constant 0 : index
    %c0_1 = arith.constant 0 : index
    %0 = vector.load %arg1[%c0, %c0_0, %c0_1] : memref<1x16x128xf32, #tpu.memory_space<vmem>>, vector<1x16x128xf32>
    %1 = vector.shape_cast %0 : vector<1x16x128xf32> to vector<16x128xf32>
    %c0_2 = arith.constant 0 : index
    %c0_3 = arith.constant 0 : index
    %2 = vector.load %arg2[%c0_2, %c0_3] : memref<3480x128xf32, #tpu.memory_space<vmem>>, vector<32x16xf32>
    %cst = arith.constant dense<0.000000e+00> : vector<32x128xf32>
    %3 = tpu.matmul %2, %1, %cst {dimension_numbers = #tpu.dot_dimension_numbers<[1], [0], [0], [1], [0, 0, 1, 1], [], []>} : vector<32x16xf32>, vector<16x128xf32>, vector<32x128xf32> -> vector<32x128xf32>
    %4 = vector.extract_strided_slice %3 {offsets = [0, 0], sizes = [16, 128], strides = [1, 1]} : vector<32x128xf32> to vector<16x128xf32>
    %5 = vector.extract_strided_slice %3 {offsets = [16, 0], sizes = [16, 128], strides = [1, 1]} : vector<32x128xf32> to vector<16x128xf32>
    %6 = tpu.concatenate %4, %1, %5 in 1 : vector<16x128xf32>, vector<16x128xf32>, vector<16x128xf32> -> vector<16x384xf32>
    %c64 = arith.constant 64 : index
    %c0_4 = arith.constant 0 : index
    %7 = vector.load %arg2[%c64, %c0_4] : memref<3480x128xf32, #tpu.memory_space<vmem>>, vector<384x128xf32>
    %cst_5 = arith.constant dense<0.000000e+00> : vector<16x128xf32>
    %8 = tpu.matmul %6, %7, %cst_5 {dimension_numbers = #tpu.dot_dimension_numbers<[1], [0], [0], [1], [0, 0, 1, 1], [], []>} : vector<16x384xf32>, vector<384x128xf32>, vector<16x128xf32> -> vector<16x128xf32>
    %c448 = arith.constant 448 : index
    %c0_6 = arith.constant 0 : index
    %9 = vector.load %arg2[%c448, %c0_6] : memref<3480x128xf32, #tpu.memory_space<vmem>>, vector<16x128xf32>
    %10 = arith.addf %8, %9 : vector<16x128xf32>
    %11 = vector.shape_cast %10 : vector<16x128xf32> to vector<1x16x128xf32>
    %cst_7 = arith.constant dense<0.000000e+00> : vector<1xf32>
    %12 = vector.multi_reduction <add>, %11, %cst_7 [1, 2] : vector<1x16x128xf32> to vector<1xf32>
    %13 = vector.shape_cast %12 : vector<1xf32> to vector<1x1x1xf32>
    %14 = vector.extract %13[0, 0, 0] : f32 from vector<1x1x1xf32>
    %cst_8 = arith.constant 2.048000e+03 : f32
    %15 = arith.divf %14, %cst_8 : f32
    %16 = arith.mulf %10, %10 : vector<16x128xf32>
    %17 = vector.shape_cast %16 : vector<16x128xf32> to vector<1x16x128xf32>
    %cst_9 = arith.constant dense<0.000000e+00> : vector<1xf32>
    %18 = vector.multi_reduction <add>, %17, %cst_9 [1, 2] : vector<1x16x128xf32> to vector<1xf32>
    %19 = vector.shape_cast %18 : vector<1xf32> to vector<1x1x1xf32>
    %20 = vector.extract %19[0, 0, 0] : f32 from vector<1x1x1xf32>
    %cst_10 = arith.constant 2.048000e+03 : f32
    %21 = arith.divf %20, %cst_10 : f32
    %22 = arith.mulf %15, %15 : f32
    %23 = arith.subf %21, %22 : f32
    %24 = vector.broadcast %15 : f32 to vector<16x128xf32>
    %25 = arith.subf %10, %24 : vector<16x128xf32>
    %cst_11 = arith.constant 9.99999974E-6 : f32
    %26 = arith.addf %23, %cst_11 : f32
    %27 = math.rsqrt %26 : f32
    %28 = vector.broadcast %27 : f32 to vector<16x128xf32>
    %29 = arith.mulf %25, %28 : vector<16x128xf32>
    %c464 = arith.constant 464 : index
    %c0_12 = arith.constant 0 : index
    %30 = vector.load %arg2[%c464, %c0_12] : memref<3480x128xf32, #tpu.memory_space<vmem>>, vector<16x128xf32>
    %31 = arith.mulf %29, %30 : vector<16x128xf32>
    %c480 = arith.constant 480 : index
    %c0_13 = arith.constant 0 : index
    %32 = vector.load %arg2[%c480, %c0_13] : memref<3480x128xf32, #tpu.memory_space<vmem>>, vector<16x128xf32>
    %33 = arith.addf %31, %32 : vector<16x128xf32>
    %cst_14 = arith.constant 0.000000e+00 : f32
    %34 = vector.broadcast %cst_14 : f32 to vector<16x128xf32>
    %35 = arith.maximumf %33, %34 : vector<16x128xf32>
    %c0_15 = arith.constant 0 : index
    %c0_16 = arith.constant 0 : index
    %36 = vector.load %arg2[%c0_15, %c0_16] : memref<3480x128xf32, #tpu.memory_space<vmem>>, vector<32x16xf32>
    %cst_17 = arith.constant dense<0.000000e+00> : vector<32x128xf32>
    %37 = tpu.matmul %36, %35, %cst_17 {dimension_numbers = #tpu.dot_dimension_numbers<[1], [0], [0], [1], [0, 0, 1, 1], [], []>} : vector<32x16xf32>, vector<16x128xf32>, vector<32x128xf32> -> vector<32x128xf32>
    %38 = vector.extract_strided_slice %37 {offsets = [0, 0], sizes = [16, 128], strides = [1, 1]} : vector<32x128xf32> to vector<16x128xf32>
    %39 = vector.extract_strided_slice %37 {offsets = [16, 0], sizes = [16, 128], strides = [1, 1]} : vector<32x128xf32> to vector<16x128xf32>
    %40 = tpu.concatenate %38, %35, %39 in 1 : vector<16x128xf32>, vector<16x128xf32>, vector<16x128xf32> -> vector<16x384xf32>
    %c496 = arith.constant 496 : index
    %c0_18 = arith.constant 0 : index
    %41 = vector.load %arg2[%c496, %c0_18] : memref<3480x128xf32, #tpu.memory_space<vmem>>, vector<384x128xf32>
    %cst_19 = arith.constant dense<0.000000e+00> : vector<16x128xf32>
    %42 = tpu.matmul %40, %41, %cst_19 {dimension_numbers = #tpu.dot_dimension_numbers<[1], [0], [0], [1], [0, 0, 1, 1], [], []>} : vector<16x384xf32>, vector<384x128xf32>, vector<16x128xf32> -> vector<16x128xf32>
    %c880 = arith.constant 880 : index
    %c0_20 = arith.constant 0 : index
    %43 = vector.load %arg2[%c880, %c0_20] : memref<3480x128xf32, #tpu.memory_space<vmem>>, vector<16x128xf32>
    %44 = arith.addf %42, %43 : vector<16x128xf32>
    %45 = vector.shape_cast %44 : vector<16x128xf32> to vector<1x16x128xf32>
    %cst_21 = arith.constant dense<0.000000e+00> : vector<1xf32>
    %46 = vector.multi_reduction <add>, %45, %cst_21 [1, 2] : vector<1x16x128xf32> to vector<1xf32>
    %47 = vector.shape_cast %46 : vector<1xf32> to vector<1x1x1xf32>
    %48 = vector.extract %47[0, 0, 0] : f32 from vector<1x1x1xf32>
    %cst_22 = arith.constant 2.048000e+03 : f32
    %49 = arith.divf %48, %cst_22 : f32
    %50 = arith.mulf %44, %44 : vector<16x128xf32>
    %51 = vector.shape_cast %50 : vector<16x128xf32> to vector<1x16x128xf32>
    %cst_23 = arith.constant dense<0.000000e+00> : vector<1xf32>
    %52 = vector.multi_reduction <add>, %51, %cst_23 [1, 2] : vector<1x16x128xf32> to vector<1xf32>
    %53 = vector.shape_cast %52 : vector<1xf32> to vector<1x1x1xf32>
    %54 = vector.extract %53[0, 0, 0] : f32 from vector<1x1x1xf32>
    %cst_24 = arith.constant 2.048000e+03 : f32
    %55 = arith.divf %54, %cst_24 : f32
    %56 = arith.mulf %49, %49 : f32
    %57 = arith.subf %55, %56 : f32
    %58 = vector.broadcast %49 : f32 to vector<16x128xf32>
    %59 = arith.subf %44, %58 : vector<16x128xf32>
    %cst_25 = arith.constant 9.99999974E-6 : f32
    %60 = arith.addf %57, %cst_25 : f32
    %61 = math.rsqrt %60 : f32
    %62 = vector.broadcast %61 : f32 to vector<16x128xf32>
    %63 = arith.mulf %59, %62 : vector<16x128xf32>
    %c896 = arith.constant 896 : index
    %c0_26 = arith.constant 0 : index
    %64 = vector.load %arg2[%c896, %c0_26] : memref<3480x128xf32, #tpu.memory_space<vmem>>, vector<16x128xf32>
    %65 = arith.mulf %63, %64 : vector<16x128xf32>
    %c912 = arith.constant 912 : index
    %c0_27 = arith.constant 0 : index
    %66 = vector.load %arg2[%c912, %c0_27] : memref<3480x128xf32, #tpu.memory_space<vmem>>, vector<16x128xf32>
    %67 = arith.addf %65, %66 : vector<16x128xf32>
    %cst_28 = arith.constant 0.000000e+00 : f32
    %68 = vector.broadcast %cst_28 : f32 to vector<16x128xf32>
    %69 = arith.maximumf %67, %68 : vector<16x128xf32>
    %c3064 = arith.constant 3064 : index
    %c0_29 = arith.constant 0 : index
    %70 = vector.load %arg2[%c3064, %c0_29] : memref<3480x128xf32, #tpu.memory_space<vmem>>, vector<16x16xf32>
    %cst_30 = arith.constant dense<0.000000e+00> : vector<16x128xf32>
    %71 = tpu.matmul %70, %69, %cst_30 {dimension_numbers = #tpu.dot_dimension_numbers<[1], [0], [0], [1], [0, 0, 1, 1], [], []>} : vector<16x16xf32>, vector<16x128xf32>, vector<16x128xf32> -> vector<16x128xf32>
    %72 = vector.extract_strided_slice %71 {offsets = [0, 0], sizes = [8, 128], strides = [1, 1]} : vector<16x128xf32> to vector<8x128xf32>
    %73 = vector.extract_strided_slice %71 {offsets = [8, 0], sizes = [8, 128], strides = [1, 1]} : vector<16x128xf32> to vector<8x128xf32>
    %74 = arith.maximumf %72, %73 : vector<8x128xf32>
    %c3080 = arith.constant 3080 : index
    %c0_31 = arith.constant 0 : index
    %75 = vector.load %arg2[%c3080, %c0_31] : memref<3480x128xf32, #tpu.memory_space<vmem>>, vector<128x128xf32>
    %cst_32 = arith.constant dense<0.000000e+00> : vector<8x128xf32>
    %76 = tpu.matmul %74, %75, %cst_32 {dimension_numbers = #tpu.dot_dimension_numbers<[1], [0], [0], [1], [0, 0, 1, 1], [], []>} : vector<8x128xf32>, vector<128x128xf32>, vector<8x128xf32> -> vector<8x128xf32>
    %c3208 = arith.constant 3208 : index
    %c0_33 = arith.constant 0 : index
    %77 = vector.load %arg2[%c3208, %c0_33] : memref<3480x128xf32, #tpu.memory_space<vmem>>, vector<128x128xf32>
    %cst_34 = arith.constant dense<0.000000e+00> : vector<8x128xf32>
    %78 = tpu.matmul %74, %77, %cst_34 {dimension_numbers = #tpu.dot_dimension_numbers<[1], [0], [0], [1], [0, 0, 1, 1], [], []>} : vector<8x128xf32>, vector<128x128xf32>, vector<8x128xf32> -> vector<8x128xf32>
    %79 = arith.maximumf %76, %78 : vector<8x128xf32>
    %c32 = arith.constant 32 : index
    %c0_35 = arith.constant 0 : index
    %80 = vector.load %arg2[%c32, %c0_35] : memref<3480x128xf32, #tpu.memory_space<vmem>>, vector<16x8xf32>
    %cst_36 = arith.constant dense<0.000000e+00> : vector<16x128xf32>
    %81 = tpu.matmul %80, %79, %cst_36 {dimension_numbers = #tpu.dot_dimension_numbers<[1], [0], [0], [1], [0, 0, 1, 1], [], []>} : vector<16x8xf32>, vector<8x128xf32>, vector<16x128xf32> -> vector<16x128xf32>
    %82 = vector.extract_strided_slice %81 {offsets = [0, 0], sizes = [8, 128], strides = [1, 1]} : vector<16x128xf32> to vector<8x128xf32>
    %83 = vector.extract_strided_slice %81 {offsets = [8, 0], sizes = [8, 128], strides = [1, 1]} : vector<16x128xf32> to vector<8x128xf32>
    %84 = tpu.concatenate %82, %79, %83 in 1 : vector<8x128xf32>, vector<8x128xf32>, vector<8x128xf32> -> vector<8x384xf32>
    %c1856 = arith.constant 1856 : index
    %c0_37 = arith.constant 0 : index
    %85 = vector.load %arg2[%c1856, %c0_37] : memref<3480x128xf32, #tpu.memory_space<vmem>>, vector<384x128xf32>
    %cst_38 = arith.constant dense<0.000000e+00> : vector<8x128xf32>
    %86 = tpu.matmul %84, %85, %cst_38 {dimension_numbers = #tpu.dot_dimension_numbers<[1], [0], [0], [1], [0, 0, 1, 1], [], []>} : vector<8x384xf32>, vector<384x128xf32>, vector<8x128xf32> -> vector<8x128xf32>
    %c2240 = arith.constant 2240 : index
    %c0_39 = arith.constant 0 : index
    %87 = vector.load %arg2[%c2240, %c0_39] : memref<3480x128xf32, #tpu.memory_space<vmem>>, vector<8x128xf32>
    %88 = arith.addf %86, %87 : vector<8x128xf32>
    %89 = vector.shape_cast %88 : vector<8x128xf32> to vector<1x8x128xf32>
    %cst_40 = arith.constant dense<0.000000e+00> : vector<1xf32>
    %90 = vector.multi_reduction <add>, %89, %cst_40 [1, 2] : vector<1x8x128xf32> to vector<1xf32>
    %91 = vector.shape_cast %90 : vector<1xf32> to vector<1x1x1xf32>
    %92 = vector.extract %91[0, 0, 0] : f32 from vector<1x1x1xf32>
    %cst_41 = arith.constant 1.024000e+03 : f32
    %93 = arith.divf %92, %cst_41 : f32
    %94 = arith.mulf %88, %88 : vector<8x128xf32>
    %95 = vector.shape_cast %94 : vector<8x128xf32> to vector<1x8x128xf32>
    %cst_42 = arith.constant dense<0.000000e+00> : vector<1xf32>
    %96 = vector.multi_reduction <add>, %95, %cst_42 [1, 2] : vector<1x8x128xf32> to vector<1xf32>
    %97 = vector.shape_cast %96 : vector<1xf32> to vector<1x1x1xf32>
    %98 = vector.extract %97[0, 0, 0] : f32 from vector<1x1x1xf32>
    %cst_43 = arith.constant 1.024000e+03 : f32
    %99 = arith.divf %98, %cst_43 : f32
    %100 = arith.mulf %93, %93 : f32
    %101 = arith.subf %99, %100 : f32
    %102 = vector.broadcast %93 : f32 to vector<8x128xf32>
    %103 = arith.subf %88, %102 : vector<8x128xf32>
    %cst_44 = arith.constant 9.99999974E-6 : f32
    %104 = arith.addf %101, %cst_44 : f32
    %105 = math.rsqrt %104 : f32
    %106 = vector.broadcast %105 : f32 to vector<8x128xf32>
    %107 = arith.mulf %103, %106 : vector<8x128xf32>
    %c2248 = arith.constant 2248 : index
    %c0_45 = arith.constant 0 : index
    %108 = vector.load %arg2[%c2248, %c0_45] : memref<3480x128xf32, #tpu.memory_space<vmem>>, vector<8x128xf32>
    %109 = arith.mulf %107, %108 : vector<8x128xf32>
    %c2256 = arith.constant 2256 : index
    %c0_46 = arith.constant 0 : index
    %110 = vector.load %arg2[%c2256, %c0_46] : memref<3480x128xf32, #tpu.memory_space<vmem>>, vector<8x128xf32>
    %111 = arith.addf %109, %110 : vector<8x128xf32>
    %cst_47 = arith.constant 0.000000e+00 : f32
    %112 = vector.broadcast %cst_47 : f32 to vector<8x128xf32>
    %113 = arith.maximumf %111, %112 : vector<8x128xf32>
    %c32_48 = arith.constant 32 : index
    %c0_49 = arith.constant 0 : index
    %114 = vector.load %arg2[%c32_48, %c0_49] : memref<3480x128xf32, #tpu.memory_space<vmem>>, vector<16x8xf32>
    %cst_50 = arith.constant dense<0.000000e+00> : vector<16x128xf32>
    %115 = tpu.matmul %114, %113, %cst_50 {dimension_numbers = #tpu.dot_dimension_numbers<[1], [0], [0], [1], [0, 0, 1, 1], [], []>} : vector<16x8xf32>, vector<8x128xf32>, vector<16x128xf32> -> vector<16x128xf32>
    %116 = vector.extract_strided_slice %115 {offsets = [0, 0], sizes = [8, 128], strides = [1, 1]} : vector<16x128xf32> to vector<8x128xf32>
    %117 = vector.extract_strided_slice %115 {offsets = [8, 0], sizes = [8, 128], strides = [1, 1]} : vector<16x128xf32> to vector<8x128xf32>
    %118 = tpu.concatenate %116, %113, %117 in 1 : vector<8x128xf32>, vector<8x128xf32>, vector<8x128xf32> -> vector<8x384xf32>
    %c2264 = arith.constant 2264 : index
    %c0_51 = arith.constant 0 : index
    %119 = vector.load %arg2[%c2264, %c0_51] : memref<3480x128xf32, #tpu.memory_space<vmem>>, vector<384x128xf32>
    %cst_52 = arith.constant dense<0.000000e+00> : vector<8x128xf32>
    %120 = tpu.matmul %118, %119, %cst_52 {dimension_numbers = #tpu.dot_dimension_numbers<[1], [0], [0], [1], [0, 0, 1, 1], [], []>} : vector<8x384xf32>, vector<384x128xf32>, vector<8x128xf32> -> vector<8x128xf32>
    %c2648 = arith.constant 2648 : index
    %c0_53 = arith.constant 0 : index
    %121 = vector.load %arg2[%c2648, %c0_53] : memref<3480x128xf32, #tpu.memory_space<vmem>>, vector<8x128xf32>
    %122 = arith.addf %120, %121 : vector<8x128xf32>
    %123 = vector.shape_cast %122 : vector<8x128xf32> to vector<1x8x128xf32>
    %cst_54 = arith.constant dense<0.000000e+00> : vector<1xf32>
    %124 = vector.multi_reduction <add>, %123, %cst_54 [1, 2] : vector<1x8x128xf32> to vector<1xf32>
    %125 = vector.shape_cast %124 : vector<1xf32> to vector<1x1x1xf32>
    %126 = vector.extract %125[0, 0, 0] : f32 from vector<1x1x1xf32>
    %cst_55 = arith.constant 1.024000e+03 : f32
    %127 = arith.divf %126, %cst_55 : f32
    %128 = arith.mulf %122, %122 : vector<8x128xf32>
    %129 = vector.shape_cast %128 : vector<8x128xf32> to vector<1x8x128xf32>
    %cst_56 = arith.constant dense<0.000000e+00> : vector<1xf32>
    %130 = vector.multi_reduction <add>, %129, %cst_56 [1, 2] : vector<1x8x128xf32> to vector<1xf32>
    %131 = vector.shape_cast %130 : vector<1xf32> to vector<1x1x1xf32>
    %132 = vector.extract %131[0, 0, 0] : f32 from vector<1x1x1xf32>
    %cst_57 = arith.constant 1.024000e+03 : f32
    %133 = arith.divf %132, %cst_57 : f32
    %134 = arith.mulf %127, %127 : f32
    %135 = arith.subf %133, %134 : f32
    %136 = vector.broadcast %127 : f32 to vector<8x128xf32>
    %137 = arith.subf %122, %136 : vector<8x128xf32>
    %cst_58 = arith.constant 9.99999974E-6 : f32
    %138 = arith.addf %135, %cst_58 : f32
    %139 = math.rsqrt %138 : f32
    %140 = vector.broadcast %139 : f32 to vector<8x128xf32>
    %141 = arith.mulf %137, %140 : vector<8x128xf32>
    %c2656 = arith.constant 2656 : index
    %c0_59 = arith.constant 0 : index
    %142 = vector.load %arg2[%c2656, %c0_59] : memref<3480x128xf32, #tpu.memory_space<vmem>>, vector<8x128xf32>
    %143 = arith.mulf %141, %142 : vector<8x128xf32>
    %c2664 = arith.constant 2664 : index
    %c0_60 = arith.constant 0 : index
    %144 = vector.load %arg2[%c2664, %c0_60] : memref<3480x128xf32, #tpu.memory_space<vmem>>, vector<8x128xf32>
    %145 = arith.addf %143, %144 : vector<8x128xf32>
    %cst_61 = arith.constant 0.000000e+00 : f32
    %146 = vector.broadcast %cst_61 : f32 to vector<8x128xf32>
    %147 = arith.maximumf %145, %146 : vector<8x128xf32>
    %c0_62 = arith.constant 0 : index
    %c0_63 = arith.constant 0 : index
    %148 = vector.load %arg2[%c0_62, %c0_63] : memref<3480x128xf32, #tpu.memory_space<vmem>>, vector<32x16xf32>
    %cst_64 = arith.constant dense<0.000000e+00> : vector<32x128xf32>
    %149 = tpu.matmul %148, %1, %cst_64 {dimension_numbers = #tpu.dot_dimension_numbers<[1], [0], [0], [1], [0, 0, 1, 1], [], []>} : vector<32x16xf32>, vector<16x128xf32>, vector<32x128xf32> -> vector<32x128xf32>
    %150 = vector.extract_strided_slice %149 {offsets = [0, 0], sizes = [16, 128], strides = [1, 1]} : vector<32x128xf32> to vector<16x128xf32>
    %151 = vector.extract_strided_slice %149 {offsets = [16, 0], sizes = [16, 128], strides = [1, 1]} : vector<32x128xf32> to vector<16x128xf32>
    %152 = tpu.concatenate %150, %1, %151 in 1 : vector<16x128xf32>, vector<16x128xf32>, vector<16x128xf32> -> vector<16x384xf32>
    %c64_65 = arith.constant 64 : index
    %c0_66 = arith.constant 0 : index
    %153 = vector.load %arg2[%c64_65, %c0_66] : memref<3480x128xf32, #tpu.memory_space<vmem>>, vector<384x128xf32>
    %cst_67 = arith.constant dense<0.000000e+00> : vector<16x128xf32>
    %154 = tpu.matmul %152, %153, %cst_67 {dimension_numbers = #tpu.dot_dimension_numbers<[1], [0], [0], [1], [0, 0, 1, 1], [], []>} : vector<16x384xf32>, vector<384x128xf32>, vector<16x128xf32> -> vector<16x128xf32>
    %c448_68 = arith.constant 448 : index
    %c0_69 = arith.constant 0 : index
    %155 = vector.load %arg2[%c448_68, %c0_69] : memref<3480x128xf32, #tpu.memory_space<vmem>>, vector<16x128xf32>
    %156 = arith.addf %154, %155 : vector<16x128xf32>
    %157 = vector.shape_cast %156 : vector<16x128xf32> to vector<1x16x128xf32>
    %cst_70 = arith.constant dense<0.000000e+00> : vector<1xf32>
    %158 = vector.multi_reduction <add>, %157, %cst_70 [1, 2] : vector<1x16x128xf32> to vector<1xf32>
    %159 = vector.shape_cast %158 : vector<1xf32> to vector<1x1x1xf32>
    %160 = vector.extract %159[0, 0, 0] : f32 from vector<1x1x1xf32>
    %cst_71 = arith.constant 2.048000e+03 : f32
    %161 = arith.divf %160, %cst_71 : f32
    %162 = arith.mulf %156, %156 : vector<16x128xf32>
    %163 = vector.shape_cast %162 : vector<16x128xf32> to vector<1x16x128xf32>
    %cst_72 = arith.constant dense<0.000000e+00> : vector<1xf32>
    %164 = vector.multi_reduction <add>, %163, %cst_72 [1, 2] : vector<1x16x128xf32> to vector<1xf32>
    %165 = vector.shape_cast %164 : vector<1xf32> to vector<1x1x1xf32>
    %166 = vector.extract %165[0, 0, 0] : f32 from vector<1x1x1xf32>
    %cst_73 = arith.constant 2.048000e+03 : f32
    %167 = arith.divf %166, %cst_73 : f32
    %168 = arith.mulf %161, %161 : f32
    %169 = arith.subf %167, %168 : f32
    %170 = vector.broadcast %161 : f32 to vector<16x128xf32>
    %171 = arith.subf %156, %170 : vector<16x128xf32>
    %cst_74 = arith.constant 9.99999974E-6 : f32
    %172 = arith.addf %169, %cst_74 : f32
    %173 = math.rsqrt %172 : f32
    %174 = vector.broadcast %173 : f32 to vector<16x128xf32>
    %175 = arith.mulf %171, %174 : vector<16x128xf32>
    %c464_75 = arith.constant 464 : index
    %c0_76 = arith.constant 0 : index
    %176 = vector.load %arg2[%c464_75, %c0_76] : memref<3480x128xf32, #tpu.memory_space<vmem>>, vector<16x128xf32>
    %177 = arith.mulf %175, %176 : vector<16x128xf32>
    %c480_77 = arith.constant 480 : index
    %c0_78 = arith.constant 0 : index
    %178 = vector.load %arg2[%c480_77, %c0_78] : memref<3480x128xf32, #tpu.memory_space<vmem>>, vector<16x128xf32>
    %179 = arith.addf %177, %178 : vector<16x128xf32>
    %cst_79 = arith.constant 0.000000e+00 : f32
    %180 = vector.broadcast %cst_79 : f32 to vector<16x128xf32>
    %181 = arith.maximumf %179, %180 : vector<16x128xf32>
    %c0_80 = arith.constant 0 : index
    %c0_81 = arith.constant 0 : index
    %182 = vector.load %arg2[%c0_80, %c0_81] : memref<3480x128xf32, #tpu.memory_space<vmem>>, vector<32x16xf32>
    %cst_82 = arith.constant dense<0.000000e+00> : vector<32x128xf32>
    %183 = tpu.matmul %182, %181, %cst_82 {dimension_numbers = #tpu.dot_dimension_numbers<[1], [0], [0], [1], [0, 0, 1, 1], [], []>} : vector<32x16xf32>, vector<16x128xf32>, vector<32x128xf32> -> vector<32x128xf32>
    %184 = vector.extract_strided_slice %183 {offsets = [0, 0], sizes = [16, 128], strides = [1, 1]} : vector<32x128xf32> to vector<16x128xf32>
    %185 = vector.extract_strided_slice %183 {offsets = [16, 0], sizes = [16, 128], strides = [1, 1]} : vector<32x128xf32> to vector<16x128xf32>
    %186 = tpu.concatenate %184, %181, %185 in 1 : vector<16x128xf32>, vector<16x128xf32>, vector<16x128xf32> -> vector<16x384xf32>
    %c496_83 = arith.constant 496 : index
    %c0_84 = arith.constant 0 : index
    %187 = vector.load %arg2[%c496_83, %c0_84] : memref<3480x128xf32, #tpu.memory_space<vmem>>, vector<384x128xf32>
    %cst_85 = arith.constant dense<0.000000e+00> : vector<16x128xf32>
    %188 = tpu.matmul %186, %187, %cst_85 {dimension_numbers = #tpu.dot_dimension_numbers<[1], [0], [0], [1], [0, 0, 1, 1], [], []>} : vector<16x384xf32>, vector<384x128xf32>, vector<16x128xf32> -> vector<16x128xf32>
    %c880_86 = arith.constant 880 : index
    %c0_87 = arith.constant 0 : index
    %189 = vector.load %arg2[%c880_86, %c0_87] : memref<3480x128xf32, #tpu.memory_space<vmem>>, vector<16x128xf32>
    %190 = arith.addf %188, %189 : vector<16x128xf32>
    %c0_88 = arith.constant 0 : index
    %c0_89 = arith.constant 0 : index
    %191 = vector.load %arg2[%c0_88, %c0_89] : memref<3480x128xf32, #tpu.memory_space<vmem>>, vector<32x16xf32>
    %cst_90 = arith.constant dense<0.000000e+00> : vector<32x128xf32>
    %192 = tpu.matmul %191, %69, %cst_90 {dimension_numbers = #tpu.dot_dimension_numbers<[1], [0], [0], [1], [0, 0, 1, 1], [], []>} : vector<32x16xf32>, vector<16x128xf32>, vector<32x128xf32> -> vector<32x128xf32>
    %193 = vector.extract_strided_slice %192 {offsets = [0, 0], sizes = [16, 128], strides = [1, 1]} : vector<32x128xf32> to vector<16x128xf32>
    %194 = vector.extract_strided_slice %192 {offsets = [16, 0], sizes = [16, 128], strides = [1, 1]} : vector<32x128xf32> to vector<16x128xf32>
    %195 = tpu.concatenate %193, %69, %194 in 1 : vector<16x128xf32>, vector<16x128xf32>, vector<16x128xf32> -> vector<16x384xf32>
    %c928 = arith.constant 928 : index
    %c0_91 = arith.constant 0 : index
    %196 = vector.load %arg2[%c928, %c0_91] : memref<3480x128xf32, #tpu.memory_space<vmem>>, vector<384x128xf32>
    %cst_92 = arith.constant dense<0.000000e+00> : vector<16x128xf32>
    %197 = tpu.matmul %195, %196, %cst_92 {dimension_numbers = #tpu.dot_dimension_numbers<[1], [0], [0], [1], [0, 0, 1, 1], [], []>} : vector<16x384xf32>, vector<384x128xf32>, vector<16x128xf32> -> vector<16x128xf32>
    %c1312 = arith.constant 1312 : index
    %c0_93 = arith.constant 0 : index
    %198 = vector.load %arg2[%c1312, %c0_93] : memref<3480x128xf32, #tpu.memory_space<vmem>>, vector<16x128xf32>
    %199 = arith.addf %197, %198 : vector<16x128xf32>
    %c32_94 = arith.constant 32 : index
    %c0_95 = arith.constant 0 : index
    %200 = vector.load %arg2[%c32_94, %c0_95] : memref<3480x128xf32, #tpu.memory_space<vmem>>, vector<16x8xf32>
    %cst_96 = arith.constant dense<0.000000e+00> : vector<16x128xf32>
    %201 = tpu.matmul %200, %147, %cst_96 {dimension_numbers = #tpu.dot_dimension_numbers<[1], [0], [0], [1], [0, 0, 1, 1], [], []>} : vector<16x8xf32>, vector<8x128xf32>, vector<16x128xf32> -> vector<16x128xf32>
    %202 = vector.extract_strided_slice %201 {offsets = [8, 0], sizes = [8, 128], strides = [1, 1]} : vector<16x128xf32> to vector<8x128xf32>
    %203 = tpu.concatenate %147, %202 in 1 : vector<8x128xf32>, vector<8x128xf32> -> vector<8x256xf32>
    %c1328 = arith.constant 1328 : index
    %c0_97 = arith.constant 0 : index
    %204 = vector.load %arg2[%c1328, %c0_97] : memref<3480x128xf32, #tpu.memory_space<vmem>>, vector<256x128xf32>
    %cst_98 = arith.constant dense<0.000000e+00> : vector<8x128xf32>
    %205 = tpu.matmul %203, %204, %cst_98 {dimension_numbers = #tpu.dot_dimension_numbers<[1], [0], [0], [1], [0, 0, 1, 1], [], []>} : vector<8x256xf32>, vector<256x128xf32>, vector<8x128xf32> -> vector<8x128xf32>
    %c1584 = arith.constant 1584 : index
    %c0_99 = arith.constant 0 : index
    %206 = vector.load %arg2[%c1584, %c0_99] : memref<3480x128xf32, #tpu.memory_space<vmem>>, vector<256x128xf32>
    %cst_100 = arith.constant dense<0.000000e+00> : vector<8x128xf32>
    %207 = tpu.matmul %203, %206, %cst_100 {dimension_numbers = #tpu.dot_dimension_numbers<[1], [0], [0], [1], [0, 0, 1, 1], [], []>} : vector<8x256xf32>, vector<256x128xf32>, vector<8x128xf32> -> vector<8x128xf32>
    %208 = tpu.concatenate %205, %207 in 0 : vector<8x128xf32>, vector<8x128xf32> -> vector<16x128xf32>
    %c48 = arith.constant 48 : index
    %c0_101 = arith.constant 0 : index
    %209 = vector.load %arg2[%c48, %c0_101] : memref<3480x128xf32, #tpu.memory_space<vmem>>, vector<16x16xf32>
    %cst_102 = arith.constant dense<0.000000e+00> : vector<16x128xf32>
    %210 = tpu.matmul %209, %208, %cst_102 {dimension_numbers = #tpu.dot_dimension_numbers<[1], [0], [0], [1], [0, 0, 1, 1], [], []>} : vector<16x16xf32>, vector<16x128xf32>, vector<16x128xf32> -> vector<16x128xf32>
    %c1840 = arith.constant 1840 : index
    %c0_103 = arith.constant 0 : index
    %211 = vector.load %arg2[%c1840, %c0_103] : memref<3480x128xf32, #tpu.memory_space<vmem>>, vector<16x128xf32>
    %212 = arith.addf %210, %211 : vector<16x128xf32>
    %213 = arith.addf %199, %212 : vector<16x128xf32>
    %214 = arith.addf %190, %213 : vector<16x128xf32>
    %215 = vector.shape_cast %214 : vector<16x128xf32> to vector<1x16x128xf32>
    %cst_104 = arith.constant dense<0.000000e+00> : vector<1xf32>
    %216 = vector.multi_reduction <add>, %215, %cst_104 [1, 2] : vector<1x16x128xf32> to vector<1xf32>
    %217 = vector.shape_cast %216 : vector<1xf32> to vector<1x1x1xf32>
    %218 = vector.extract %217[0, 0, 0] : f32 from vector<1x1x1xf32>
    %cst_105 = arith.constant 2.048000e+03 : f32
    %219 = arith.divf %218, %cst_105 : f32
    %220 = arith.mulf %214, %214 : vector<16x128xf32>
    %221 = vector.shape_cast %220 : vector<16x128xf32> to vector<1x16x128xf32>
    %cst_106 = arith.constant dense<0.000000e+00> : vector<1xf32>
    %222 = vector.multi_reduction <add>, %221, %cst_106 [1, 2] : vector<1x16x128xf32> to vector<1xf32>
    %223 = vector.shape_cast %222 : vector<1xf32> to vector<1x1x1xf32>
    %224 = vector.extract %223[0, 0, 0] : f32 from vector<1x1x1xf32>
    %cst_107 = arith.constant 2.048000e+03 : f32
    %225 = arith.divf %224, %cst_107 : f32
    %226 = arith.mulf %219, %219 : f32
    %227 = arith.subf %225, %226 : f32
    %228 = vector.broadcast %219 : f32 to vector<16x128xf32>
    %229 = arith.subf %214, %228 : vector<16x128xf32>
    %cst_108 = arith.constant 9.99999974E-6 : f32
    %230 = arith.addf %227, %cst_108 : f32
    %231 = math.rsqrt %230 : f32
    %232 = vector.broadcast %231 : f32 to vector<16x128xf32>
    %233 = arith.mulf %229, %232 : vector<16x128xf32>
    %c896_109 = arith.constant 896 : index
    %c0_110 = arith.constant 0 : index
    %234 = vector.load %arg2[%c896_109, %c0_110] : memref<3480x128xf32, #tpu.memory_space<vmem>>, vector<16x128xf32>
    %235 = arith.mulf %233, %234 : vector<16x128xf32>
    %c912_111 = arith.constant 912 : index
    %c0_112 = arith.constant 0 : index
    %236 = vector.load %arg2[%c912_111, %c0_112] : memref<3480x128xf32, #tpu.memory_space<vmem>>, vector<16x128xf32>
    %237 = arith.addf %235, %236 : vector<16x128xf32>
    %cst_113 = arith.constant 0.000000e+00 : f32
    %238 = vector.broadcast %cst_113 : f32 to vector<16x128xf32>
    %239 = arith.maximumf %237, %238 : vector<16x128xf32>
    %c3064_114 = arith.constant 3064 : index
    %c0_115 = arith.constant 0 : index
    %240 = vector.load %arg2[%c3064_114, %c0_115] : memref<3480x128xf32, #tpu.memory_space<vmem>>, vector<16x16xf32>
    %cst_116 = arith.constant dense<0.000000e+00> : vector<16x128xf32>
    %241 = tpu.matmul %240, %239, %cst_116 {dimension_numbers = #tpu.dot_dimension_numbers<[1], [0], [0], [1], [0, 0, 1, 1], [], []>} : vector<16x16xf32>, vector<16x128xf32>, vector<16x128xf32> -> vector<16x128xf32>
    %242 = vector.extract_strided_slice %241 {offsets = [0, 0], sizes = [8, 128], strides = [1, 1]} : vector<16x128xf32> to vector<8x128xf32>
    %243 = vector.extract_strided_slice %241 {offsets = [8, 0], sizes = [8, 128], strides = [1, 1]} : vector<16x128xf32> to vector<8x128xf32>
    %244 = arith.maximumf %242, %243 : vector<8x128xf32>
    %c3080_117 = arith.constant 3080 : index
    %c0_118 = arith.constant 0 : index
    %245 = vector.load %arg2[%c3080_117, %c0_118] : memref<3480x128xf32, #tpu.memory_space<vmem>>, vector<128x128xf32>
    %cst_119 = arith.constant dense<0.000000e+00> : vector<8x128xf32>
    %246 = tpu.matmul %244, %245, %cst_119 {dimension_numbers = #tpu.dot_dimension_numbers<[1], [0], [0], [1], [0, 0, 1, 1], [], []>} : vector<8x128xf32>, vector<128x128xf32>, vector<8x128xf32> -> vector<8x128xf32>
    %c3208_120 = arith.constant 3208 : index
    %c0_121 = arith.constant 0 : index
    %247 = vector.load %arg2[%c3208_120, %c0_121] : memref<3480x128xf32, #tpu.memory_space<vmem>>, vector<128x128xf32>
    %cst_122 = arith.constant dense<0.000000e+00> : vector<8x128xf32>
    %248 = tpu.matmul %244, %247, %cst_122 {dimension_numbers = #tpu.dot_dimension_numbers<[1], [0], [0], [1], [0, 0, 1, 1], [], []>} : vector<8x128xf32>, vector<128x128xf32>, vector<8x128xf32> -> vector<8x128xf32>
    %249 = arith.maximumf %246, %248 : vector<8x128xf32>
    %c32_123 = arith.constant 32 : index
    %c0_124 = arith.constant 0 : index
    %250 = vector.load %arg2[%c32_123, %c0_124] : memref<3480x128xf32, #tpu.memory_space<vmem>>, vector<16x8xf32>
    %cst_125 = arith.constant dense<0.000000e+00> : vector<16x128xf32>
    %251 = tpu.matmul %250, %249, %cst_125 {dimension_numbers = #tpu.dot_dimension_numbers<[1], [0], [0], [1], [0, 0, 1, 1], [], []>} : vector<16x8xf32>, vector<8x128xf32>, vector<16x128xf32> -> vector<16x128xf32>
    %252 = vector.extract_strided_slice %251 {offsets = [0, 0], sizes = [8, 128], strides = [1, 1]} : vector<16x128xf32> to vector<8x128xf32>
    %253 = vector.extract_strided_slice %251 {offsets = [8, 0], sizes = [8, 128], strides = [1, 1]} : vector<16x128xf32> to vector<8x128xf32>
    %254 = tpu.concatenate %252, %249, %253 in 1 : vector<8x128xf32>, vector<8x128xf32>, vector<8x128xf32> -> vector<8x384xf32>
    %c1856_126 = arith.constant 1856 : index
    %c0_127 = arith.constant 0 : index
    %255 = vector.load %arg2[%c1856_126, %c0_127] : memref<3480x128xf32, #tpu.memory_space<vmem>>, vector<384x128xf32>
    %cst_128 = arith.constant dense<0.000000e+00> : vector<8x128xf32>
    %256 = tpu.matmul %254, %255, %cst_128 {dimension_numbers = #tpu.dot_dimension_numbers<[1], [0], [0], [1], [0, 0, 1, 1], [], []>} : vector<8x384xf32>, vector<384x128xf32>, vector<8x128xf32> -> vector<8x128xf32>
    %c2240_129 = arith.constant 2240 : index
    %c0_130 = arith.constant 0 : index
    %257 = vector.load %arg2[%c2240_129, %c0_130] : memref<3480x128xf32, #tpu.memory_space<vmem>>, vector<8x128xf32>
    %258 = arith.addf %256, %257 : vector<8x128xf32>
    %259 = vector.shape_cast %258 : vector<8x128xf32> to vector<1x8x128xf32>
    %cst_131 = arith.constant dense<0.000000e+00> : vector<1xf32>
    %260 = vector.multi_reduction <add>, %259, %cst_131 [1, 2] : vector<1x8x128xf32> to vector<1xf32>
    %261 = vector.shape_cast %260 : vector<1xf32> to vector<1x1x1xf32>
    %262 = vector.extract %261[0, 0, 0] : f32 from vector<1x1x1xf32>
    %cst_132 = arith.constant 1.024000e+03 : f32
    %263 = arith.divf %262, %cst_132 : f32
    %264 = arith.mulf %258, %258 : vector<8x128xf32>
    %265 = vector.shape_cast %264 : vector<8x128xf32> to vector<1x8x128xf32>
    %cst_133 = arith.constant dense<0.000000e+00> : vector<1xf32>
    %266 = vector.multi_reduction <add>, %265, %cst_133 [1, 2] : vector<1x8x128xf32> to vector<1xf32>
    %267 = vector.shape_cast %266 : vector<1xf32> to vector<1x1x1xf32>
    %268 = vector.extract %267[0, 0, 0] : f32 from vector<1x1x1xf32>
    %cst_134 = arith.constant 1.024000e+03 : f32
    %269 = arith.divf %268, %cst_134 : f32
    %270 = arith.mulf %263, %263 : f32
    %271 = arith.subf %269, %270 : f32
    %272 = vector.broadcast %263 : f32 to vector<8x128xf32>
    %273 = arith.subf %258, %272 : vector<8x128xf32>
    %cst_135 = arith.constant 9.99999974E-6 : f32
    %274 = arith.addf %271, %cst_135 : f32
    %275 = math.rsqrt %274 : f32
    %276 = vector.broadcast %275 : f32 to vector<8x128xf32>
    %277 = arith.mulf %273, %276 : vector<8x128xf32>
    %c2248_136 = arith.constant 2248 : index
    %c0_137 = arith.constant 0 : index
    %278 = vector.load %arg2[%c2248_136, %c0_137] : memref<3480x128xf32, #tpu.memory_space<vmem>>, vector<8x128xf32>
    %279 = arith.mulf %277, %278 : vector<8x128xf32>
    %c2256_138 = arith.constant 2256 : index
    %c0_139 = arith.constant 0 : index
    %280 = vector.load %arg2[%c2256_138, %c0_139] : memref<3480x128xf32, #tpu.memory_space<vmem>>, vector<8x128xf32>
    %281 = arith.addf %279, %280 : vector<8x128xf32>
    %cst_140 = arith.constant 0.000000e+00 : f32
    %282 = vector.broadcast %cst_140 : f32 to vector<8x128xf32>
    %283 = arith.maximumf %281, %282 : vector<8x128xf32>
    %c32_141 = arith.constant 32 : index
    %c0_142 = arith.constant 0 : index
    %284 = vector.load %arg2[%c32_141, %c0_142] : memref<3480x128xf32, #tpu.memory_space<vmem>>, vector<16x8xf32>
    %cst_143 = arith.constant dense<0.000000e+00> : vector<16x128xf32>
    %285 = tpu.matmul %284, %283, %cst_143 {dimension_numbers = #tpu.dot_dimension_numbers<[1], [0], [0], [1], [0, 0, 1, 1], [], []>} : vector<16x8xf32>, vector<8x128xf32>, vector<16x128xf32> -> vector<16x128xf32>
    %286 = vector.extract_strided_slice %285 {offsets = [0, 0], sizes = [8, 128], strides = [1, 1]} : vector<16x128xf32> to vector<8x128xf32>
    %287 = vector.extract_strided_slice %285 {offsets = [8, 0], sizes = [8, 128], strides = [1, 1]} : vector<16x128xf32> to vector<8x128xf32>
    %288 = tpu.concatenate %286, %283, %287 in 1 : vector<8x128xf32>, vector<8x128xf32>, vector<8x128xf32> -> vector<8x384xf32>
    %c2264_144 = arith.constant 2264 : index
    %c0_145 = arith.constant 0 : index
    %289 = vector.load %arg2[%c2264_144, %c0_145] : memref<3480x128xf32, #tpu.memory_space<vmem>>, vector<384x128xf32>
    %cst_146 = arith.constant dense<0.000000e+00> : vector<8x128xf32>
    %290 = tpu.matmul %288, %289, %cst_146 {dimension_numbers = #tpu.dot_dimension_numbers<[1], [0], [0], [1], [0, 0, 1, 1], [], []>} : vector<8x384xf32>, vector<384x128xf32>, vector<8x128xf32> -> vector<8x128xf32>
    %c2648_147 = arith.constant 2648 : index
    %c0_148 = arith.constant 0 : index
    %291 = vector.load %arg2[%c2648_147, %c0_148] : memref<3480x128xf32, #tpu.memory_space<vmem>>, vector<8x128xf32>
    %292 = arith.addf %290, %291 : vector<8x128xf32>
    %c32_149 = arith.constant 32 : index
    %c0_150 = arith.constant 0 : index
    %293 = vector.load %arg2[%c32_149, %c0_150] : memref<3480x128xf32, #tpu.memory_space<vmem>>, vector<16x8xf32>
    %cst_151 = arith.constant dense<0.000000e+00> : vector<16x128xf32>
    %294 = tpu.matmul %293, %147, %cst_151 {dimension_numbers = #tpu.dot_dimension_numbers<[1], [0], [0], [1], [0, 0, 1, 1], [], []>} : vector<16x8xf32>, vector<8x128xf32>, vector<16x128xf32> -> vector<16x128xf32>
    %295 = vector.extract_strided_slice %294 {offsets = [0, 0], sizes = [8, 128], strides = [1, 1]} : vector<16x128xf32> to vector<8x128xf32>
    %296 = vector.extract_strided_slice %294 {offsets = [8, 0], sizes = [8, 128], strides = [1, 1]} : vector<16x128xf32> to vector<8x128xf32>
    %297 = tpu.concatenate %295, %147, %296 in 1 : vector<8x128xf32>, vector<8x128xf32>, vector<8x128xf32> -> vector<8x384xf32>
    %c2672 = arith.constant 2672 : index
    %c0_152 = arith.constant 0 : index
    %298 = vector.load %arg2[%c2672, %c0_152] : memref<3480x128xf32, #tpu.memory_space<vmem>>, vector<384x128xf32>
    %cst_153 = arith.constant dense<0.000000e+00> : vector<8x128xf32>
    %299 = tpu.matmul %297, %298, %cst_153 {dimension_numbers = #tpu.dot_dimension_numbers<[1], [0], [0], [1], [0, 0, 1, 1], [], []>} : vector<8x384xf32>, vector<384x128xf32>, vector<8x128xf32> -> vector<8x128xf32>
    %c3056 = arith.constant 3056 : index
    %c0_154 = arith.constant 0 : index
    %300 = vector.load %arg2[%c3056, %c0_154] : memref<3480x128xf32, #tpu.memory_space<vmem>>, vector<8x128xf32>
    %301 = arith.addf %299, %300 : vector<8x128xf32>
    %302 = arith.addf %292, %301 : vector<8x128xf32>
    %303 = vector.shape_cast %302 : vector<8x128xf32> to vector<1x8x128xf32>
    %cst_155 = arith.constant dense<0.000000e+00> : vector<1xf32>
    %304 = vector.multi_reduction <add>, %303, %cst_155 [1, 2] : vector<1x8x128xf32> to vector<1xf32>
    %305 = vector.shape_cast %304 : vector<1xf32> to vector<1x1x1xf32>
    %306 = vector.extract %305[0, 0, 0] : f32 from vector<1x1x1xf32>
    %cst_156 = arith.constant 1.024000e+03 : f32
    %307 = arith.divf %306, %cst_156 : f32
    %308 = arith.mulf %302, %302 : vector<8x128xf32>
    %309 = vector.shape_cast %308 : vector<8x128xf32> to vector<1x8x128xf32>
    %cst_157 = arith.constant dense<0.000000e+00> : vector<1xf32>
    %310 = vector.multi_reduction <add>, %309, %cst_157 [1, 2] : vector<1x8x128xf32> to vector<1xf32>
    %311 = vector.shape_cast %310 : vector<1xf32> to vector<1x1x1xf32>
    %312 = vector.extract %311[0, 0, 0] : f32 from vector<1x1x1xf32>
    %cst_158 = arith.constant 1.024000e+03 : f32
    %313 = arith.divf %312, %cst_158 : f32
    %314 = arith.mulf %307, %307 : f32
    %315 = arith.subf %313, %314 : f32
    %316 = vector.broadcast %307 : f32 to vector<8x128xf32>
    %317 = arith.subf %302, %316 : vector<8x128xf32>
    %cst_159 = arith.constant 9.99999974E-6 : f32
    %318 = arith.addf %315, %cst_159 : f32
    %319 = math.rsqrt %318 : f32
    %320 = vector.broadcast %319 : f32 to vector<8x128xf32>
    %321 = arith.mulf %317, %320 : vector<8x128xf32>
    %c2656_160 = arith.constant 2656 : index
    %c0_161 = arith.constant 0 : index
    %322 = vector.load %arg2[%c2656_160, %c0_161] : memref<3480x128xf32, #tpu.memory_space<vmem>>, vector<8x128xf32>
    %323 = arith.mulf %321, %322 : vector<8x128xf32>
    %c2664_162 = arith.constant 2664 : index
    %c0_163 = arith.constant 0 : index
    %324 = vector.load %arg2[%c2664_162, %c0_163] : memref<3480x128xf32, #tpu.memory_space<vmem>>, vector<8x128xf32>
    %325 = arith.addf %323, %324 : vector<8x128xf32>
    %cst_164 = arith.constant 0.000000e+00 : f32
    %326 = vector.broadcast %cst_164 : f32 to vector<8x128xf32>
    %327 = arith.maximumf %325, %326 : vector<8x128xf32>
    %c0_165 = arith.constant 0 : index
    %c0_166 = arith.constant 0 : index
    %328 = vector.load %arg2[%c0_165, %c0_166] : memref<3480x128xf32, #tpu.memory_space<vmem>>, vector<32x16xf32>
    %cst_167 = arith.constant dense<0.000000e+00> : vector<32x128xf32>
    %329 = tpu.matmul %328, %1, %cst_167 {dimension_numbers = #tpu.dot_dimension_numbers<[1], [0], [0], [1], [0, 0, 1, 1], [], []>} : vector<32x16xf32>, vector<16x128xf32>, vector<32x128xf32> -> vector<32x128xf32>
    %330 = vector.extract_strided_slice %329 {offsets = [0, 0], sizes = [16, 128], strides = [1, 1]} : vector<32x128xf32> to vector<16x128xf32>
    %331 = vector.extract_strided_slice %329 {offsets = [16, 0], sizes = [16, 128], strides = [1, 1]} : vector<32x128xf32> to vector<16x128xf32>
    %332 = tpu.concatenate %330, %1, %331 in 1 : vector<16x128xf32>, vector<16x128xf32>, vector<16x128xf32> -> vector<16x384xf32>
    %c64_168 = arith.constant 64 : index
    %c0_169 = arith.constant 0 : index
    %333 = vector.load %arg2[%c64_168, %c0_169] : memref<3480x128xf32, #tpu.memory_space<vmem>>, vector<384x128xf32>
    %cst_170 = arith.constant dense<0.000000e+00> : vector<16x128xf32>
    %334 = tpu.matmul %332, %333, %cst_170 {dimension_numbers = #tpu.dot_dimension_numbers<[1], [0], [0], [1], [0, 0, 1, 1], [], []>} : vector<16x384xf32>, vector<384x128xf32>, vector<16x128xf32> -> vector<16x128xf32>
    %c448_171 = arith.constant 448 : index
    %c0_172 = arith.constant 0 : index
    %335 = vector.load %arg2[%c448_171, %c0_172] : memref<3480x128xf32, #tpu.memory_space<vmem>>, vector<16x128xf32>
    %336 = arith.addf %334, %335 : vector<16x128xf32>
    %337 = vector.shape_cast %336 : vector<16x128xf32> to vector<1x16x128xf32>
    %cst_173 = arith.constant dense<0.000000e+00> : vector<1xf32>
    %338 = vector.multi_reduction <add>, %337, %cst_173 [1, 2] : vector<1x16x128xf32> to vector<1xf32>
    %339 = vector.shape_cast %338 : vector<1xf32> to vector<1x1x1xf32>
    %340 = vector.extract %339[0, 0, 0] : f32 from vector<1x1x1xf32>
    %cst_174 = arith.constant 2.048000e+03 : f32
    %341 = arith.divf %340, %cst_174 : f32
    %342 = arith.mulf %336, %336 : vector<16x128xf32>
    %343 = vector.shape_cast %342 : vector<16x128xf32> to vector<1x16x128xf32>
    %cst_175 = arith.constant dense<0.000000e+00> : vector<1xf32>
    %344 = vector.multi_reduction <add>, %343, %cst_175 [1, 2] : vector<1x16x128xf32> to vector<1xf32>
    %345 = vector.shape_cast %344 : vector<1xf32> to vector<1x1x1xf32>
    %346 = vector.extract %345[0, 0, 0] : f32 from vector<1x1x1xf32>
    %cst_176 = arith.constant 2.048000e+03 : f32
    %347 = arith.divf %346, %cst_176 : f32
    %348 = arith.mulf %341, %341 : f32
    %349 = arith.subf %347, %348 : f32
    %350 = vector.broadcast %341 : f32 to vector<16x128xf32>
    %351 = arith.subf %336, %350 : vector<16x128xf32>
    %cst_177 = arith.constant 9.99999974E-6 : f32
    %352 = arith.addf %349, %cst_177 : f32
    %353 = math.rsqrt %352 : f32
    %354 = vector.broadcast %353 : f32 to vector<16x128xf32>
    %355 = arith.mulf %351, %354 : vector<16x128xf32>
    %c464_178 = arith.constant 464 : index
    %c0_179 = arith.constant 0 : index
    %356 = vector.load %arg2[%c464_178, %c0_179] : memref<3480x128xf32, #tpu.memory_space<vmem>>, vector<16x128xf32>
    %357 = arith.mulf %355, %356 : vector<16x128xf32>
    %c480_180 = arith.constant 480 : index
    %c0_181 = arith.constant 0 : index
    %358 = vector.load %arg2[%c480_180, %c0_181] : memref<3480x128xf32, #tpu.memory_space<vmem>>, vector<16x128xf32>
    %359 = arith.addf %357, %358 : vector<16x128xf32>
    %cst_182 = arith.constant 0.000000e+00 : f32
    %360 = vector.broadcast %cst_182 : f32 to vector<16x128xf32>
    %361 = arith.maximumf %359, %360 : vector<16x128xf32>
    %c0_183 = arith.constant 0 : index
    %c0_184 = arith.constant 0 : index
    %362 = vector.load %arg2[%c0_183, %c0_184] : memref<3480x128xf32, #tpu.memory_space<vmem>>, vector<32x16xf32>
    %cst_185 = arith.constant dense<0.000000e+00> : vector<32x128xf32>
    %363 = tpu.matmul %362, %361, %cst_185 {dimension_numbers = #tpu.dot_dimension_numbers<[1], [0], [0], [1], [0, 0, 1, 1], [], []>} : vector<32x16xf32>, vector<16x128xf32>, vector<32x128xf32> -> vector<32x128xf32>
    %364 = vector.extract_strided_slice %363 {offsets = [0, 0], sizes = [16, 128], strides = [1, 1]} : vector<32x128xf32> to vector<16x128xf32>
    %365 = vector.extract_strided_slice %363 {offsets = [16, 0], sizes = [16, 128], strides = [1, 1]} : vector<32x128xf32> to vector<16x128xf32>
    %366 = tpu.concatenate %364, %361, %365 in 1 : vector<16x128xf32>, vector<16x128xf32>, vector<16x128xf32> -> vector<16x384xf32>
    %c496_186 = arith.constant 496 : index
    %c0_187 = arith.constant 0 : index
    %367 = vector.load %arg2[%c496_186, %c0_187] : memref<3480x128xf32, #tpu.memory_space<vmem>>, vector<384x128xf32>
    %cst_188 = arith.constant dense<0.000000e+00> : vector<16x128xf32>
    %368 = tpu.matmul %366, %367, %cst_188 {dimension_numbers = #tpu.dot_dimension_numbers<[1], [0], [0], [1], [0, 0, 1, 1], [], []>} : vector<16x384xf32>, vector<384x128xf32>, vector<16x128xf32> -> vector<16x128xf32>
    %c880_189 = arith.constant 880 : index
    %c0_190 = arith.constant 0 : index
    %369 = vector.load %arg2[%c880_189, %c0_190] : memref<3480x128xf32, #tpu.memory_space<vmem>>, vector<16x128xf32>
    %370 = arith.addf %368, %369 : vector<16x128xf32>
    %c0_191 = arith.constant 0 : index
    %c0_192 = arith.constant 0 : index
    %371 = vector.load %arg2[%c0_191, %c0_192] : memref<3480x128xf32, #tpu.memory_space<vmem>>, vector<32x16xf32>
    %cst_193 = arith.constant dense<0.000000e+00> : vector<32x128xf32>
    %372 = tpu.matmul %371, %239, %cst_193 {dimension_numbers = #tpu.dot_dimension_numbers<[1], [0], [0], [1], [0, 0, 1, 1], [], []>} : vector<32x16xf32>, vector<16x128xf32>, vector<32x128xf32> -> vector<32x128xf32>
    %373 = vector.extract_strided_slice %372 {offsets = [0, 0], sizes = [16, 128], strides = [1, 1]} : vector<32x128xf32> to vector<16x128xf32>
    %374 = vector.extract_strided_slice %372 {offsets = [16, 0], sizes = [16, 128], strides = [1, 1]} : vector<32x128xf32> to vector<16x128xf32>
    %375 = tpu.concatenate %373, %239, %374 in 1 : vector<16x128xf32>, vector<16x128xf32>, vector<16x128xf32> -> vector<16x384xf32>
    %c928_194 = arith.constant 928 : index
    %c0_195 = arith.constant 0 : index
    %376 = vector.load %arg2[%c928_194, %c0_195] : memref<3480x128xf32, #tpu.memory_space<vmem>>, vector<384x128xf32>
    %cst_196 = arith.constant dense<0.000000e+00> : vector<16x128xf32>
    %377 = tpu.matmul %375, %376, %cst_196 {dimension_numbers = #tpu.dot_dimension_numbers<[1], [0], [0], [1], [0, 0, 1, 1], [], []>} : vector<16x384xf32>, vector<384x128xf32>, vector<16x128xf32> -> vector<16x128xf32>
    %c1312_197 = arith.constant 1312 : index
    %c0_198 = arith.constant 0 : index
    %378 = vector.load %arg2[%c1312_197, %c0_198] : memref<3480x128xf32, #tpu.memory_space<vmem>>, vector<16x128xf32>
    %379 = arith.addf %377, %378 : vector<16x128xf32>
    %c32_199 = arith.constant 32 : index
    %c0_200 = arith.constant 0 : index
    %380 = vector.load %arg2[%c32_199, %c0_200] : memref<3480x128xf32, #tpu.memory_space<vmem>>, vector<16x8xf32>
    %cst_201 = arith.constant dense<0.000000e+00> : vector<16x128xf32>
    %381 = tpu.matmul %380, %327, %cst_201 {dimension_numbers = #tpu.dot_dimension_numbers<[1], [0], [0], [1], [0, 0, 1, 1], [], []>} : vector<16x8xf32>, vector<8x128xf32>, vector<16x128xf32> -> vector<16x128xf32>
    %382 = vector.extract_strided_slice %381 {offsets = [8, 0], sizes = [8, 128], strides = [1, 1]} : vector<16x128xf32> to vector<8x128xf32>
    %383 = tpu.concatenate %327, %382 in 1 : vector<8x128xf32>, vector<8x128xf32> -> vector<8x256xf32>
    %c1328_202 = arith.constant 1328 : index
    %c0_203 = arith.constant 0 : index
    %384 = vector.load %arg2[%c1328_202, %c0_203] : memref<3480x128xf32, #tpu.memory_space<vmem>>, vector<256x128xf32>
    %cst_204 = arith.constant dense<0.000000e+00> : vector<8x128xf32>
    %385 = tpu.matmul %383, %384, %cst_204 {dimension_numbers = #tpu.dot_dimension_numbers<[1], [0], [0], [1], [0, 0, 1, 1], [], []>} : vector<8x256xf32>, vector<256x128xf32>, vector<8x128xf32> -> vector<8x128xf32>
    %c1584_205 = arith.constant 1584 : index
    %c0_206 = arith.constant 0 : index
    %386 = vector.load %arg2[%c1584_205, %c0_206] : memref<3480x128xf32, #tpu.memory_space<vmem>>, vector<256x128xf32>
    %cst_207 = arith.constant dense<0.000000e+00> : vector<8x128xf32>
    %387 = tpu.matmul %383, %386, %cst_207 {dimension_numbers = #tpu.dot_dimension_numbers<[1], [0], [0], [1], [0, 0, 1, 1], [], []>} : vector<8x256xf32>, vector<256x128xf32>, vector<8x128xf32> -> vector<8x128xf32>
    %388 = tpu.concatenate %385, %387 in 0 : vector<8x128xf32>, vector<8x128xf32> -> vector<16x128xf32>
    %c48_208 = arith.constant 48 : index
    %c0_209 = arith.constant 0 : index
    %389 = vector.load %arg2[%c48_208, %c0_209] : memref<3480x128xf32, #tpu.memory_space<vmem>>, vector<16x16xf32>
    %cst_210 = arith.constant dense<0.000000e+00> : vector<16x128xf32>
    %390 = tpu.matmul %389, %388, %cst_210 {dimension_numbers = #tpu.dot_dimension_numbers<[1], [0], [0], [1], [0, 0, 1, 1], [], []>} : vector<16x16xf32>, vector<16x128xf32>, vector<16x128xf32> -> vector<16x128xf32>
    %c1840_211 = arith.constant 1840 : index
    %c0_212 = arith.constant 0 : index
    %391 = vector.load %arg2[%c1840_211, %c0_212] : memref<3480x128xf32, #tpu.memory_space<vmem>>, vector<16x128xf32>
    %392 = arith.addf %390, %391 : vector<16x128xf32>
    %393 = arith.addf %379, %392 : vector<16x128xf32>
    %394 = arith.addf %370, %393 : vector<16x128xf32>
    %395 = vector.shape_cast %394 : vector<16x128xf32> to vector<1x16x128xf32>
    %cst_213 = arith.constant dense<0.000000e+00> : vector<1xf32>
    %396 = vector.multi_reduction <add>, %395, %cst_213 [1, 2] : vector<1x16x128xf32> to vector<1xf32>
    %397 = vector.shape_cast %396 : vector<1xf32> to vector<1x1x1xf32>
    %398 = vector.extract %397[0, 0, 0] : f32 from vector<1x1x1xf32>
    %cst_214 = arith.constant 2.048000e+03 : f32
    %399 = arith.divf %398, %cst_214 : f32
    %400 = arith.mulf %394, %394 : vector<16x128xf32>
    %401 = vector.shape_cast %400 : vector<16x128xf32> to vector<1x16x128xf32>
    %cst_215 = arith.constant dense<0.000000e+00> : vector<1xf32>
    %402 = vector.multi_reduction <add>, %401, %cst_215 [1, 2] : vector<1x16x128xf32> to vector<1xf32>
    %403 = vector.shape_cast %402 : vector<1xf32> to vector<1x1x1xf32>
    %404 = vector.extract %403[0, 0, 0] : f32 from vector<1x1x1xf32>
    %cst_216 = arith.constant 2.048000e+03 : f32
    %405 = arith.divf %404, %cst_216 : f32
    %406 = arith.mulf %399, %399 : f32
    %407 = arith.subf %405, %406 : f32
    %408 = vector.broadcast %399 : f32 to vector<16x128xf32>
    %409 = arith.subf %394, %408 : vector<16x128xf32>
    %cst_217 = arith.constant 9.99999974E-6 : f32
    %410 = arith.addf %407, %cst_217 : f32
    %411 = math.rsqrt %410 : f32
    %412 = vector.broadcast %411 : f32 to vector<16x128xf32>
    %413 = arith.mulf %409, %412 : vector<16x128xf32>
    %c896_218 = arith.constant 896 : index
    %c0_219 = arith.constant 0 : index
    %414 = vector.load %arg2[%c896_218, %c0_219] : memref<3480x128xf32, #tpu.memory_space<vmem>>, vector<16x128xf32>
    %415 = arith.mulf %413, %414 : vector<16x128xf32>
    %c912_220 = arith.constant 912 : index
    %c0_221 = arith.constant 0 : index
    %416 = vector.load %arg2[%c912_220, %c0_221] : memref<3480x128xf32, #tpu.memory_space<vmem>>, vector<16x128xf32>
    %417 = arith.addf %415, %416 : vector<16x128xf32>
    %cst_222 = arith.constant 0.000000e+00 : f32
    %418 = vector.broadcast %cst_222 : f32 to vector<16x128xf32>
    %419 = arith.maximumf %417, %418 : vector<16x128xf32>
    %c3064_223 = arith.constant 3064 : index
    %c0_224 = arith.constant 0 : index
    %420 = vector.load %arg2[%c3064_223, %c0_224] : memref<3480x128xf32, #tpu.memory_space<vmem>>, vector<16x16xf32>
    %cst_225 = arith.constant dense<0.000000e+00> : vector<16x128xf32>
    %421 = tpu.matmul %420, %419, %cst_225 {dimension_numbers = #tpu.dot_dimension_numbers<[1], [0], [0], [1], [0, 0, 1, 1], [], []>} : vector<16x16xf32>, vector<16x128xf32>, vector<16x128xf32> -> vector<16x128xf32>
    %422 = vector.extract_strided_slice %421 {offsets = [0, 0], sizes = [8, 128], strides = [1, 1]} : vector<16x128xf32> to vector<8x128xf32>
    %423 = vector.extract_strided_slice %421 {offsets = [8, 0], sizes = [8, 128], strides = [1, 1]} : vector<16x128xf32> to vector<8x128xf32>
    %424 = arith.maximumf %422, %423 : vector<8x128xf32>
    %c3080_226 = arith.constant 3080 : index
    %c0_227 = arith.constant 0 : index
    %425 = vector.load %arg2[%c3080_226, %c0_227] : memref<3480x128xf32, #tpu.memory_space<vmem>>, vector<128x128xf32>
    %cst_228 = arith.constant dense<0.000000e+00> : vector<8x128xf32>
    %426 = tpu.matmul %424, %425, %cst_228 {dimension_numbers = #tpu.dot_dimension_numbers<[1], [0], [0], [1], [0, 0, 1, 1], [], []>} : vector<8x128xf32>, vector<128x128xf32>, vector<8x128xf32> -> vector<8x128xf32>
    %c3208_229 = arith.constant 3208 : index
    %c0_230 = arith.constant 0 : index
    %427 = vector.load %arg2[%c3208_229, %c0_230] : memref<3480x128xf32, #tpu.memory_space<vmem>>, vector<128x128xf32>
    %cst_231 = arith.constant dense<0.000000e+00> : vector<8x128xf32>
    %428 = tpu.matmul %424, %427, %cst_231 {dimension_numbers = #tpu.dot_dimension_numbers<[1], [0], [0], [1], [0, 0, 1, 1], [], []>} : vector<8x128xf32>, vector<128x128xf32>, vector<8x128xf32> -> vector<8x128xf32>
    %429 = arith.maximumf %426, %428 : vector<8x128xf32>
    %c32_232 = arith.constant 32 : index
    %c0_233 = arith.constant 0 : index
    %430 = vector.load %arg2[%c32_232, %c0_233] : memref<3480x128xf32, #tpu.memory_space<vmem>>, vector<16x8xf32>
    %cst_234 = arith.constant dense<0.000000e+00> : vector<16x128xf32>
    %431 = tpu.matmul %430, %429, %cst_234 {dimension_numbers = #tpu.dot_dimension_numbers<[1], [0], [0], [1], [0, 0, 1, 1], [], []>} : vector<16x8xf32>, vector<8x128xf32>, vector<16x128xf32> -> vector<16x128xf32>
    %432 = vector.extract_strided_slice %431 {offsets = [0, 0], sizes = [8, 128], strides = [1, 1]} : vector<16x128xf32> to vector<8x128xf32>
    %433 = vector.extract_strided_slice %431 {offsets = [8, 0], sizes = [8, 128], strides = [1, 1]} : vector<16x128xf32> to vector<8x128xf32>
    %434 = tpu.concatenate %432, %429, %433 in 1 : vector<8x128xf32>, vector<8x128xf32>, vector<8x128xf32> -> vector<8x384xf32>
    %c1856_235 = arith.constant 1856 : index
    %c0_236 = arith.constant 0 : index
    %435 = vector.load %arg2[%c1856_235, %c0_236] : memref<3480x128xf32, #tpu.memory_space<vmem>>, vector<384x128xf32>
    %cst_237 = arith.constant dense<0.000000e+00> : vector<8x128xf32>
    %436 = tpu.matmul %434, %435, %cst_237 {dimension_numbers = #tpu.dot_dimension_numbers<[1], [0], [0], [1], [0, 0, 1, 1], [], []>} : vector<8x384xf32>, vector<384x128xf32>, vector<8x128xf32> -> vector<8x128xf32>
    %c2240_238 = arith.constant 2240 : index
    %c0_239 = arith.constant 0 : index
    %437 = vector.load %arg2[%c2240_238, %c0_239] : memref<3480x128xf32, #tpu.memory_space<vmem>>, vector<8x128xf32>
    %438 = arith.addf %436, %437 : vector<8x128xf32>
    %439 = vector.shape_cast %438 : vector<8x128xf32> to vector<1x8x128xf32>
    %cst_240 = arith.constant dense<0.000000e+00> : vector<1xf32>
    %440 = vector.multi_reduction <add>, %439, %cst_240 [1, 2] : vector<1x8x128xf32> to vector<1xf32>
    %441 = vector.shape_cast %440 : vector<1xf32> to vector<1x1x1xf32>
    %442 = vector.extract %441[0, 0, 0] : f32 from vector<1x1x1xf32>
    %cst_241 = arith.constant 1.024000e+03 : f32
    %443 = arith.divf %442, %cst_241 : f32
    %444 = arith.mulf %438, %438 : vector<8x128xf32>
    %445 = vector.shape_cast %444 : vector<8x128xf32> to vector<1x8x128xf32>
    %cst_242 = arith.constant dense<0.000000e+00> : vector<1xf32>
    %446 = vector.multi_reduction <add>, %445, %cst_242 [1, 2] : vector<1x8x128xf32> to vector<1xf32>
    %447 = vector.shape_cast %446 : vector<1xf32> to vector<1x1x1xf32>
    %448 = vector.extract %447[0, 0, 0] : f32 from vector<1x1x1xf32>
    %cst_243 = arith.constant 1.024000e+03 : f32
    %449 = arith.divf %448, %cst_243 : f32
    %450 = arith.mulf %443, %443 : f32
    %451 = arith.subf %449, %450 : f32
    %452 = vector.broadcast %443 : f32 to vector<8x128xf32>
    %453 = arith.subf %438, %452 : vector<8x128xf32>
    %cst_244 = arith.constant 9.99999974E-6 : f32
    %454 = arith.addf %451, %cst_244 : f32
    %455 = math.rsqrt %454 : f32
    %456 = vector.broadcast %455 : f32 to vector<8x128xf32>
    %457 = arith.mulf %453, %456 : vector<8x128xf32>
    %c2248_245 = arith.constant 2248 : index
    %c0_246 = arith.constant 0 : index
    %458 = vector.load %arg2[%c2248_245, %c0_246] : memref<3480x128xf32, #tpu.memory_space<vmem>>, vector<8x128xf32>
    %459 = arith.mulf %457, %458 : vector<8x128xf32>
    %c2256_247 = arith.constant 2256 : index
    %c0_248 = arith.constant 0 : index
    %460 = vector.load %arg2[%c2256_247, %c0_248] : memref<3480x128xf32, #tpu.memory_space<vmem>>, vector<8x128xf32>
    %461 = arith.addf %459, %460 : vector<8x128xf32>
    %cst_249 = arith.constant 0.000000e+00 : f32
    %462 = vector.broadcast %cst_249 : f32 to vector<8x128xf32>
    %463 = arith.maximumf %461, %462 : vector<8x128xf32>
    %c32_250 = arith.constant 32 : index
    %c0_251 = arith.constant 0 : index
    %464 = vector.load %arg2[%c32_250, %c0_251] : memref<3480x128xf32, #tpu.memory_space<vmem>>, vector<16x8xf32>
    %cst_252 = arith.constant dense<0.000000e+00> : vector<16x128xf32>
    %465 = tpu.matmul %464, %463, %cst_252 {dimension_numbers = #tpu.dot_dimension_numbers<[1], [0], [0], [1], [0, 0, 1, 1], [], []>} : vector<16x8xf32>, vector<8x128xf32>, vector<16x128xf32> -> vector<16x128xf32>
    %466 = vector.extract_strided_slice %465 {offsets = [0, 0], sizes = [8, 128], strides = [1, 1]} : vector<16x128xf32> to vector<8x128xf32>
    %467 = vector.extract_strided_slice %465 {offsets = [8, 0], sizes = [8, 128], strides = [1, 1]} : vector<16x128xf32> to vector<8x128xf32>
    %468 = tpu.concatenate %466, %463, %467 in 1 : vector<8x128xf32>, vector<8x128xf32>, vector<8x128xf32> -> vector<8x384xf32>
    %c2264_253 = arith.constant 2264 : index
    %c0_254 = arith.constant 0 : index
    %469 = vector.load %arg2[%c2264_253, %c0_254] : memref<3480x128xf32, #tpu.memory_space<vmem>>, vector<384x128xf32>
    %cst_255 = arith.constant dense<0.000000e+00> : vector<8x128xf32>
    %470 = tpu.matmul %468, %469, %cst_255 {dimension_numbers = #tpu.dot_dimension_numbers<[1], [0], [0], [1], [0, 0, 1, 1], [], []>} : vector<8x384xf32>, vector<384x128xf32>, vector<8x128xf32> -> vector<8x128xf32>
    %c2648_256 = arith.constant 2648 : index
    %c0_257 = arith.constant 0 : index
    %471 = vector.load %arg2[%c2648_256, %c0_257] : memref<3480x128xf32, #tpu.memory_space<vmem>>, vector<8x128xf32>
    %472 = arith.addf %470, %471 : vector<8x128xf32>
    %c32_258 = arith.constant 32 : index
    %c0_259 = arith.constant 0 : index
    %473 = vector.load %arg2[%c32_258, %c0_259] : memref<3480x128xf32, #tpu.memory_space<vmem>>, vector<16x8xf32>
    %cst_260 = arith.constant dense<0.000000e+00> : vector<16x128xf32>
    %474 = tpu.matmul %473, %327, %cst_260 {dimension_numbers = #tpu.dot_dimension_numbers<[1], [0], [0], [1], [0, 0, 1, 1], [], []>} : vector<16x8xf32>, vector<8x128xf32>, vector<16x128xf32> -> vector<16x128xf32>
    %475 = vector.extract_strided_slice %474 {offsets = [0, 0], sizes = [8, 128], strides = [1, 1]} : vector<16x128xf32> to vector<8x128xf32>
    %476 = vector.extract_strided_slice %474 {offsets = [8, 0], sizes = [8, 128], strides = [1, 1]} : vector<16x128xf32> to vector<8x128xf32>
    %477 = tpu.concatenate %475, %327, %476 in 1 : vector<8x128xf32>, vector<8x128xf32>, vector<8x128xf32> -> vector<8x384xf32>
    %c2672_261 = arith.constant 2672 : index
    %c0_262 = arith.constant 0 : index
    %478 = vector.load %arg2[%c2672_261, %c0_262] : memref<3480x128xf32, #tpu.memory_space<vmem>>, vector<384x128xf32>
    %cst_263 = arith.constant dense<0.000000e+00> : vector<8x128xf32>
    %479 = tpu.matmul %477, %478, %cst_263 {dimension_numbers = #tpu.dot_dimension_numbers<[1], [0], [0], [1], [0, 0, 1, 1], [], []>} : vector<8x384xf32>, vector<384x128xf32>, vector<8x128xf32> -> vector<8x128xf32>
    %c3056_264 = arith.constant 3056 : index
    %c0_265 = arith.constant 0 : index
    %480 = vector.load %arg2[%c3056_264, %c0_265] : memref<3480x128xf32, #tpu.memory_space<vmem>>, vector<8x128xf32>
    %481 = arith.addf %479, %480 : vector<8x128xf32>
    %482 = arith.addf %472, %481 : vector<8x128xf32>
    %483 = vector.shape_cast %482 : vector<8x128xf32> to vector<1x8x128xf32>
    %cst_266 = arith.constant dense<0.000000e+00> : vector<1xf32>
    %484 = vector.multi_reduction <add>, %483, %cst_266 [1, 2] : vector<1x8x128xf32> to vector<1xf32>
    %485 = vector.shape_cast %484 : vector<1xf32> to vector<1x1x1xf32>
    %486 = vector.extract %485[0, 0, 0] : f32 from vector<1x1x1xf32>
    %cst_267 = arith.constant 1.024000e+03 : f32
    %487 = arith.divf %486, %cst_267 : f32
    %488 = arith.mulf %482, %482 : vector<8x128xf32>
    %489 = vector.shape_cast %488 : vector<8x128xf32> to vector<1x8x128xf32>
    %cst_268 = arith.constant dense<0.000000e+00> : vector<1xf32>
    %490 = vector.multi_reduction <add>, %489, %cst_268 [1, 2] : vector<1x8x128xf32> to vector<1xf32>
    %491 = vector.shape_cast %490 : vector<1xf32> to vector<1x1x1xf32>
    %492 = vector.extract %491[0, 0, 0] : f32 from vector<1x1x1xf32>
    %cst_269 = arith.constant 1.024000e+03 : f32
    %493 = arith.divf %492, %cst_269 : f32
    %494 = arith.mulf %487, %487 : f32
    %495 = arith.subf %493, %494 : f32
    %496 = vector.broadcast %487 : f32 to vector<8x128xf32>
    %497 = arith.subf %482, %496 : vector<8x128xf32>
    %cst_270 = arith.constant 9.99999974E-6 : f32
    %498 = arith.addf %495, %cst_270 : f32
    %499 = math.rsqrt %498 : f32
    %500 = vector.broadcast %499 : f32 to vector<8x128xf32>
    %501 = arith.mulf %497, %500 : vector<8x128xf32>
    %c2656_271 = arith.constant 2656 : index
    %c0_272 = arith.constant 0 : index
    %502 = vector.load %arg2[%c2656_271, %c0_272] : memref<3480x128xf32, #tpu.memory_space<vmem>>, vector<8x128xf32>
    %503 = arith.mulf %501, %502 : vector<8x128xf32>
    %c2664_273 = arith.constant 2664 : index
    %c0_274 = arith.constant 0 : index
    %504 = vector.load %arg2[%c2664_273, %c0_274] : memref<3480x128xf32, #tpu.memory_space<vmem>>, vector<8x128xf32>
    %505 = arith.addf %503, %504 : vector<8x128xf32>
    %cst_275 = arith.constant 0.000000e+00 : f32
    %506 = vector.broadcast %cst_275 : f32 to vector<8x128xf32>
    %507 = arith.maximumf %505, %506 : vector<8x128xf32>
    %508 = tpu.concatenate %147, %327, %507 in 0 : vector<8x128xf32>, vector<8x128xf32>, vector<8x128xf32> -> vector<24x128xf32>
    %c3472 = arith.constant 3472 : index
    %c0_276 = arith.constant 0 : index
    %509 = vector.load %arg2[%c3472, %c0_276] : memref<3480x128xf32, #tpu.memory_space<vmem>>, vector<3x24xf32>
    %cst_277 = arith.constant dense<0.000000e+00> : vector<3x128xf32>
    %510 = tpu.matmul %509, %508, %cst_277 {dimension_numbers = #tpu.dot_dimension_numbers<[1], [0], [0], [1], [0, 0, 1, 1], [], []>} : vector<3x24xf32>, vector<24x128xf32>, vector<3x128xf32> -> vector<3x128xf32>
    %c3336 = arith.constant 3336 : index
    %c0_278 = arith.constant 0 : index
    %511 = vector.load %arg2[%c3336, %c0_278] : memref<3480x128xf32, #tpu.memory_space<vmem>>, vector<128x10xf32>
    %cst_279 = arith.constant dense<0.000000e+00> : vector<3x10xf32>
    %512 = tpu.matmul %510, %511, %cst_279 {dimension_numbers = #tpu.dot_dimension_numbers<[1], [0], [0], [1], [0, 0, 1, 1], [], []>} : vector<3x128xf32>, vector<128x10xf32>, vector<3x10xf32> -> vector<3x10xf32>
    %c3464 = arith.constant 3464 : index
    %c0_280 = arith.constant 0 : index
    %513 = vector.load %arg2[%c3464, %c0_280] : memref<3480x128xf32, #tpu.memory_space<vmem>>, vector<3x10xf32>
    %514 = arith.addf %512, %513 : vector<3x10xf32>
    %cst_281 = arith.constant dense<0xFF800000> : vector<3xf32>
    %515 = vector.multi_reduction <maximumf>, %514, %cst_281 [1] : vector<3x10xf32> to vector<3xf32>
    %516 = vector.shape_cast %515 : vector<3xf32> to vector<3x1xf32>
    %517 = vector.broadcast %516 : vector<3x1xf32> to vector<3x10xf32>
    %518 = arith.subf %514, %517 : vector<3x10xf32>
    %519 = math.exp %518 : vector<3x10xf32>
    %cst_282 = arith.constant dense<0.000000e+00> : vector<3xf32>
    %520 = vector.multi_reduction <add>, %519, %cst_282 [1] : vector<3x10xf32> to vector<3xf32>
    %521 = vector.shape_cast %520 : vector<3xf32> to vector<3x1xf32>
    %522 = math.log %521 : vector<3x1xf32>
    %523 = vector.broadcast %522 : vector<3x1xf32> to vector<3x10xf32>
    %524 = arith.subf %518, %523 : vector<3x10xf32>
    %cst_283 = arith.constant -23.0258503 : f32
    %525 = vector.broadcast %cst_283 : f32 to vector<3x10xf32>
    %526 = arith.maximumf %524, %525 : vector<3x10xf32>
    %c0_284 = arith.constant 0 : index
    %c0_285 = arith.constant 0 : index
    %c0_286 = arith.constant 0 : index
    %527 = vector.load %arg3[%c0_284, %c0_285, %c0_286] : memref<1x3x10xf32, #tpu.memory_space<vmem>>, vector<1x3x10xf32>
    %528 = vector.shape_cast %527 : vector<1x3x10xf32> to vector<3x10xf32>
    %529 = vector.shape_cast %526 : vector<3x10xf32> to vector<1x3x10xf32>
    tpu.vector_store %arg3[%c0_284, %c0_285, %c0_286], %529 {strides = array<i32>} : memref<1x3x10xf32, #tpu.memory_space<vmem>>, vector<1x3x10xf32>,
    return
  }
  func.func @transform_0(%arg0: i32) -> (i32, i32, i32) {
    %c0_i32 = arith.constant 0 : i32
    %c0_i32_0 = arith.constant 0 : i32
    %c0_i32_1 = arith.constant 0 : i32
    return %arg0, %c0_i32, %c0_i32_0 : i32, i32, i32
  }
  func.func @transform_1(%arg0: i32) -> (i32, i32) {
    %c0_i32 = arith.constant 0 : i32
    %c0_i32_0 = arith.constant 0 : i32
    %c0_i32_1 = arith.constant 0 : i32
    return %c0_i32, %c0_i32_0 : i32, i32
  }
  func.func @transform_2(%arg0: i32) -> (i32, i32, i32) {
    %c0_i32 = arith.constant 0 : i32
    %c0_i32_0 = arith.constant 0 : i32
    %c0_i32_1 = arith.constant 0 : i32
    return %arg0, %c0_i32, %c0_i32_0 : i32, i32, i32
  }
}

</mosaic_0001>

<bundles_post_ra>
// kernel: forward.1
= control target key start
LH: loop header
LB: loop body
LE: loop exit
PB: predicated region body
PF: predicated region fallthrough
CT: control target
= control target key end

     0   :  { %7 = vsyncpa [#allocation3], 0  ;;  %s7453_s9 = smov 0   ;;  %s7997_s0 = inlined_call_operand.vmem [shape: f32[2,16,128], index: 0, kind: input, shape index: {}]   ;;  %s7998_s1 = inlined_call_operand.hbm [shape: f32[3480,128], index: 1, kind: input, shape index: {}]   ;;  %s7999_s2 = inlined_call_operand.vmem [shape: f32[2,3,10], index: 2, kind: output, shape index: {}]  }
   0x1 LB: > { %s5013_s10 = sadd.s32 4294967295, %s7431_s9   ;;  %p5015_p0 = scmp.ge.s32.totalorder %s7431_s9, 1  ;;  %s7431_s9 = sphi %s7453_s9, %s13_s9  }
   0x2   : > { %p91_p1 = scmp.lt.s32.totalorder %s7431_s9, 3  ;;  %s7433_s11 = smov [#allocation2]  }
   0x3   : > { %s103_s12 = sshll.u32 %s7433_s11, 4  ;;  %p6897_p3 = scmp.eq.s32.totalorder %s5013_s10, 0  ;;  %s104_s12 = int_to_ptr.vmem [resolvable:$true] %s103_s12 }
   0x4   : > { %p7461_p2 = pnand %p5015_p0, %p91_p1  ;;  %s7406_s14 = scalar_lea.vmem %s104_s12, 55680 }
   0x5   : > { %p7407_p7 = scmp.ne.s32.totalorder %s104_s12, %s7406_s14  ;;  %p7414_p10 = scmp.lt.s32.totalorder %s104_s12, %s104_s12 }
   0x6   : > { %p6893_p4 = pneg %p7461_p2  ;;  %p7415_p11 = scmp.lt.s32.totalorder %s7406_s14, %s7406_s14 }
   0x8   : > { %p6894_p5 = pnand %p6897_p3, %p6893_p4  ;;  %p7416_p12 = por %p7415_p11, %p7414_p10 }
   0xa   : > { %p7397_p6 = pneg %p6894_p5 }
   0xc   : > { %p7409_p8 = pnand %p7407_p7, %p7397_p6 }
   0xe   : > { %p7410_p9 = pneg %p7409_p8 }
  0x10   : > { %p7417_p13 = pnand %p7416_p12, %p7410_p9 }
  0x12   : > { %7420 = shalt.err (!%p7417_p13)
}
  0x13   : > { %s7434_s15 = smov 128   ;;  %s7435_s16 = smov 8  }
  0x14   : > { %6896 = dma.hbm_to_vmem [thread:$0]  (!%p6894_p5), %s7998_s1, 55680, %s104_s12, [#allocation3], %s7434_s15, %s7434_s15, %s7435_s16  }
  0x15   : > { %127 = sbr.rel (%p7461_p2) target bundleno = 9231 (0x240f), region = 28 }
  0x1a   : > { %7426 = dma.done.wait (%p6897_p3), [#allocation3], 55680  }
  0x1b   : > { %7428 = vsyncadd (%p6897_p3), [#allocation3], 4294911616  ;;  %p148_p0 = scmp.lt.s32.totalorder %s5013_s10, 1  ;;  %vm163_vm0 = vcmask 130048   ;;  %v7483_v2 = vld [vmem:[#allocation2] sm:$0xff]  ;;  %v7488_v3 = vld [vmem:[#allocation2 + $0x8] sm:$0xff] }
  0x1c   : > { %6044 = vmatprep.mubr.msk.f32.mxu0 %vm163_vm0, %v7483_v2  ;;  %v292_v4 = vld [vmem:[#allocation2 + $0x138] sm:$0xff]  ;;  %v291_v6 = vld [vmem:[#allocation2 + $0x130] sm:$0xff]  ;;  %v290_v9 = vld [vmem:[#allocation2 + $0x128] sm:$0xff]  ;;  %vm7437_vm1 = vmmov 0   ;;  %vm1105_vm2 = vcmask 64512   ;;  %vm4772_vm3 = vcmask 195584  }
  0x1d   : > { %s8002_s10 = smov (!%p148_p0, %s5013_s10), 1  ;;  %v276_v5 = vld [vmem:[#allocation2 + $0xb8] sm:$0xff]  ;;  %v7491_v7 = vld [vmem:[#allocation2 + $0x10] sm:$0xff]  ;;  %5075 = vmatprep.subr.mxu1 %v292_v4  ;;  %v274_v11 = vld [vmem:[#allocation2 + $0xa8] sm:$0xff]  ;;  %vm4933_vm4 = vcmask 75776  }
  0x1e   : > { %s5068_s19 = sshll.u32 %s8002_s10, 4  ;;  %v275_v8 = vld [vmem:[#allocation2 + $0xb0] sm:$0xff]  ;;  %5076 = vmatpush3.msra.mxu1 %v276_v5  ;;  %v308_v10 = vld [vmem:[#allocation2 + $0x1b8] sm:$0xff]  ;;  %v289_v13 = vld [vmem:[#allocation2 + $0x120] sm:$0xff] }
  0x1f   : > { %s152_s22 = scalar_lea.vmem %s7997_s0, %s5068_s19  ;;  %5077 = vmatprep.subr.mxu1 %v291_v6  ;;  %v7497_v12 = vld [vmem:[#allocation2 + $0x18] sm:$0xff]  ;;  %v273_v14 = vld [vmem:[#allocation2 + $0xa0] sm:$0xff]  ;;  %v307_v15 = vld [vmem:[#allocation2 + $0x1b0] sm:$0xff] }
  0x20   : > { %v7481_v0 = vld [vmem:[%s152_s22 + $0x8] sm:$0xff]  ;;  %v157_v1 = vld [vmem:[%s152_s22] sm:$0xff]  ;;  %5078 = vmatpush3.msra.mxu1 %v275_v8  ;;  %v288_v16 = vld [vmem:[#allocation2 + $0x118] sm:$0xff] }
  0x21   : > { %6040 = vmatprep.subr.mxu0 %v7481_v0  ;;  %375 = vmatprep.mubr.f32.mxu1 %v157_v1  ;;  %v272_v17 = vld [vmem:[#allocation2 + $0x98] sm:$0xff]  ;;  %v306_v18 = vld [vmem:[#allocation2 + $0x1a8] sm:$0xff]  ;;  %v287_v19 = vld [vmem:[#allocation2 + $0x110] sm:$0xff] }
  0x22   : > { %6041 = vmatpush3.msra.mxu0 %v7481_v0  ;;  %5079 = vmatprep.subr.mxu1 %v290_v9  ;;  %v271_v20 = vld [vmem:[#allocation2 + $0x90] sm:$0xff]  ;;  %v305_v21 = vld [vmem:[#allocation2 + $0x1a0] sm:$0xff]  ;;  %v286_v22 = vld [vmem:[#allocation2 + $0x108] sm:$0xff] }
  0x23   : > { %6042 = vmatprep.subr.mxu0 %v157_v1  ;;  %5080 = vmatpush3.msra.mxu1 %v274_v11  ;;  %v270_v23 = vld [vmem:[#allocation2 + $0x88] sm:$0xff]  ;;  %v304_v24 = vld [vmem:[#allocation2 + $0x198] sm:$0xff]  ;;  %v285_v25 = vld [vmem:[#allocation2 + $0x100] sm:$0xff] }
  0x24   : > { %6043 = vmatpush3.msra.mxu0 %v157_v1  ;;  %5081 = vmatprep.subr.mxu1 %v289_v13  ;;  %v269_v26 = vld [vmem:[#allocation2 + $0x80] sm:$0xff]  ;;  %v303_v27 = vld [vmem:[#allocation2 + $0x190] sm:$0xff]  ;;  %v284_v28 = vld [vmem:[#allocation2 + $0xf8] sm:$0xff] }
  0x25   : > { %6045 = vmatmul.mubr.msk.f32.vlgmr.msra.gmra.mxu0 %vm163_vm0, %v7488_v3  ;;  %6050 = vmatprep.subr.mxu0 %v308_v10  ;;  %v268_v29 = vld [vmem:[#allocation2 + $0x78] sm:$0xff]  ;;  %v302_v30 = vld [vmem:[#allocation2 + $0x188] sm:$0xff]  ;;  %v283_v31 = vld [vmem:[#allocation2 + $0xf0] sm:$0xff] }
  0x26   : > { %6047 = vmatprep.mubr.msk.f32.mxu0 %vm163_vm0, %v7491_v7  ;;  %6051 = vmatpush3.msra.mxu0 %v308_v10  ;;  %v267_v32 = vld [vmem:[#allocation2 + $0x70] sm:$0xff]  ;;  %v301_v33 = vld [vmem:[#allocation2 + $0x180] sm:$0xff]  ;;  %v282_v34 = vld [vmem:[#allocation2 + $0xe8] sm:$0xff] }
  0x27   : > { %5082 = vmatpush3.msra.mxu1 %v273_v14  ;;  %6052 = vmatprep.subr.mxu0 %v307_v15  ;;  %v266_v35 = vld [vmem:[#allocation2 + $0x68] sm:$0xff]  ;;  %v300_v36 = vld [vmem:[#allocation2 + $0x178] sm:$0xff]  ;;  %v281_v37 = vld [vmem:[#allocation2 + $0xe0] sm:$0xff] }
  0x28   : > { %5083 = vmatprep.subr.mxu1 %v288_v16  ;;  %6053 = vmatpush3.msra.mxu0 %v307_v15  ;;  %v265_v38 = vld [vmem:[#allocation2 + $0x60] sm:$0xff]  ;;  %v299_v39 = vld [vmem:[#allocation2 + $0x170] sm:$0xff]  ;;  %v280_v40 = vld [vmem:[#allocation2 + $0xd8] sm:$0xff] }
  0x29   : > { %6048 = vmatmul.mubr.msk.f32.gmra.mxu0 %vm163_vm0, %v7497_v12  ;;  %5084 = vmatpush3.msra.mxu1 %v272_v17  ;;  %v264_v41 = vld [vmem:[#allocation2 + $0x58] sm:$0xff]  ;;  %v298_v42 = vld [vmem:[#allocation2 + $0x168] sm:$0xff]  ;;  %v279_v43 = vld [vmem:[#allocation2 + $0xd0] sm:$0xff] }
  0x2a   : > { %6054 = vmatprep.subr.mxu0 %v306_v18  ;;  %5085 = vmatprep.subr.mxu1 %v287_v19  ;;  %v263_v44 = vld [vmem:[#allocation2 + $0x50] sm:$0xff]  ;;  %v297_v45 = vld [vmem:[#allocation2 + $0x160] sm:$0xff]  ;;  %v278_v46 = vld [vmem:[#allocation2 + $0xc8] sm:$0xff] }
  0x2b   : > { %6055 = vmatpush3.msra.mxu0 %v306_v18  ;;  %5086 = vmatpush3.msra.mxu1 %v271_v20  ;;  %v262_v47 = vld [vmem:[#allocation2 + $0x48] sm:$0xff]  ;;  %v296_v48 = vld [vmem:[#allocation2 + $0x158] sm:$0xff]  ;;  %v277_v49 = vld [vmem:[#allocation2 + $0xc0] sm:$0xff] }
  0x2c   : > { %6056 = vmatprep.subr.mxu0 %v305_v21  ;;  %5087 = vmatprep.subr.mxu1 %v286_v22  ;;  %v261_v50 = vld [vmem:[#allocation2 + $0x40] sm:$0xff]  ;;  %v295_v51 = vld [vmem:[#allocation2 + $0x150] sm:$0xff]  ;;  %v294_v52 = vld [vmem:[#allocation2 + $0x148] sm:$0xff] }
  0x2d   : > { %6057 = vmatpush3.msra.mxu0 %v305_v21  ;;  %5088 = vmatpush3.msra.mxu1 %v270_v23  ;;  %v293_v53 = vld [vmem:[#allocation2 + $0x140] sm:$0xff]  ;;  %v310_v1 = vld [vmem:[#allocation2 + $0x1c8] sm:$0xff] }
  0x2e   : > { %6058 = vmatprep.subr.mxu0 %v304_v24  ;;  %5089 = vmatprep.subr.mxu1 %v285_v25  ;;  %v309_v62 = vld [vmem:[#allocation2 + $0x1c0] sm:$0xff] }
  0x2f   : > { %6059 = vmatpush3.msra.mxu0 %v304_v24  ;;  %5090 = vmatpush3.msra.mxu1 %v269_v26 }
  0x30   : > { %6060 = vmatprep.subr.mxu0 %v303_v27  ;;  %5091 = vmatprep.subr.mxu1 %v284_v28 }
  0x31   : > { %6061 = vmatpush3.msra.mxu0 %v303_v27  ;;  %5092 = vmatpush3.msra.mxu1 %v268_v29  ;;  %v627_v29 = vld [vmem:[#allocation2 + $0x2e8] sm:$0xff] }
  0x32   : > { %6062 = vmatprep.subr.mxu0 %v302_v30  ;;  %5093 = vmatprep.subr.mxu1 %v283_v31  ;;  %v626_v31 = vld [vmem:[#allocation2 + $0x2e0] sm:$0xff] }
  0x33   : > { %6063 = vmatpush3.msra.mxu0 %v302_v30  ;;  %5094 = vmatpush3.msra.mxu1 %v267_v32  ;;  %v611_v30 = vld [vmem:[#allocation2 + $0x268] sm:$0xff]  ;;  %v610_v32 = vld [vmem:[#allocation2 + $0x260] sm:$0xff] }
  0x34   : > { %6064 = vmatprep.subr.mxu0 %v301_v33  ;;  %5095 = vmatprep.subr.mxu1 %v282_v34  ;;  %v609_v34 = vld [vmem:[#allocation2 + $0x258] sm:$0xff] }
  0x35   : > { %6065 = vmatpush3.msra.mxu0 %v301_v33  ;;  %5096 = vmatpush3.msra.mxu1 %v266_v35  ;;  %v625_v33 = vld [vmem:[#allocation2 + $0x2d8] sm:$0xff]  ;;  %v624_v35 = vld [vmem:[#allocation2 + $0x2d0] sm:$0xff] }
  0x36   : > { %6066 = vmatprep.subr.mxu0 %v300_v36  ;;  %5097 = vmatprep.subr.mxu1 %v281_v37  ;;  %v623_v37 = vld [vmem:[#allocation2 + $0x2c8] sm:$0xff] }
  0x37   : > { %6067 = vmatpush3.msra.mxu0 %v300_v36  ;;  %5098 = vmatpush3.msra.mxu1 %v265_v38  ;;  %v608_v36 = vld [vmem:[#allocation2 + $0x250] sm:$0xff]  ;;  %v607_v38 = vld [vmem:[#allocation2 + $0x248] sm:$0xff] }
  0x38   : > { %6068 = vmatprep.subr.mxu0 %v299_v39  ;;  %5099 = vmatprep.subr.mxu1 %v280_v40  ;;  %v606_v40 = vld [vmem:[#allocation2 + $0x240] sm:$0xff] }
  0x39   : > { %6069 = vmatpush3.msra.mxu0 %v299_v39  ;;  %5100 = vmatpush3.msra.mxu1 %v264_v41  ;;  %v622_v39 = vld [vmem:[#allocation2 + $0x2c0] sm:$0xff]  ;;  %v621_v41 = vld [vmem:[#allocation2 + $0x2b8] sm:$0xff] }
  0x3a   : > { %6070 = vmatprep.subr.mxu0 %v298_v42  ;;  %5101 = vmatprep.subr.mxu1 %v279_v43  ;;  %v620_v43 = vld [vmem:[#allocation2 + $0x2b0] sm:$0xff] }
  0x3b   : > { %6071 = vmatpush3.msra.mxu0 %v298_v42  ;;  %5102 = vmatpush3.msra.mxu1 %v263_v44  ;;  %v605_v42 = vld [vmem:[#allocation2 + $0x238] sm:$0xff]  ;;  %v604_v44 = vld [vmem:[#allocation2 + $0x230] sm:$0xff] }
  0x3c   : > { %6072 = vmatprep.subr.mxu0 %v297_v45  ;;  %5103 = vmatprep.subr.mxu1 %v278_v46  ;;  %v603_v46 = vld [vmem:[#allocation2 + $0x228] sm:$0xff] }
  0x3d   : > { %6073 = vmatpush3.msra.mxu0 %v297_v45  ;;  %5104 = vmatpush3.msra.mxu1 %v262_v47  ;;  %v619_v45 = vld [vmem:[#allocation2 + $0x2a8] sm:$0xff]  ;;  %v618_v47 = vld [vmem:[#allocation2 + $0x2a0] sm:$0xff] }
  0x3e   : > { %6074 = vmatprep.subr.mxu0 %v296_v48  ;;  %5105 = vmatprep.subr.mxu1 %v277_v49  ;;  %v617_v49 = vld [vmem:[#allocation2 + $0x298] sm:$0xff] }
  0x3f   : > { %6075 = vmatpush3.msra.mxu0 %v296_v48  ;;  %5106 = vmatpush3.msra.mxu1 %v261_v50  ;;  %v602_v48 = vld [vmem:[#allocation2 + $0x220] sm:$0xff]  ;;  %v601_v50 = vld [vmem:[#allocation2 + $0x218] sm:$0xff] }
  0x40   : > { %6076 = vmatprep.subr.mxu0 %v295_v51  ;;  %5137 = vmatprep.subr.mxu1 %v627_v29  ;;  %v629_v29 = vld [vmem:[#allocation2 + $0x2f8] sm:$0xff] }
  0x41   : > { %6077 = vmatpush3.msra.mxu0 %v295_v51  ;;  %v616_v51 = vld [vmem:[#allocation2 + $0x290] sm:$0xff] }
  0x42   : > { %6078 = vmatprep.subr.mxu0 %v294_v52 }
  0x43   : > { %6079 = vmatpush3.msra.mxu0 %v294_v52  ;;  %v600_v52 = vld [vmem:[#allocation2 + $0x210] sm:$0xff] }
  0x44   : > { %6080 = vmatprep.subr.mxu0 %v293_v53 }
  0x45   : > { %6081 = vmatpush3.msra.mxu0 %v293_v53  ;;  %v615_v53 = vld [vmem:[#allocation2 + $0x288] sm:$0xff] }
  0xe5   : > { %v6046_v54 = vpop.f32.mrf.mxu0 }
  0xe7   : > { %v242_v55 = vpop.f32.mrf.mxu0 }
  0xe8   : > { %376 = vmatmul.mubr.f32.vlgmr.msra.gmra.mxu1 %v242_v55  ;;  %v614_v55 = vld [vmem:[#allocation2 + $0x280] sm:$0xff] }
  0xe9   : > { %v6049_v56 = vpop.f32.mrf.mxu0  ;;  %380 = vmatprep.mubr.f32.mxu1 %v7481_v0  ;;  %5138 = vmatpush3.msra.mxu1 %v611_v30  ;;  %v628_v30 = vld [vmem:[#allocation2 + $0x2f0] sm:$0xff] }
  0xea   : > { %5139 = vmatprep.subr.mxu1 %v626_v31 }
  0xeb   : > { %v252_v57 = vpop.f32.mrf.mxu0  ;;  %5140 = vmatpush3.msra.mxu1 %v610_v32 }
  0xec   : > { %381 = vmatmul.mubr.f32.gmra.mxu1 %v6046_v54  ;;  %6082 = vmatprep.mubr.f32.mxu0 %v252_v57  ;;  %v599_v54 = vld [vmem:[#allocation2 + $0x208] sm:$0xff]  ;;  %v613_v57 = vld [vmem:[#allocation2 + $0x278] sm:$0xff] }
  0xed   : > { %6083 = vmatmul.mubr.f32.vlgmr.msra.gmra.mxu0 %v6049_v56  ;;  %5141 = vmatprep.subr.mxu1 %v625_v33  ;;  %v598_v56 = vld [vmem:[#allocation2 + $0x200] sm:$0xff] }
  0xee   : > { %6089 = vmatprep.mubr.msk.f32.mxu0 %vm163_vm0, %v7483_v2  ;;  %5142 = vmatpush3.msra.mxu1 %v609_v34 }
  0xef   : > { %5143 = vmatprep.subr.mxu1 %v624_v35 }
  0xf0   : > { %5144 = vmatpush3.msra.mxu1 %v608_v36 }
  0xf1   : > { %5145 = vmatprep.subr.mxu1 %v623_v37 }
  0xf2   : > { %5146 = vmatpush3.msra.mxu1 %v607_v38 }
  0xf3   : > { %5147 = vmatprep.subr.mxu1 %v622_v39  ;;  %v644_v39 = vld [vmem:[#allocation2 + $0x370] sm:$0xff] }
  0xf4   : > { %5148 = vmatpush3.msra.mxu1 %v606_v40 }
  0xf5   : > { %5149 = vmatprep.subr.mxu1 %v621_v41  ;;  %v645_v41 = vld [vmem:[#allocation2 + $0x378] sm:$0xff] }
  0xf6   : > { %5150 = vmatpush3.msra.mxu1 %v605_v42 }
  0xf7   : > { %5151 = vmatprep.subr.mxu1 %v620_v43 }
  0xf8   : > { %5152 = vmatpush3.msra.mxu1 %v604_v44 }
  0xf9   : > { %5153 = vmatprep.subr.mxu1 %v619_v45 }
  0xfa   : > { %5154 = vmatpush3.msra.mxu1 %v603_v46 }
  0xfb   : > { %5155 = vmatprep.subr.mxu1 %v618_v47 }
  0xfc   : > { %5156 = vmatpush3.msra.mxu1 %v602_v48 }
  0xfd   : > { %5157 = vmatprep.subr.mxu1 %v617_v49 }
  0xfe   : > { %5158 = vmatpush3.msra.mxu1 %v601_v50 }
  0xff   : > { %5159 = vmatprep.subr.mxu1 %v616_v51 }
 0x100   : > { %5160 = vmatpush3.msra.mxu1 %v600_v52 }
 0x101   : > { %5161 = vmatprep.subr.mxu1 %v615_v53 }
 0x102   : > { %5162 = vmatpush3.msra.mxu1 %v599_v54 }
 0x103   : > { %5163 = vmatprep.subr.mxu1 %v614_v55 }
 0x104   : > { %5164 = vmatpush3.msra.mxu1 %v598_v56 }
 0x105   : > { %5165 = vmatprep.subr.mxu1 %v613_v57 }
 0x1a8   : > { %v5107_v58 = vpop.f32.mrf.mxu1 }
 0x1aa   : > { %v5108_v59 = vpop.f32.mrf.mxu1 }
 0x1ab   : > { %v5109_v60 = vadd.f32 %v5108_v59, %v5107_v58 }
 0x1ac   : > { %v5110_v61 = vpop.f32.mrf.mxu1 }
 0x1ad   : > { %v6084_v63 = vpop.f32.mrf.mxu0  ;;  %v378_v6 = vadd.f32 %v5109_v60, %v309_v62 }
 0x1ae   : > { %v5111_v4 = vpop.f32.mrf.mxu1 }
 0x1af   : > { %v5112_v5 = vadd.f32 %v5111_v4, %v5110_v61  ;;  %v452_v8 = vpop.f32.mrf.mxu0  ;;  %v502_v4 = vld [vmem:[#allocation2 + $0x1d8] sm:$0xff] }
 0x1b0   : > { %v7504_v0 = vadd.f32 %v452_v8, %v378_v6  ;;  %v506_v8 = vld [vmem:[#allocation2 + $0x1e8] sm:$0xff] }
 0x1b1   : > { %v383_v9 = vadd.f32 %v5112_v5, %v310_v1  ;;  %v501_v1 = vld [vmem:[#allocation2 + $0x1d0] sm:$0xff] }
 0x1b2   : > { %v474_v13 = vmul.f32 %v7504_v0, %v7504_v0 }
 0x1b3   : > { %v7506_v10 = vadd.f32 %v6084_v63, %v383_v9  ;;  %v505_v9 = vld [vmem:[#allocation2 + $0x1e0] sm:$0xff] }
 0x1b5   : > { %v461_v11 = vadd.f32 %v7506_v10, %v7504_v0  ;;  %v475_v2 = vmul.f32 %v7506_v10, %v7506_v10 }
 0x1b7   : > { %462 = vadd.xlane.f32.xlu0 %v461_v11  ;;  %v476_v14 = vadd.f32 %v475_v2, %v474_v13 }
 0x1bb   : > { %477 = vadd.xlane.f32.xlu0 %v476_v14 }
 0x240   : > { %v463_v15 = vpop.xlane.xlu0 %462 }
 0x241   : > { %v464_v16 = vrot.slane %v463_v15, 4 }
 0x243   : > { %v465_v17 = vadd.f32 %v464_v16, %v463_v15 }
 0x244   : > { %v478_v18 = vpop.xlane.xlu0 %477 }
 0x245   : > { %v466_v19 = vrot.slane %v465_v17, 2  ;;  %v479_v20 = vrot.slane %v478_v18, 4 }
 0x247   : > { %v480_v21 = vadd.f32 %v479_v20, %v478_v18  ;;  %v467_v22 = vadd.f32 %v466_v19, %v465_v17  ;;  %v641_v17 = vld [vmem:[#allocation2 + $0x358] sm:$0xff]  ;;  %v640_v18 = vld [vmem:[#allocation2 + $0x350] sm:$0xff]  ;;  %v639_v19 = vld [vmem:[#allocation2 + $0x348] sm:$0xff] }
 0x248   : > { %v638_v20 = vld [vmem:[#allocation2 + $0x340] sm:$0xff] }
 0x249   : > { %v481_v23 = vrot.slane %v480_v21, 2  ;;  %v468_v24 = vrot.slane %v467_v22, 1 }
 0x24b   : > { %v469_v25 = vadd.f32 %v468_v24, %v467_v22  ;;  %v482_v26 = vadd.f32 %v481_v23, %v480_v21  ;;  %v635_v21 = vld [vmem:[#allocation2 + $0x328] sm:$0xff]  ;;  %v634_v22 = vld [vmem:[#allocation2 + $0x320] sm:$0xff]  ;;  %v632_v23 = vld [vmem:[#allocation2 + $0x310] sm:$0xff] }
 0x24c   : > { %v597_v24 = vld [vmem:[#allocation2 + $0x1f8] sm:$0xff] }
 0x24d   : > { %6829 = vpush %v469_v25  ;;  %v483_v27 = vrot.slane %v482_v26, 1  ;;  %v631_v25 = vld [vmem:[#allocation2 + $0x308] sm:$0xff]  ;;  %5166 = vmatpush3.msra.mxu1 %v597_v24  ;;  %v836_v24 = vld [vmem:[#allocation2 + $0x380] sm:$0xff] }
 0x24f   : > { %v484_v28 = vadd.f32 %v483_v27, %v482_v26  ;;  %v612_v26 = vld [vmem:[#allocation2 + $0x270] sm:$0xff] }
 0x250   : > { %5167 = vmatprep.subr.mxu1 %v612_v26  ;;  %v596_v27 = vld [vmem:[#allocation2 + $0x1f0] sm:$0xff] }
 0x251   : > { %6831 = vpush %v484_v28  ;;  %v630_v28 = vld [vmem:[#allocation2 + $0x300] sm:$0xff]  ;;  %5168 = vmatpush3.msra.mxu1 %v596_v27 }
 0x27e   : > { %s6830_s23 = spop %6829 }
 0x27f   : > { %s473_s24 = smul.f32 0.00048828125, %s6830_s23 }
 0x281   : > { %s489_s25 = smul.f32 %s473_s24, %s473_s24  ;;  %v491_v60 = vstv %s473_s24 }
 0x282   : > { %s6832_s26 = spop %6831  ;;  %v492_v61 = vsub.f32 %v7504_v0, %v491_v60  ;;  %v493_v62 = vsub.f32 %v7506_v10, %v491_v60  ;;  %v643_v0 = vld [vmem:[#allocation2 + $0x368] sm:$0xff]  ;;  %v642_v10 = vld [vmem:[#allocation2 + $0x360] sm:$0xff] }
 0x283   : > { %s488_s27 = smul.f32 0.00048828125, %s6832_s26 }
 0x285   : > { %s490_s28 = ssub.f32 %s488_s27, %s489_s25 }
 0x287   : > { %s494_s29 = sadd.f32 1e-05, %s490_s28 }
 0x289   : > { %v495_v58 = vstv %s494_s29 }
 0x28a   : > { %6912 = vrsqrt.f32 %v495_v58 }
 0x297   : > { %v6913_v59 = vpop.eup %6912 }
 0x298   : > { %6833 = vpush %v6913_v59 }
 0x2c9   : > { %s6834_s30 = spop %6833 }
 0x2ca   : > { %v498_v63 = vstv %s6834_s30 }
 0x2cb   : > { %v499_v5 = vmul.f32 %v498_v63, %v492_v61  ;;  %v500_v6 = vmul.f32 %v498_v63, %v493_v62 }
 0x2cd   : > { %v503_v11 = vmul.f32 %v501_v1, %v499_v5  ;;  %v504_v2 = vmul.f32 %v502_v4, %v500_v6  ;;  %v846_v6 = vld [vmem:[#allocation2 + $0xbf8] sm:$0xff] }
 0x2cf   : > { %v508_v13 = vadd.f32 %v506_v8, %v504_v2  ;;  %v507_v14 = vadd.f32 %v505_v9, %v503_v11  ;;  %v7436_v8 = vmov 0.0   ;;  %v1031_v9 = vld [vmem:[#allocation2 + $0xd00] sm:$0xff]  ;;  %v1030_v11 = vld [vmem:[#allocation2 + $0xcf8] sm:$0xff]  ;;  %v1029_v2 = vld [vmem:[#allocation2 + $0xcf0] sm:$0xff] }
 0x2d0   : > { %6172 = vmatprep.subr.mxu1 %v7436_v8 }
 0x2d1   : > { %v7516_v15 = vmax.f32 %v508_v13, 0.0  ;;  %v509_v16 = vmax.f32 %v507_v14, 0.0  ;;  %v1028_v13 = vld [vmem:[#allocation2 + $0xce8] sm:$0xff]  ;;  %v1027_v14 = vld [vmem:[#allocation2 + $0xce0] sm:$0xff] }
 0x2d3   : > { %6085 = vmatprep.subr.mxu0 %v7516_v15  ;;  %710 = vmatprep.mubr.f32.mxu1 %v509_v16 }
 0x2d4   : > { %6086 = vmatpush3.msra.mxu0 %v7516_v15 }
 0x2d5   : > { %6087 = vmatprep.subr.mxu0 %v509_v16 }
 0x2d6   : > { %6088 = vmatpush3.msra.mxu0 %v509_v16  ;;  %v1025_v16 = vld [vmem:[#allocation2 + $0xcd0] sm:$0xff] }
 0x2d7   : > { %6090 = vmatmul.mubr.msk.f32.vlgmr.msra.gmra.mxu0 %vm163_vm0, %v7488_v3  ;;  %6095 = vmatprep.subr.mxu0 %v643_v0  ;;  %v637_v3 = vld [vmem:[#allocation2 + $0x338] sm:$0xff] }
 0x2d8   : > { %6092 = vmatprep.mubr.msk.f32.mxu0 %vm163_vm0, %v7491_v7  ;;  %6096 = vmatpush3.msra.mxu0 %v643_v0  ;;  %v636_v7 = vld [vmem:[#allocation2 + $0x330] sm:$0xff]  ;;  %v1024_v0 = vld [vmem:[#allocation2 + $0xcc8] sm:$0xff] }
 0x2d9   : > { %6097 = vmatprep.subr.mxu0 %v642_v10 }
 0x2da   : > { %6098 = vmatpush3.msra.mxu0 %v642_v10  ;;  %v1023_v10 = vld [vmem:[#allocation2 + $0xcc0] sm:$0xff] }
 0x2db   : > { %6093 = vmatmul.mubr.msk.f32.gmra.mxu0 %vm163_vm0, %v7497_v12  ;;  %6099 = vmatprep.subr.mxu0 %v641_v17  ;;  %v633_v12 = vld [vmem:[#allocation2 + $0x318] sm:$0xff] }
 0x2dc   : > { %6100 = vmatpush3.msra.mxu0 %v641_v17  ;;  %v1022_v17 = vld [vmem:[#allocation2 + $0xcb8] sm:$0xff] }
 0x2dd   : > { %6101 = vmatprep.subr.mxu0 %v640_v18 }
 0x2de   : > { %6102 = vmatpush3.msra.mxu0 %v640_v18  ;;  %v1021_v18 = vld [vmem:[#allocation2 + $0xcb0] sm:$0xff] }
 0x2df   : > { %6103 = vmatprep.subr.mxu0 %v639_v19 }
 0x2e0   : > { %6104 = vmatpush3.msra.mxu0 %v639_v19  ;;  %v1020_v19 = vld [vmem:[#allocation2 + $0xca8] sm:$0xff] }
 0x2e1   : > { %6105 = vmatprep.subr.mxu0 %v638_v20 }
 0x2e2   : > { %6106 = vmatpush3.msra.mxu0 %v638_v20  ;;  %v1019_v20 = vld [vmem:[#allocation2 + $0xca0] sm:$0xff] }
 0x2e3   : > { %6107 = vmatprep.subr.mxu0 %v637_v3 }
 0x2e4   : > { %6108 = vmatpush3.msra.mxu0 %v637_v3 }
 0x2e5   : > { %6109 = vmatprep.subr.mxu0 %v636_v7 }
 0x2e6   : > { %6110 = vmatpush3.msra.mxu0 %v636_v7 }
 0x2e7   : > { %6111 = vmatprep.subr.mxu0 %v635_v21 }
 0x2e8   : > { %6112 = vmatpush3.msra.mxu0 %v635_v21 }
 0x2e9   : > { %6113 = vmatprep.subr.mxu0 %v634_v22 }
 0x2ea   : > { %6114 = vmatpush3.msra.mxu0 %v634_v22 }
 0x2eb   : > { %6115 = vmatprep.subr.mxu0 %v633_v12 }
 0x2ec   : > { %6116 = vmatpush3.msra.mxu0 %v633_v12 }
 0x2ed   : > { %6117 = vmatprep.subr.mxu0 %v632_v23 }
 0x2ee   : > { %6118 = vmatpush3.msra.mxu0 %v632_v23 }
 0x2ef   : > { %6119 = vmatprep.subr.mxu0 %v631_v25 }
 0x2f0   : > { %6120 = vmatpush3.msra.mxu0 %v631_v25  ;;  %v837_v25 = vld [vmem:[#allocation2 + $0x388] sm:$0xff] }
 0x2f1   : > { %6121 = vmatprep.subr.mxu0 %v630_v28 }
 0x2f2   : > { %6122 = vmatpush3.msra.mxu0 %v630_v28  ;;  %v840_v28 = vld [vmem:[#allocation2 + $0x390] sm:$0xff] }
 0x2f3   : > { %6123 = vmatprep.subr.mxu0 %v629_v29 }
 0x2f4   : > { %6124 = vmatpush3.msra.mxu0 %v629_v29  ;;  %v841_v29 = vld [vmem:[#allocation2 + $0x398] sm:$0xff] }
 0x2f5   : > { %6125 = vmatprep.subr.mxu0 %v628_v30 }
 0x2f6   : > { %6126 = vmatpush3.msra.mxu0 %v628_v30 }
 0x397   : > { %v6091_v31 = vpop.f32.mrf.mxu0 }
 0x399   : > { %v577_v32 = vpop.f32.mrf.mxu0 }
 0x39a   : > { %711 = vmatmul.mubr.f32.vlgmr.msra.gmra.mxu1 %v577_v32 }
 0x39b   : > { %v6094_v33 = vpop.f32.mrf.mxu0  ;;  %715 = vmatprep.mubr.f32.mxu1 %v7516_v15  ;;  %6173 = vmatpush3.msra.mxu1 %v1031_v9  ;;  %v1026_v15 = vld [vmem:[#allocation2 + $0xcd8] sm:$0xff]  ;;  %v1215_v9 = vld [vmem:[#allocation2 + $0x820] sm:$0xff] }
 0x39c   : > { %6174 = vmatprep.subr.mxu1 %v7436_v8 }
 0x39d   : > { %v587_v34 = vpop.f32.mrf.mxu0  ;;  %6175 = vmatpush3.msra.mxu1 %v1030_v11  ;;  %v1199_v11 = vld [vmem:[#allocation2 + $0x7a0] sm:$0xff] }
 0x39e   : > { %716 = vmatmul.mubr.f32.gmra.mxu1 %v6091_v31  ;;  %6127 = vmatprep.mubr.f32.mxu0 %v587_v34 }
 0x39f   : > { %6128 = vmatmul.mubr.f32.vlgmr.msra.gmra.mxu0 %v6094_v33  ;;  %6176 = vmatprep.subr.mxu1 %v7436_v8 }
 0x3a0   : > { %6134 = vmatprep.mubr.msk.f32.mxu0 %vm163_vm0, %v846_v6  ;;  %6177 = vmatpush3.msra.mxu1 %v1029_v2  ;;  %v1200_v6 = vld [vmem:[#allocation2 + $0x7a8] sm:$0xff]  ;;  %v1214_v2 = vld [vmem:[#allocation2 + $0x818] sm:$0xff] }
 0x3a1   : > { %6178 = vmatprep.subr.mxu1 %v7436_v8  ;;  %6204 = vmatprep.mubr.msk.f32.mxu1 %vm7437_vm1, %v7436_v8 }
 0x3a2   : > { %6179 = vmatpush3.msra.mxu1 %v1028_v13  ;;  %v1198_v13 = vld [vmem:[#allocation2 + $0x798] sm:$0xff] }
 0x3a3   : > { %6180 = vmatprep.subr.mxu1 %v7436_v8 }
 0x3a4   : > { %6181 = vmatpush3.msra.mxu1 %v1027_v14  ;;  %v1213_v14 = vld [vmem:[#allocation2 + $0x810] sm:$0xff] }
 0x3a5   : > { %6182 = vmatprep.subr.mxu1 %v7436_v8 }
 0x3a6   : > { %6183 = vmatpush3.msra.mxu1 %v1026_v15  ;;  %v1197_v15 = vld [vmem:[#allocation2 + $0x790] sm:$0xff] }
 0x3a7   : > { %6184 = vmatprep.subr.mxu1 %v7436_v8 }
 0x3a8   : > { %6185 = vmatpush3.msra.mxu1 %v1025_v16  ;;  %v1212_v16 = vld [vmem:[#allocation2 + $0x808] sm:$0xff] }
 0x3a9   : > { %6186 = vmatprep.subr.mxu1 %v7436_v8 }
 0x3aa   : > { %6187 = vmatpush3.msra.mxu1 %v1024_v0  ;;  %v1196_v0 = vld [vmem:[#allocation2 + $0x788] sm:$0xff] }
 0x3ab   : > { %6188 = vmatprep.subr.mxu1 %v7436_v8 }
 0x3ac   : > { %6189 = vmatpush3.msra.mxu1 %v1023_v10  ;;  %v1211_v10 = vld [vmem:[#allocation2 + $0x800] sm:$0xff] }
 0x3ad   : > { %6190 = vmatprep.subr.mxu1 %v7436_v8 }
 0x3ae   : > { %6191 = vmatpush3.msra.mxu1 %v1022_v17  ;;  %v1195_v17 = vld [vmem:[#allocation2 + $0x780] sm:$0xff] }
 0x3af   : > { %6192 = vmatprep.subr.mxu1 %v7436_v8 }
 0x3b0   : > { %6193 = vmatpush3.msra.mxu1 %v1021_v18  ;;  %v1210_v18 = vld [vmem:[#allocation2 + $0x7f8] sm:$0xff] }
 0x3b1   : > { %6194 = vmatprep.subr.mxu1 %v7436_v8 }
 0x3b2   : > { %6195 = vmatpush3.msra.mxu1 %v1020_v19  ;;  %v1194_v19 = vld [vmem:[#allocation2 + $0x778] sm:$0xff] }
 0x3b3   : > { %6196 = vmatprep.subr.mxu1 %v7436_v8 }
 0x3b4   : > { %6197 = vmatpush3.msra.mxu1 %v1019_v20  ;;  %v1209_v20 = vld [vmem:[#allocation2 + $0x7f0] sm:$0xff] }
 0x3b5   : > { %6198 = vmatprep.subr.mxu1 %v7436_v8 }
 0x45a   : > { %v5169_v35 = vpop.f32.mrf.mxu1 }
 0x45c   : > { %v5170_v36 = vpop.f32.mrf.mxu1 }
 0x45d   : > { %v5171_v37 = vadd.f32 %v5170_v36, %v5169_v35  ;;  %v847_v36 = vld [vmem:[#allocation2 + $0xc00] sm:$0xff] }
 0x45e   : > { %v5172_v38 = vpop.f32.mrf.mxu1 }
 0x45f   : > { %v6129_v40 = vpop.f32.mrf.mxu0  ;;  %v713_v44 = vadd.f32 %v5171_v37, %v644_v39  ;;  %v945_v37 = vld [vmem:[#allocation2 + $0xc80] sm:$0xff]  ;;  %v943_v39 = vld [vmem:[#allocation2 + $0xc70] sm:$0xff] }
 0x460   : > { %v5173_v42 = vpop.f32.mrf.mxu1 }
 0x461   : > { %v5174_v43 = vadd.f32 %v5173_v42, %v5172_v38  ;;  %v787_v45 = vpop.f32.mrf.mxu0  ;;  %v944_v38 = vld [vmem:[#allocation2 + $0xc78] sm:$0xff] }
 0x462   : > { %v7529_v48 = vadd.f32 %v787_v45, %v713_v44  ;;  %v940_v42 = vld [vmem:[#allocation2 + $0xc58] sm:$0xff]  ;;  %v938_v44 = vld [vmem:[#allocation2 + $0xc48] sm:$0xff]  ;;  %v937_v45 = vld [vmem:[#allocation2 + $0xc40] sm:$0xff] }
 0x463   : > { %v718_v46 = vadd.f32 %v5174_v43, %v645_v41  ;;  %v941_v41 = vld [vmem:[#allocation2 + $0xc60] sm:$0xff]  ;;  %v939_v43 = vld [vmem:[#allocation2 + $0xc50] sm:$0xff] }
 0x464   : > { %v809_v51 = vmul.f32 %v7529_v48, %v7529_v48 }
 0x465   : > { %v7527_v47 = vadd.f32 %v6129_v40, %v718_v46  ;;  %v942_v40 = vld [vmem:[#allocation2 + $0xc68] sm:$0xff]  ;;  %v936_v46 = vld [vmem:[#allocation2 + $0xc38] sm:$0xff] }
 0x467   : > { %v796_v49 = vadd.f32 %v7527_v47, %v7529_v48  ;;  %v810_v50 = vmul.f32 %v7527_v47, %v7527_v47 }
 0x469   : > { %797 = vadd.xlane.f32.xlu1 %v796_v49  ;;  %v811_v52 = vadd.f32 %v810_v50, %v809_v51  ;;  %v935_v49 = vld [vmem:[#allocation2 + $0xc30] sm:$0xff]  ;;  %v934_v50 = vld [vmem:[#allocation2 + $0xc28] sm:$0xff]  ;;  %v933_v51 = vld [vmem:[#allocation2 + $0xc20] sm:$0xff] }
 0x46d   : > { %812 = vadd.xlane.f32.xlu1 %v811_v52  ;;  %v932_v52 = vld [vmem:[#allocation2 + $0xc18] sm:$0xff] }
 0x4f2   : > { %v798_v53 = vpop.xlane.xlu1 %797 }
 0x4f3   : > { %v799_v54 = vrot.slane %v798_v53, 4 }
 0x4f5   : > { %v800_v55 = vadd.f32 %v799_v54, %v798_v53  ;;  %v1018_v53 = vld [vmem:[#allocation2 + $0xc98] sm:$0xff]  ;;  %v931_v54 = vld [vmem:[#allocation2 + $0xc10] sm:$0xff] }
 0x4f6   : > { %v813_v56 = vpop.xlane.xlu1 %812  ;;  %6199 = vmatpush3.msra.mxu1 %v1018_v53  ;;  %v1188_v53 = vld [vmem:[#allocation2 + $0x748] sm:$0xff] }
 0x4f7   : > { %v801_v57 = vrot.slane %v800_v55, 2  ;;  %v814_v58 = vrot.slane %v813_v56, 4  ;;  %6200 = vmatprep.subr.mxu1 %v7436_v8 }
 0x4f9   : > { %v815_v59 = vadd.f32 %v814_v58, %v813_v56  ;;  %v802_v60 = vadd.f32 %v801_v57, %v800_v55  ;;  %v1017_v55 = vld [vmem:[#allocation2 + $0xc90] sm:$0xff]  ;;  %v930_v56 = vld [vmem:[#allocation2 + $0xc08] sm:$0xff] }
 0x4fa   : > { %6201 = vmatpush3.msra.mxu1 %v1017_v55  ;;  %v1016_v57 = vld [vmem:[#allocation2 + $0xc88] sm:$0xff]  ;;  %v1203_v55 = vld [vmem:[#allocation2 + $0x7c0] sm:$0xff] }
 0x4fb   : > { %v816_v61 = vrot.slane %v815_v59, 2  ;;  %v803_v62 = vrot.slane %v802_v60, 1  ;;  %6202 = vmatprep.subr.mxu1 %v7436_v8 }
 0x4fc   : > { %6203 = vmatpush3.msra.mxu1 %v1016_v57 }
 0x4fd   : > { %v804_v63 = vadd.f32 %v803_v62, %v802_v60  ;;  %v817_v1 = vadd.f32 %v816_v61, %v815_v59  ;;  %v7585_v61 = vld [vmem:[#allocation2 + $0x20] sm:$0xff]  ;;  %v1218_v62 = vld [vmem:[#allocation2 + $0x838] sm:$0xff] }
 0x4fe   : > { %5234 = vmatprep.subr.mxu1 %v1218_v62 }
 0x4ff   : > { %6835 = vpush %v804_v63  ;;  %v818_v4 = vrot.slane %v817_v1, 1  ;;  %v1202_v63 = vld [vmem:[#allocation2 + $0x7b8] sm:$0xff] }
 0x501   : > { %v819_v5 = vadd.f32 %v818_v4, %v817_v1  ;;  %v1217_v1 = vld [vmem:[#allocation2 + $0x830] sm:$0xff] }
 0x502   : > { %v1201_v4 = vld [vmem:[#allocation2 + $0x7b0] sm:$0xff] }
 0x503   : > { %6837 = vpush %v819_v5  ;;  %v1216_v5 = vld [vmem:[#allocation2 + $0x828] sm:$0xff] }
 0x530   : > { %s6836_s3 = spop %6835 }
 0x531   : > { %s808_s4 = smul.f32 0.00048828125, %s6836_s3 }
 0x533   : > { %s824_s5 = smul.f32 %s808_s4, %s808_s4  ;;  %v826_v21 = vstv %s808_s4 }
 0x534   : > { %s6838_s6 = spop %6837  ;;  %v827_v22 = vsub.f32 %v7529_v48, %v826_v21  ;;  %v828_v12 = vsub.f32 %v7527_v47, %v826_v21  ;;  %v1192_v21 = vld [vmem:[#allocation2 + $0x768] sm:$0xff] }
 0x535   : > { %s823_s7 = smul.f32 0.00048828125, %s6838_s6 }
 0x537   : > { %s825_s8 = ssub.f32 %s823_s7, %s824_s5 }
 0x539   : > { %s829_s11 = sadd.f32 1e-05, %s825_s8 }
 0x53b   : > { %v830_v3 = vstv %s829_s11 }
 0x53c   : > { %6914 = vrsqrt.f32 %v830_v3  ;;  %v1193_v3 = vld [vmem:[#allocation2 + $0x770] sm:$0xff] }
 0x549   : > { %v6915_v7 = vpop.eup %6914 }
 0x54a   : > { %6839 = vpush %v6915_v7  ;;  %v1208_v7 = vld [vmem:[#allocation2 + $0x7e8] sm:$0xff] }
 0x57b   : > { %s6840_s12 = spop %6839 }
 0x57c   : > { %v833_v23 = vstv %s6840_s12 }
 0x57d   : > { %v834_v26 = vmul.f32 %v833_v23, %v827_v22  ;;  %v835_v27 = vmul.f32 %v833_v23, %v828_v12  ;;  %v1207_v22 = vld [vmem:[#allocation2 + $0x7e0] sm:$0xff]  ;;  %v1206_v23 = vld [vmem:[#allocation2 + $0x7d8] sm:$0xff] }
 0x57e   : > { %v1191_v12 = vld [vmem:[#allocation2 + $0x760] sm:$0xff] }
 0x57f   : > { %v838_v30 = vmul.f32 %v836_v24, %v834_v26  ;;  %v839_v31 = vmul.f32 %v837_v25, %v835_v27  ;;  %v1190_v24 = vld [vmem:[#allocation2 + $0x758] sm:$0xff]  ;;  %v1205_v25 = vld [vmem:[#allocation2 + $0x7d0] sm:$0xff]  ;;  %v1204_v27 = vld [vmem:[#allocation2 + $0x7c8] sm:$0xff] }
 0x580   : > { %v1189_v26 = vld [vmem:[#allocation2 + $0x750] sm:$0xff] }
 0x581   : > { %v842_v32 = vadd.f32 %v840_v28, %v838_v30  ;;  %v843_v33 = vadd.f32 %v841_v29, %v839_v31 }
 0x583   : > { %v7554_v34 = vmax.f32 %v843_v33, 0.0  ;;  %v7556_v35 = vmax.f32 %v842_v32, 0.0  ;;  %v7589_v33 = vld [vmem:[#allocation2 + $0x28] sm:$0xff] }
 0x585   : > { %6130 = vmatprep.subr.mxu0 %v7554_v34 }
 0x586   : > { %6131 = vmatpush3.msra.mxu0 %v7554_v34 }
 0x587   : > { %6132 = vmatprep.subr.mxu0 %v7556_v35 }
 0x588   : > { %6133 = vmatpush3.msra.mxu0 %v7556_v35 }
 0x589   : > { %6135 = vmatmul.mubr.msk.f32.vlgmr.msra.gmra.mxu0 %vm163_vm0, %v847_v36  ;;  %6137 = vmatprep.subr.mxu0 %v7436_v8  ;;  %v1234_v36 = vld [vmem:[#allocation2 + $0x8b8] sm:$0xff] }
 0x58a   : > { %6138 = vmatpush3.msra.mxu0 %v945_v37  ;;  %6169 = vmatprep.mubr.msk.f32.mxu0 %vm7437_vm1, %v7436_v8  ;;  %v1233_v37 = vld [vmem:[#allocation2 + $0x8b0] sm:$0xff] }
 0x58b   : > { %6139 = vmatprep.subr.mxu0 %v7436_v8 }
 0x58c   : > { %6140 = vmatpush3.msra.mxu0 %v944_v38  ;;  %v1232_v38 = vld [vmem:[#allocation2 + $0x8a8] sm:$0xff] }
 0x58d   : > { %6141 = vmatprep.subr.mxu0 %v7436_v8 }
 0x58e   : > { %6142 = vmatpush3.msra.mxu0 %v943_v39  ;;  %v1231_v39 = vld [vmem:[#allocation2 + $0x8a0] sm:$0xff] }
 0x58f   : > { %6143 = vmatprep.subr.mxu0 %v7436_v8 }
 0x590   : > { %6144 = vmatpush3.msra.mxu0 %v942_v40  ;;  %v1230_v40 = vld [vmem:[#allocation2 + $0x898] sm:$0xff] }
 0x591   : > { %6145 = vmatprep.subr.mxu0 %v7436_v8 }
 0x592   : > { %6146 = vmatpush3.msra.mxu0 %v941_v41  ;;  %v1229_v41 = vld [vmem:[#allocation2 + $0x890] sm:$0xff] }
 0x593   : > { %6147 = vmatprep.subr.mxu0 %v7436_v8 }
 0x594   : > { %6148 = vmatpush3.msra.mxu0 %v940_v42  ;;  %v1228_v42 = vld [vmem:[#allocation2 + $0x888] sm:$0xff] }
 0x595   : > { %6149 = vmatprep.subr.mxu0 %v7436_v8 }
 0x596   : > { %6150 = vmatpush3.msra.mxu0 %v939_v43  ;;  %v1227_v43 = vld [vmem:[#allocation2 + $0x880] sm:$0xff] }
 0x597   : > { %6151 = vmatprep.subr.mxu0 %v7436_v8 }
 0x598   : > { %6152 = vmatpush3.msra.mxu0 %v938_v44  ;;  %v1226_v44 = vld [vmem:[#allocation2 + $0x878] sm:$0xff] }
 0x599   : > { %6153 = vmatprep.subr.mxu0 %v7436_v8 }
 0x59a   : > { %6154 = vmatpush3.msra.mxu0 %v937_v45  ;;  %v1225_v45 = vld [vmem:[#allocation2 + $0x870] sm:$0xff] }
 0x59b   : > { %6155 = vmatprep.subr.mxu0 %v7436_v8 }
 0x59c   : > { %6156 = vmatpush3.msra.mxu0 %v936_v46  ;;  %v1224_v46 = vld [vmem:[#allocation2 + $0x868] sm:$0xff] }
 0x59d   : > { %6157 = vmatprep.subr.mxu0 %v7436_v8 }
 0x59e   : > { %6158 = vmatpush3.msra.mxu0 %v935_v49  ;;  %v1223_v49 = vld [vmem:[#allocation2 + $0x860] sm:$0xff] }
 0x59f   : > { %6159 = vmatprep.subr.mxu0 %v7436_v8 }
 0x5a0   : > { %6160 = vmatpush3.msra.mxu0 %v934_v50  ;;  %v1222_v50 = vld [vmem:[#allocation2 + $0x858] sm:$0xff] }
 0x5a1   : > { %6161 = vmatprep.subr.mxu0 %v7436_v8 }
 0x5a2   : > { %6162 = vmatpush3.msra.mxu0 %v933_v51  ;;  %v1221_v51 = vld [vmem:[#allocation2 + $0x850] sm:$0xff] }
 0x5a3   : > { %6163 = vmatprep.subr.mxu0 %v7436_v8 }
 0x5a4   : > { %6164 = vmatpush3.msra.mxu0 %v932_v52  ;;  %v1220_v52 = vld [vmem:[#allocation2 + $0x848] sm:$0xff] }
 0x5a5   : > { %6165 = vmatprep.subr.mxu0 %v7436_v8 }
 0x5a6   : > { %6166 = vmatpush3.msra.mxu0 %v931_v54  ;;  %v1219_v54 = vld [vmem:[#allocation2 + $0x840] sm:$0xff] }
 0x5a7   : > { %6167 = vmatprep.subr.mxu0 %v7436_v8 }
 0x5a8   : > { %6168 = vmatpush3.msra.mxu0 %v930_v56  ;;  %v1187_v56 = vld [vmem:[#allocation2 + $0x740] sm:$0xff] }
 0x649   : > { %v6136_v58 = vpop.f32.mrf.mxu0 }
 0x64b   : > { %v920_v59 = vpop.f32.mrf.mxu0 }
 0x64c   : > { %v929_v60 = vmax.f32 %v920_v59, %v6136_v58 }
 0x64e   : > { %6170 = vmatmul.mubr.f32.vlgmr.msra.gmra.mxu0 %v929_v60  ;;  %6205 = vmatmul.mubr.f32.vlgmr.msra.gmra.mxu1 %v929_v60 }
 0x64f   : > { %6209 = vmatprep.mubr.msk.f32.mxu0 %vm1105_vm2, %v7585_v61  ;;  %5235 = vmatpush3.msra.mxu1 %v1202_v63  ;;  %v1235_v63 = vld [vmem:[#allocation2 + $0x8c0] sm:$0xff] }
 0x650   : > { %5236 = vmatprep.subr.mxu1 %v1217_v1 }
 0x651   : > { %5237 = vmatpush3.msra.mxu1 %v1201_v4 }
 0x652   : > { %5238 = vmatprep.subr.mxu1 %v1216_v5 }
 0x653   : > { %5239 = vmatpush3.msra.mxu1 %v1200_v6 }
 0x654   : > { %5240 = vmatprep.subr.mxu1 %v1215_v9 }
 0x655   : > { %5241 = vmatpush3.msra.mxu1 %v1199_v11 }
 0x656   : > { %5242 = vmatprep.subr.mxu1 %v1214_v2 }
 0x657   : > { %5243 = vmatpush3.msra.mxu1 %v1198_v13 }
 0x658   : > { %5244 = vmatprep.subr.mxu1 %v1213_v14 }
 0x659   : > { %5245 = vmatpush3.msra.mxu1 %v1197_v15 }
 0x65a   : > { %5246 = vmatprep.subr.mxu1 %v1212_v16 }
 0x65b   : > { %5247 = vmatpush3.msra.mxu1 %v1196_v0 }
 0x65c   : > { %5248 = vmatprep.subr.mxu1 %v1211_v10 }
 0x65d   : > { %5249 = vmatpush3.msra.mxu1 %v1195_v17 }
 0x65e   : > { %5250 = vmatprep.subr.mxu1 %v1210_v18 }
 0x65f   : > { %5251 = vmatpush3.msra.mxu1 %v1194_v19 }
 0x660   : > { %5252 = vmatprep.subr.mxu1 %v1209_v20 }
 0x661   : > { %5253 = vmatpush3.msra.mxu1 %v1193_v3 }
 0x662   : > { %5254 = vmatprep.subr.mxu1 %v1208_v7 }
 0x663   : > { %5255 = vmatpush3.msra.mxu1 %v1192_v21  ;;  %v1538_v21 = vld [vmem:[#allocation2 + $0xa50] sm:$0xff] }
 0x664   : > { %5256 = vmatprep.subr.mxu1 %v1207_v22  ;;  %v1537_v22 = vld [vmem:[#allocation2 + $0xa48] sm:$0xff] }
 0x665   : > { %5257 = vmatpush3.msra.mxu1 %v1191_v12  ;;  %v1536_v12 = vld [vmem:[#allocation2 + $0xa40] sm:$0xff] }
 0x666   : > { %5258 = vmatprep.subr.mxu1 %v1206_v23  ;;  %v1535_v23 = vld [vmem:[#allocation2 + $0xa38] sm:$0xff] }
 0x667   : > { %5259 = vmatpush3.msra.mxu1 %v1190_v24  ;;  %v1534_v24 = vld [vmem:[#allocation2 + $0xa30] sm:$0xff] }
 0x668   : > { %5260 = vmatprep.subr.mxu1 %v1205_v25  ;;  %v1533_v25 = vld [vmem:[#allocation2 + $0xa28] sm:$0xff] }
 0x669   : > { %5261 = vmatpush3.msra.mxu1 %v1189_v26  ;;  %v1532_v26 = vld [vmem:[#allocation2 + $0xa20] sm:$0xff] }
 0x66a   : > { %5262 = vmatprep.subr.mxu1 %v1204_v27  ;;  %v1531_v27 = vld [vmem:[#allocation2 + $0xa18] sm:$0xff] }
 0x66b   : > { %5263 = vmatpush3.msra.mxu1 %v1188_v53  ;;  %v1521_v53 = vld [vmem:[#allocation2 + $0x9c8] sm:$0xff] }
 0x66c   : > { %5264 = vmatprep.subr.mxu1 %v1203_v55  ;;  %v1520_v55 = vld [vmem:[#allocation2 + $0x9c0] sm:$0xff] }
 0x66d   : > { %5265 = vmatpush3.msra.mxu1 %v1187_v56  ;;  %v1504_v56 = vld [vmem:[#allocation2 + $0x940] sm:$0xff] }
 0x66e   : > { %6252 = vmatprep.subr.mxu1 %v7436_v8 }
 0x70e   : > { %v1012_v28 = vpop.f32.mrf.mxu0  ;;  %v1098_v29 = vpop.f32.mrf.mxu1 }
 0x70f   : > { %v1102_v30 = vmax.f32 %v1012_v28, %v1098_v29  ;;  %v1530_v28 = vld [vmem:[#allocation2 + $0xa10] sm:$0xff]  ;;  %v1529_v29 = vld [vmem:[#allocation2 + $0xa08] sm:$0xff] }
 0x710   : > { %v6171_v31 = vpop.f32.mrf.mxu0  ;;  %v6206_v32 = vpop.f32.mrf.mxu1 }
 0x711   : > { %6207 = vmatprep.subr.mxu0 %v1102_v30  ;;  %1300 = vmatprep.mubr.f32.mxu1 %v1102_v30  ;;  %v1527_v32 = vld [vmem:[#allocation2 + $0x9f8] sm:$0xff] }
 0x712   : > { %6208 = vmatpush3.msra.mxu0 %v1102_v30  ;;  %v1528_v30 = vld [vmem:[#allocation2 + $0xa00] sm:$0xff] }
 0x713   : > { %6210 = vmatmul.mubr.msk.f32.vlgmr.msra.gmra.mxu0 %vm1105_vm2, %v7589_v33  ;;  %6212 = vmatprep.subr.mxu0 %v7436_v8 }
 0x714   : > { %6213 = vmatpush3.msra.mxu0 %v1234_v36  ;;  %6244 = vmatprep.mubr.msk.f32.mxu0 %vm7437_vm1, %v7436_v8  ;;  %v1526_v36 = vld [vmem:[#allocation2 + $0x9f0] sm:$0xff] }
 0x715   : > { %6214 = vmatprep.subr.mxu0 %v7436_v8 }
 0x716   : > { %6215 = vmatpush3.msra.mxu0 %v1233_v37  ;;  %v1525_v37 = vld [vmem:[#allocation2 + $0x9e8] sm:$0xff] }
 0x717   : > { %6216 = vmatprep.subr.mxu0 %v7436_v8 }
 0x718   : > { %6217 = vmatpush3.msra.mxu0 %v1232_v38  ;;  %v1524_v38 = vld [vmem:[#allocation2 + $0x9e0] sm:$0xff] }
 0x719   : > { %6218 = vmatprep.subr.mxu0 %v7436_v8 }
 0x71a   : > { %6219 = vmatpush3.msra.mxu0 %v1231_v39 }
 0x71b   : > { %6220 = vmatprep.subr.mxu0 %v7436_v8 }
 0x71c   : > { %6221 = vmatpush3.msra.mxu0 %v1230_v40 }
 0x71d   : > { %6222 = vmatprep.subr.mxu0 %v7436_v8 }
 0x71e   : > { %6223 = vmatpush3.msra.mxu0 %v1229_v41 }
 0x71f   : > { %6224 = vmatprep.subr.mxu0 %v7436_v8 }
 0x720   : > { %6225 = vmatpush3.msra.mxu0 %v1228_v42 }
 0x721   : > { %6226 = vmatprep.subr.mxu0 %v7436_v8 }
 0x722   : > { %6227 = vmatpush3.msra.mxu0 %v1227_v43  ;;  %v1411_v43 = vld [vmem:[#allocation2 + $0x8c8] sm:$0xff] }
 0x723   : > { %6228 = vmatprep.subr.mxu0 %v7436_v8 }
 0x724   : > { %6229 = vmatpush3.msra.mxu0 %v1226_v44 }
 0x725   : > { %6230 = vmatprep.subr.mxu0 %v7436_v8 }
 0x726   : > { %6231 = vmatpush3.msra.mxu0 %v1225_v45  ;;  %v1413_v45 = vld [vmem:[#allocation2 + $0x8d0] sm:$0xff] }
 0x727   : > { %6232 = vmatprep.subr.mxu0 %v7436_v8 }
 0x728   : > { %6233 = vmatpush3.msra.mxu0 %v1224_v46 }
 0x729   : > { %6234 = vmatprep.subr.mxu0 %v7436_v8 }
 0x72a   : > { %6235 = vmatpush3.msra.mxu0 %v1223_v49 }
 0x72b   : > { %6236 = vmatprep.subr.mxu0 %v7436_v8 }
 0x72c   : > { %6237 = vmatpush3.msra.mxu0 %v1222_v50 }
 0x72d   : > { %6238 = vmatprep.subr.mxu0 %v7436_v8 }
 0x72e   : > { %6239 = vmatpush3.msra.mxu0 %v1221_v51  ;;  %v1522_v51 = vld [vmem:[#allocation2 + $0x9d0] sm:$0xff] }
 0x72f   : > { %6240 = vmatprep.subr.mxu0 %v7436_v8 }
 0x730   : > { %6241 = vmatpush3.msra.mxu0 %v1220_v52  ;;  %v1506_v52 = vld [vmem:[#allocation2 + $0x950] sm:$0xff] }
 0x731   : > { %6242 = vmatprep.subr.mxu0 %v7436_v8 }
 0x732   : > { %6243 = vmatpush3.msra.mxu0 %v1219_v54  ;;  %v1505_v54 = vld [vmem:[#allocation2 + $0x948] sm:$0xff] }
 0x7d3   : > { %v6211_v57 = vpop.f32.mrf.mxu0 }
 0x7d4   : > { %6245 = vmatmul.mubr.f32.vlgmr.msra.gmra.mxu0 %v6211_v57  ;;  %v1519_v57 = vld [vmem:[#allocation2 + $0x9b8] sm:$0xff] }
 0x7d5   : > { %v1178_v58 = vpop.f32.mrf.mxu0  ;;  %6249 = vmatprep.mubr.msk.f32.mxu0 %vm1105_vm2, %v7585_v61 }
 0x7d6   : > { %1301 = vmatmul.mubr.f32.vlgmr.msra.gmra.mxu1 %v1178_v58  ;;  %v1503_v58 = vld [vmem:[#allocation2 + $0x938] sm:$0xff] }
 0x7d7   : > { %6284 = vmatprep.mubr.msk.f32.mxu1 %vm7437_vm1, %v7436_v8  ;;  %6253 = vmatpush3.msra.mxu1 %v1538_v21  ;;  %v1491_v21 = vld [vmem:[#allocation2 + $0x8d8] sm:$0xff] }
 0x7d8   : > { %6254 = vmatprep.subr.mxu1 %v7436_v8 }
 0x7d9   : > { %6255 = vmatpush3.msra.mxu1 %v1537_v22  ;;  %v1523_v22 = vld [vmem:[#allocation2 + $0x9d8] sm:$0xff] }
 0x7da   : > { %6256 = vmatprep.subr.mxu1 %v7436_v8 }
 0x7db   : > { %6257 = vmatpush3.msra.mxu1 %v1536_v12  ;;  %v1836_v12 = vld [vmem:[#allocation2 + $0x498] sm:$0xff] }
 0x7dc   : > { %6258 = vmatprep.subr.mxu1 %v7436_v8 }
 0x7dd   : > { %6259 = vmatpush3.msra.mxu1 %v1535_v23  ;;  %v1820_v23 = vld [vmem:[#allocation2 + $0x418] sm:$0xff] }
 0x7de   : > { %6260 = vmatprep.subr.mxu1 %v7436_v8 }
 0x7df   : > { %6261 = vmatpush3.msra.mxu1 %v1534_v24 }
 0x7e0   : > { %6262 = vmatprep.subr.mxu1 %v7436_v8 }
 0x7e1   : > { %6263 = vmatpush3.msra.mxu1 %v1533_v25  ;;  %v1835_v25 = vld [vmem:[#allocation2 + $0x490] sm:$0xff] }
 0x7e2   : > { %6264 = vmatprep.subr.mxu1 %v7436_v8 }
 0x7e3   : > { %6265 = vmatpush3.msra.mxu1 %v1532_v26 }
 0x7e4   : > { %6266 = vmatprep.subr.mxu1 %v7436_v8 }
 0x7e5   : > { %6267 = vmatpush3.msra.mxu1 %v1531_v27  ;;  %v1819_v27 = vld [vmem:[#allocation2 + $0x410] sm:$0xff] }
 0x7e6   : > { %6268 = vmatprep.subr.mxu1 %v7436_v8 }
 0x7e7   : > { %6269 = vmatpush3.msra.mxu1 %v1530_v28  ;;  %v1834_v28 = vld [vmem:[#allocation2 + $0x488] sm:$0xff] }
 0x7e8   : > { %6270 = vmatprep.subr.mxu1 %v7436_v8 }
 0x7e9   : > { %6271 = vmatpush3.msra.mxu1 %v1529_v29  ;;  %v6936_v29 = vld [vmem:[#allocation2] sm:$0xff] }
 0x7ea   : > { %6272 = vmatprep.subr.mxu1 %v7436_v8 }
 0x7eb   : > { %6273 = vmatpush3.msra.mxu1 %v1528_v30  ;;  %v1818_v30 = vld [vmem:[#allocation2 + $0x408] sm:$0xff] }
 0x7ec   : > { %6274 = vmatprep.subr.mxu1 %v7436_v8 }
 0x7ed   : > { %6275 = vmatpush3.msra.mxu1 %v1527_v32  ;;  %v1817_v32 = vld [vmem:[#allocation2 + $0x400] sm:$0xff] }
 0x7ee   : > { %6276 = vmatprep.subr.mxu1 %v7436_v8 }
 0x7ef   : > { %6277 = vmatpush3.msra.mxu1 %v1526_v36  ;;  %v6937_v36 = vld [vmem:[#allocation2 + $0x8] sm:$0xff] }
 0x7f0   : > { %6278 = vmatprep.subr.mxu1 %v7436_v8 }
 0x7f1   : > { %6279 = vmatpush3.msra.mxu1 %v1525_v37  ;;  %v1832_v37 = vld [vmem:[#allocation2 + $0x478] sm:$0xff] }
 0x7f2   : > { %6280 = vmatprep.subr.mxu1 %v7436_v8 }
 0x7f3   : > { %6281 = vmatpush3.msra.mxu1 %v1524_v38  ;;  %v1816_v38 = vld [vmem:[#allocation2 + $0x3f8] sm:$0xff] }
 0x7f4   : > { %6282 = vmatprep.subr.mxu1 %v7436_v8 }
 0x7f5   : > { %6283 = vmatpush3.msra.mxu1 %v1523_v22  ;;  %v1843_v22 = vld [vmem:[#allocation2 + $0x4d0] sm:$0xff] }
 0x7f6   : > { %5347 = vmatprep.subr.mxu1 %v1836_v12  ;;  %v1842_v12 = vld [vmem:[#allocation2 + $0x4c8] sm:$0xff] }
 0x894   : > { %v1372_v59 = vpop.f32.mrf.mxu0 }
 0x896   : > { %v5266_v60 = vpop.f32.mrf.mxu1  ;;  %v6246_v62 = vpop.f32.mrf.mxu0 }
 0x897   : > { %v1517_v62 = vld [vmem:[#allocation2 + $0x9a8] sm:$0xff] }
 0x898   : > { %v5267_v1 = vpop.f32.mrf.mxu1 }
 0x899   : > { %v5268_v4 = vadd.f32 %v5267_v1, %v5266_v60  ;;  %v1502_v60 = vld [vmem:[#allocation2 + $0x930] sm:$0xff]  ;;  %v1516_v1 = vld [vmem:[#allocation2 + $0x9a0] sm:$0xff] }
 0x89b   : > { %v1303_v5 = vadd.f32 %v5268_v4, %v1235_v63  ;;  %v1501_v63 = vld [vmem:[#allocation2 + $0x928] sm:$0xff]  ;;  %v1500_v4 = vld [vmem:[#allocation2 + $0x920] sm:$0xff] }
 0x89d   : > { %v7616_v6 = vadd.f32 %v1372_v59, %v1303_v5  ;;  %v1518_v59 = vld [vmem:[#allocation2 + $0x9b0] sm:$0xff]  ;;  %v1515_v5 = vld [vmem:[#allocation2 + $0x998] sm:$0xff] }
 0x89f   : > { %1376 = vadd.xlane.f32.xlu0 %v7616_v6  ;;  %v1388_v9 = vmul.f32 %v7616_v6, %v7616_v6 }
 0x8a1   : > { %1389 = vadd.xlane.f32.xlu1 %v1388_v9  ;;  %v1514_v9 = vld [vmem:[#allocation2 + $0x990] sm:$0xff] }
 0x928   : > { %v1377_v11 = vpop.xlane.xlu0 %1376 }
 0x929   : > { %v1378_v2 = vrot.slane %v1377_v11, 4 }
 0x92a   : > { %v1390_v13 = vpop.xlane.xlu1 %1389 }
 0x92b   : > { %v1379_v14 = vadd.f32 %v1378_v2, %v1377_v11  ;;  %v1391_v15 = vrot.slane %v1390_v13, 4  ;;  %v1498_v11 = vld [vmem:[#allocation2 + $0x910] sm:$0xff]  ;;  %v1513_v2 = vld [vmem:[#allocation2 + $0x988] sm:$0xff] }
 0x92d   : > { %v1380_v16 = vrot.slane %v1379_v14, 2  ;;  %v1392_v0 = vadd.f32 %v1391_v15, %v1390_v13  ;;  %v1497_v13 = vld [vmem:[#allocation2 + $0x908] sm:$0xff]  ;;  %v1496_v15 = vld [vmem:[#allocation2 + $0x900] sm:$0xff] }
 0x92f   : > { %v1393_v10 = vrot.slane %v1392_v0, 2  ;;  %v1381_v17 = vadd.f32 %v1380_v16, %v1379_v14  ;;  %v1512_v14 = vld [vmem:[#allocation2 + $0x980] sm:$0xff]  ;;  %v1511_v16 = vld [vmem:[#allocation2 + $0x978] sm:$0xff] }
 0x931   : > { %v1382_v18 = vrot.slane %v1381_v17, 1  ;;  %v1394_v19 = vadd.f32 %v1393_v10, %v1392_v0  ;;  %v1495_v0 = vld [vmem:[#allocation2 + $0x8f8] sm:$0xff]  ;;  %v1510_v10 = vld [vmem:[#allocation2 + $0x970] sm:$0xff] }
 0x933   : > { %v1383_v20 = vadd.f32 %v1382_v18, %v1381_v17  ;;  %v1395_v3 = vrot.slane %v1394_v19, 1  ;;  %v1494_v17 = vld [vmem:[#allocation2 + $0x8f0] sm:$0xff]  ;;  %v1509_v18 = vld [vmem:[#allocation2 + $0x968] sm:$0xff] }
 0x935   : > { %6841 = vpush %v1383_v20  ;;  %v1396_v7 = vadd.f32 %v1395_v3, %v1394_v19  ;;  %v1493_v19 = vld [vmem:[#allocation2 + $0x8e8] sm:$0xff]  ;;  %v1508_v20 = vld [vmem:[#allocation2 + $0x960] sm:$0xff] }
 0x936   : > { %v1492_v3 = vld [vmem:[#allocation2 + $0x8e0] sm:$0xff] }
 0x937   : > { %6843 = vpush %v1396_v7  ;;  %v1507_v7 = vld [vmem:[#allocation2 + $0x958] sm:$0xff] }
 0x966   : > { %s6842_s13 = spop %6841 }
 0x967   : > { %s7626_s14 = smul.f32 0.0009765625, %s6842_s13 }
 0x968   : > { %s6844_s15 = spop %6843 }
 0x969   : > { %s1401_s16 = smul.f32 %s7626_s14, %s7626_s14  ;;  %v1403_v40 = vstv %s7626_s14 }
 0x96a   : > { %s1400_s17 = smul.f32 0.0009765625, %s6844_s15  ;;  %v1404_v41 = vsub.f32 %v7616_v6, %v1403_v40  ;;  %v1499_v6 = vld [vmem:[#allocation2 + $0x918] sm:$0xff]  ;;  %v1831_v40 = vld [vmem:[#allocation2 + $0x470] sm:$0xff] }
 0x96c   : > { %s1402_s18 = ssub.f32 %s1400_s17, %s1401_s16 }
 0x96e   : > { %s1405_s19 = sadd.f32 1e-05, %s1402_s18 }
 0x970   : > { %v1406_v31 = vstv %s1405_s19 }
 0x971   : > { %6916 = vrsqrt.f32 %v1406_v31  ;;  %v1833_v31 = vld [vmem:[#allocation2 + $0x480] sm:$0xff] }
 0x97e   : > { %v6917_v39 = vpop.eup %6916 }
 0x97f   : > { %6845 = vpush %v6917_v39  ;;  %v6938_v39 = vld [vmem:[#allocation2 + $0x10] sm:$0xff] }
 0x9b0   : > { %s6846_s20 = spop %6845 }
 0x9b1   : > { %v1409_v42 = vstv %s6846_s20 }
 0x9b2   : > { %v1410_v44 = vmul.f32 %v1409_v42, %v1404_v41  ;;  %v1815_v41 = vld [vmem:[#allocation2 + $0x3f0] sm:$0xff]  ;;  %v1830_v42 = vld [vmem:[#allocation2 + $0x468] sm:$0xff] }
 0x9b4   : > { %v1412_v46 = vmul.f32 %v1411_v43, %v1410_v44  ;;  %v6939_v43 = vld [vmem:[#allocation2 + $0x18] sm:$0xff]  ;;  %v1829_v44 = vld [vmem:[#allocation2 + $0x460] sm:$0xff] }
 0x9b6   : > { %v1414_v49 = vadd.f32 %v1413_v45, %v1412_v46  ;;  %v1813_v45 = vld [vmem:[#allocation2 + $0x3e0] sm:$0xff]  ;;  %v1828_v46 = vld [vmem:[#allocation2 + $0x458] sm:$0xff] }
 0x9b8   : > { %v1415_v50 = vmax.f32 %v1414_v49, 0.0  ;;  %v1812_v49 = vld [vmem:[#allocation2 + $0x3d8] sm:$0xff] }
 0x9ba   : > { %6247 = vmatprep.subr.mxu0 %v1415_v50 }
 0x9bb   : > { %6248 = vmatpush3.msra.mxu0 %v1415_v50 }
 0x9bc   : > { %6250 = vmatmul.mubr.msk.f32.vlgmr.msra.gmra.mxu0 %vm1105_vm2, %v7589_v33  ;;  %5289 = vmatprep.subr.mxu0 %v1522_v51  ;;  %v1811_v51 = vld [vmem:[#allocation2 + $0x3d0] sm:$0xff] }
 0x9bd   : > { %5290 = vmatpush3.msra.mxu0 %v1506_v52  ;;  %1604 = vmatprep.mubr.f32.mxu0 %v1415_v50  ;;  %v1827_v50 = vld [vmem:[#allocation2 + $0x450] sm:$0xff]  ;;  %v1826_v52 = vld [vmem:[#allocation2 + $0x448] sm:$0xff] }
 0x9be   : > { %5291 = vmatprep.subr.mxu0 %v1521_v53  ;;  %v1810_v53 = vld [vmem:[#allocation2 + $0x3c8] sm:$0xff] }
 0x9bf   : > { %5292 = vmatpush3.msra.mxu0 %v1505_v54  ;;  %v1825_v54 = vld [vmem:[#allocation2 + $0x440] sm:$0xff] }
 0x9c0   : > { %5293 = vmatprep.subr.mxu0 %v1520_v55  ;;  %v1809_v55 = vld [vmem:[#allocation2 + $0x3c0] sm:$0xff] }
 0x9c1   : > { %5294 = vmatpush3.msra.mxu0 %v1504_v56  ;;  %v1824_v56 = vld [vmem:[#allocation2 + $0x438] sm:$0xff] }
 0x9c2   : > { %5295 = vmatprep.subr.mxu0 %v1519_v57  ;;  %v1808_v57 = vld [vmem:[#allocation2 + $0x3b8] sm:$0xff] }
 0x9c3   : > { %5296 = vmatpush3.msra.mxu0 %v1503_v58  ;;  %v1823_v58 = vld [vmem:[#allocation2 + $0x430] sm:$0xff] }
 0x9c4   : > { %5297 = vmatprep.subr.mxu0 %v1518_v59  ;;  %v1807_v59 = vld [vmem:[#allocation2 + $0x3b0] sm:$0xff] }
 0x9c5   : > { %5298 = vmatpush3.msra.mxu0 %v1502_v60  ;;  %v1822_v60 = vld [vmem:[#allocation2 + $0x428] sm:$0xff] }
 0x9c6   : > { %5299 = vmatprep.subr.mxu0 %v1517_v62  ;;  %v1806_v62 = vld [vmem:[#allocation2 + $0x3a8] sm:$0xff] }
 0x9c7   : > { %5300 = vmatpush3.msra.mxu0 %v1501_v63  ;;  %v1821_v63 = vld [vmem:[#allocation2 + $0x420] sm:$0xff] }
 0x9c8   : > { %5301 = vmatprep.subr.mxu0 %v1516_v1  ;;  %v1805_v1 = vld [vmem:[#allocation2 + $0x3a0] sm:$0xff] }
 0x9c9   : > { %5302 = vmatpush3.msra.mxu0 %v1500_v4 }
 0x9ca   : > { %5303 = vmatprep.subr.mxu0 %v1515_v5 }
 0x9cb   : > { %5304 = vmatpush3.msra.mxu0 %v1499_v6 }
 0x9cc   : > { %5305 = vmatprep.subr.mxu0 %v1514_v9  ;;  %v1539_v9 = vld [vmem:[#allocation2 + $0xa58] sm:$0xff] }
 0x9cd   : > { %5306 = vmatpush3.msra.mxu0 %v1498_v11 }
 0x9ce   : > { %5307 = vmatprep.subr.mxu0 %v1513_v2 }
 0x9cf   : > { %5308 = vmatpush3.msra.mxu0 %v1497_v13 }
 0x9d0   : > { %5309 = vmatprep.subr.mxu0 %v1512_v14 }
 0x9d1   : > { %5310 = vmatpush3.msra.mxu0 %v1496_v15 }
 0x9d2   : > { %5311 = vmatprep.subr.mxu0 %v1511_v16 }
 0x9d3   : > { %5312 = vmatpush3.msra.mxu0 %v1495_v0 }
 0x9d4   : > { %5313 = vmatprep.subr.mxu0 %v1510_v10  ;;  %v1852_v10 = vld [vmem:[#allocation2 + $0x518] sm:$0xff] }
 0x9d5   : > { %5314 = vmatpush3.msra.mxu0 %v1494_v17  ;;  %v1851_v17 = vld [vmem:[#allocation2 + $0x510] sm:$0xff] }
 0x9d6   : > { %5315 = vmatprep.subr.mxu0 %v1509_v18  ;;  %v1850_v18 = vld [vmem:[#allocation2 + $0x508] sm:$0xff] }
 0x9d7   : > { %5316 = vmatpush3.msra.mxu0 %v1493_v19  ;;  %v1849_v19 = vld [vmem:[#allocation2 + $0x500] sm:$0xff] }
 0x9d8   : > { %5317 = vmatprep.subr.mxu0 %v1508_v20  ;;  %v1848_v20 = vld [vmem:[#allocation2 + $0x4f8] sm:$0xff] }
 0x9d9   : > { %5318 = vmatpush3.msra.mxu0 %v1492_v3  ;;  %v1846_v3 = vld [vmem:[#allocation2 + $0x4e8] sm:$0xff] }
 0x9da   : > { %5319 = vmatprep.subr.mxu0 %v1507_v7  ;;  %v1845_v7 = vld [vmem:[#allocation2 + $0x4e0] sm:$0xff] }
 0x9db   : > { %5320 = vmatpush3.msra.mxu0 %v1491_v21  ;;  %v1844_v21 = vld [vmem:[#allocation2 + $0x4d8] sm:$0xff] }
 0x9dc   : > { %6287 = vmatprep.subr.mxu0 %v7554_v34 }
 0xa7c   : > { %v6251_v24 = vpop.f32.mrf.mxu0 }
 0xa7d   : > { %6285 = vmatmul.mubr.f32.vlgmr.msra.gmra.mxu1 %v6251_v24  ;;  %v1840_v24 = vld [vmem:[#allocation2 + $0x4b8] sm:$0xff] }
 0xa7e   : > { %v1482_v26 = vpop.f32.mrf.mxu0  ;;  %1919 = vmatprep.mubr.f32.mxu1 %v7556_v35  ;;  %5348 = vmatpush3.msra.mxu1 %v1820_v23  ;;  %v1841_v23 = vld [vmem:[#allocation2 + $0x4c0] sm:$0xff] }
 0xa7f   : > { %1605 = vmatmul.mubr.f32.vlgmr.msra.gmra.mxu0 %v1482_v26  ;;  %5349 = vmatprep.subr.mxu1 %v1835_v25  ;;  %v1839_v25 = vld [vmem:[#allocation2 + $0x4b0] sm:$0xff]  ;;  %v1838_v26 = vld [vmem:[#allocation2 + $0x4a8] sm:$0xff] }
 0xa80   : > { %6288 = vmatpush3.msra.mxu0 %v7554_v34  ;;  %6291 = vmatprep.mubr.msk.f32.mxu0 %vm163_vm0, %v6936_v29 }
 0xa81   : > { %6289 = vmatprep.subr.mxu0 %v7556_v35  ;;  %5350 = vmatpush3.msra.mxu1 %v1819_v27 }
 0xa82   : > { %6290 = vmatpush3.msra.mxu0 %v7556_v35  ;;  %5351 = vmatprep.subr.mxu1 %v1834_v28  ;;  %v1814_v35 = vld [vmem:[#allocation2 + $0x3e8] sm:$0xff] }
 0xa83   : > { %6292 = vmatmul.mubr.msk.f32.vlgmr.msra.gmra.mxu0 %vm163_vm0, %v6937_v36  ;;  %5352 = vmatpush3.msra.mxu1 %v1818_v30 }
 0xa84   : > { %5353 = vmatprep.subr.mxu1 %v1833_v31  ;;  %6294 = vmatprep.mubr.msk.f32.mxu0 %vm163_vm0, %v6938_v39 }
 0xa85   : > { %5354 = vmatpush3.msra.mxu1 %v1817_v32  ;;  %6297 = vmatprep.subr.mxu0 %v1852_v10 }
 0xa86   : > { %5355 = vmatprep.subr.mxu1 %v1832_v37  ;;  %6298 = vmatpush3.msra.mxu0 %v1852_v10  ;;  %v2084_v10 = vld [vmem:[#allocation2 + $0x550] sm:$0xff] }
 0xa87   : > { %5356 = vmatpush3.msra.mxu1 %v1816_v38  ;;  %6295 = vmatmul.mubr.msk.f32.gmra.mxu0 %vm163_vm0, %v6939_v43 }
 0xa88   : > { %5357 = vmatprep.subr.mxu1 %v1831_v40  ;;  %6299 = vmatprep.subr.mxu0 %v1851_v17  ;;  %v1837_v40 = vld [vmem:[#allocation2 + $0x4a0] sm:$0xff] }
 0xa89   : > { %5358 = vmatpush3.msra.mxu1 %v1815_v41  ;;  %6300 = vmatpush3.msra.mxu0 %v1851_v17  ;;  %v2099_v17 = vld [vmem:[#allocation2 + $0x5c8] sm:$0xff] }
 0xa8a   : > { %5359 = vmatprep.subr.mxu1 %v1830_v42  ;;  %6301 = vmatprep.subr.mxu0 %v1850_v18 }
 0xa8b   : > { %5360 = vmatpush3.msra.mxu1 %v1814_v35  ;;  %6302 = vmatpush3.msra.mxu0 %v1850_v18  ;;  %v2083_v18 = vld [vmem:[#allocation2 + $0x548] sm:$0xff] }
 0xa8c   : > { %5361 = vmatprep.subr.mxu1 %v1829_v44  ;;  %6303 = vmatprep.subr.mxu0 %v1849_v19 }
 0xa8d   : > { %5362 = vmatpush3.msra.mxu1 %v1813_v45  ;;  %6304 = vmatpush3.msra.mxu0 %v1849_v19  ;;  %v2098_v19 = vld [vmem:[#allocation2 + $0x5c0] sm:$0xff] }
 0xa8e   : > { %5363 = vmatprep.subr.mxu1 %v1828_v46  ;;  %6305 = vmatprep.subr.mxu0 %v1848_v20  ;;  %v2111_v46 = vld [vmem:[#allocation2 + $0x628] sm:$0xff] }
 0xa8f   : > { %5364 = vmatpush3.msra.mxu1 %v1812_v49  ;;  %6306 = vmatpush3.msra.mxu0 %v1848_v20  ;;  %v2095_v49 = vld [vmem:[#allocation2 + $0x5a8] sm:$0xff]  ;;  %v2082_v20 = vld [vmem:[#allocation2 + $0x540] sm:$0xff] }
 0xa90   : > { %5365 = vmatprep.subr.mxu1 %v1827_v50  ;;  %v2110_v50 = vld [vmem:[#allocation2 + $0x620] sm:$0xff] }
 0xa91   : > { %5366 = vmatpush3.msra.mxu1 %v1811_v51  ;;  %v2094_v51 = vld [vmem:[#allocation2 + $0x5a0] sm:$0xff] }
 0xa92   : > { %5367 = vmatprep.subr.mxu1 %v1826_v52  ;;  %v2109_v52 = vld [vmem:[#allocation2 + $0x618] sm:$0xff] }
 0xa93   : > { %5368 = vmatpush3.msra.mxu1 %v1810_v53  ;;  %v2093_v53 = vld [vmem:[#allocation2 + $0x598] sm:$0xff] }
 0xa94   : > { %5369 = vmatprep.subr.mxu1 %v1825_v54  ;;  %v2108_v54 = vld [vmem:[#allocation2 + $0x610] sm:$0xff] }
 0xa95   : > { %5370 = vmatpush3.msra.mxu1 %v1809_v55  ;;  %v2092_v55 = vld [vmem:[#allocation2 + $0x590] sm:$0xff] }
 0xa96   : > { %5371 = vmatprep.subr.mxu1 %v1824_v56  ;;  %v2107_v56 = vld [vmem:[#allocation2 + $0x608] sm:$0xff] }
 0xa97   : > { %5372 = vmatpush3.msra.mxu1 %v1808_v57  ;;  %v2106_v57 = vld [vmem:[#allocation2 + $0x600] sm:$0xff] }
 0xa98   : > { %5373 = vmatprep.subr.mxu1 %v1823_v58  ;;  %v2090_v58 = vld [vmem:[#allocation2 + $0x580] sm:$0xff] }
 0xa99   : > { %5374 = vmatpush3.msra.mxu1 %v1807_v59  ;;  %v2105_v59 = vld [vmem:[#allocation2 + $0x5f8] sm:$0xff] }
 0xa9a   : > { %5375 = vmatprep.subr.mxu1 %v1822_v60  ;;  %v2089_v60 = vld [vmem:[#allocation2 + $0x578] sm:$0xff] }
 0xa9b   : > { %5376 = vmatpush3.msra.mxu1 %v1806_v62  ;;  %v2104_v62 = vld [vmem:[#allocation2 + $0x5f0] sm:$0xff] }
 0xa9c   : > { %5377 = vmatprep.subr.mxu1 %v1821_v63  ;;  %v2088_v63 = vld [vmem:[#allocation2 + $0x570] sm:$0xff] }
 0xa9d   : > { %5378 = vmatpush3.msra.mxu1 %v1805_v1  ;;  %v2103_v1 = vld [vmem:[#allocation2 + $0x5e8] sm:$0xff] }
 0xa9e   : > { %5406 = vmatprep.subr.mxu1 %v2111_v46  ;;  %v2189_v46 = vld [vmem:[#allocation2 + $0x668] sm:$0xff] }
 0xb3d   : > { %v1676_v4 = vpop.f32.mrf.mxu1 }
 0xb3f   : > { %v5321_v5 = vpop.f32.mrf.mxu0  ;;  %v6286_v6 = vpop.f32.mrf.mxu1 }
 0xb40   : > { %v2086_v6 = vld [vmem:[#allocation2 + $0x560] sm:$0xff] }
 0xb41   : > { %v5322_v11 = vpop.f32.mrf.mxu0 }
 0xb42   : > { %v5323_v2 = vadd.f32 %v5322_v11, %v5321_v5  ;;  %v2102_v5 = vld [vmem:[#allocation2 + $0x5e0] sm:$0xff] }
 0xb43   : > { %v6293_v13 = vpop.f32.mrf.mxu0 }
 0xb44   : > { %v1607_v14 = vadd.f32 %v5323_v2, %v1539_v9  ;;  %v2101_v9 = vld [vmem:[#allocation2 + $0x5d8] sm:$0xff] }
 0xb45   : > { %v1786_v15 = vpop.f32.mrf.mxu0 }
 0xb46   : > { %1920 = vmatmul.mubr.f32.vlgmr.msra.gmra.mxu1 %v1786_v15  ;;  %v7653_v16 = vadd.f32 %v1676_v4, %v1607_v14  ;;  %v2087_v4 = vld [vmem:[#allocation2 + $0x568] sm:$0xff]  ;;  %v2085_v15 = vld [vmem:[#allocation2 + $0x558] sm:$0xff] }
 0xb47   : > { %1924 = vmatprep.mubr.f32.mxu1 %v7554_v34  ;;  %v1847_v34 = vld [vmem:[#allocation2 + $0x4f0] sm:$0xff]  ;;  %v6296_v37 = vpop.f32.mrf.mxu0  ;;  %5407 = vmatpush3.msra.mxu1 %v2095_v49  ;;  %v2204_v49 = vld [vmem:[#allocation2 + $0x6e0] sm:$0xff] }
 0xb48   : > { %1680 = vadd.xlane.f32.xlu0 %v7653_v16  ;;  %v1692_v0 = vmul.f32 %v7653_v16, %v7653_v16  ;;  %6307 = vmatprep.subr.mxu0 %v1847_v34 }
 0xb49   : > { %6308 = vmatpush3.msra.mxu0 %v1847_v34  ;;  %v1796_v43 = vpop.f32.mrf.mxu0  ;;  %5408 = vmatprep.subr.mxu1 %v2110_v50  ;;  %v2097_v34 = vld [vmem:[#allocation2 + $0x5b8] sm:$0xff]  ;;  %v2188_v50 = vld [vmem:[#allocation2 + $0x660] sm:$0xff] }
 0xb4a   : > { %1693 = vadd.xlane.f32.xlu1 %v1692_v0  ;;  %1925 = vmatmul.mubr.f32.gmra.mxu1 %v6293_v13  ;;  %v2100_v0 = vld [vmem:[#allocation2 + $0x5d0] sm:$0xff] }
 0xb4b   : > { %6309 = vmatprep.subr.mxu0 %v1846_v3  ;;  %6329 = vmatprep.mubr.f32.mxu0 %v1796_v43  ;;  %v2191_v43 = vld [vmem:[#allocation2 + $0x678] sm:$0xff] }
 0xb4c   : > { %6310 = vmatpush3.msra.mxu0 %v1846_v3  ;;  %5409 = vmatpush3.msra.mxu1 %v2094_v51  ;;  %v2081_v3 = vld [vmem:[#allocation2 + $0x538] sm:$0xff] }
 0xb4d   : > { %6311 = vmatprep.subr.mxu0 %v1845_v7  ;;  %5410 = vmatprep.subr.mxu1 %v2109_v52  ;;  %v2203_v51 = vld [vmem:[#allocation2 + $0x6d8] sm:$0xff] }
 0xb4e   : > { %6312 = vmatpush3.msra.mxu0 %v1845_v7  ;;  %5411 = vmatpush3.msra.mxu1 %v2093_v53  ;;  %v2187_v52 = vld [vmem:[#allocation2 + $0x658] sm:$0xff]  ;;  %v2202_v53 = vld [vmem:[#allocation2 + $0x6d0] sm:$0xff] }
 0xb4f   : > { %6313 = vmatprep.subr.mxu0 %v1844_v21  ;;  %5412 = vmatprep.subr.mxu1 %v2108_v54  ;;  %v2186_v54 = vld [vmem:[#allocation2 + $0x650] sm:$0xff] }
 0xb50   : > { %6314 = vmatpush3.msra.mxu0 %v1844_v21  ;;  %5413 = vmatpush3.msra.mxu1 %v2092_v55  ;;  %v2201_v55 = vld [vmem:[#allocation2 + $0x6c8] sm:$0xff] }
 0xb51   : > { %6315 = vmatprep.subr.mxu0 %v1843_v22  ;;  %5414 = vmatprep.subr.mxu1 %v2107_v56  ;;  %v2185_v56 = vld [vmem:[#allocation2 + $0x648] sm:$0xff] }
 0xb52   : > { %6316 = vmatpush3.msra.mxu0 %v1843_v22 }
 0xb53   : > { %6317 = vmatprep.subr.mxu0 %v1842_v12 }
 0xb54   : > { %6318 = vmatpush3.msra.mxu0 %v1842_v12 }
 0xb55   : > { %6319 = vmatprep.subr.mxu0 %v1841_v23 }
 0xb56   : > { %6320 = vmatpush3.msra.mxu0 %v1841_v23  ;;  %v1715_v23 = vld [vmem:[#allocation2 + $0xa60] sm:$0xff] }
 0xb57   : > { %6321 = vmatprep.subr.mxu0 %v1840_v24 }
 0xb58   : > { %6322 = vmatpush3.msra.mxu0 %v1840_v24 }
 0xb59   : > { %6323 = vmatprep.subr.mxu0 %v1839_v25 }
 0xb5a   : > { %6324 = vmatpush3.msra.mxu0 %v1839_v25  ;;  %v1717_v25 = vld [vmem:[#allocation2 + $0xa68] sm:$0xff] }
 0xb5b   : > { %6325 = vmatprep.subr.mxu0 %v1838_v26 }
 0xb5c   : > { %6326 = vmatpush3.msra.mxu0 %v1838_v26 }
 0xb5d   : > { %6327 = vmatprep.subr.mxu0 %v1837_v40 }
 0xb5e   : > { %6328 = vmatpush3.msra.mxu0 %v1837_v40  ;;  %v2193_v40 = vld [vmem:[#allocation2 + $0x688] sm:$0xff] }
 0xb5f   : > { %6330 = vmatmul.mubr.f32.vlgmr.msra.gmra.mxu0 %v6296_v37  ;;  %v2210_v37 = vld [vmem:[#allocation2 + $0x710] sm:$0xff] }
 0xb60   : > { %6334 = vmatprep.mubr.msk.f32.mxu0 %vm1105_vm2, %v7585_v61  ;;  %v2091_v61 = vld [vmem:[#allocation2 + $0x588] sm:$0xff] }
 0xb61   : > { %5415 = vmatpush3.msra.mxu1 %v2091_v61  ;;  %v2200_v61 = vld [vmem:[#allocation2 + $0x6c0] sm:$0xff] }
 0xb62   : > { %5416 = vmatprep.subr.mxu1 %v2106_v57  ;;  %v2184_v57 = vld [vmem:[#allocation2 + $0x640] sm:$0xff] }
 0xb63   : > { %5417 = vmatpush3.msra.mxu1 %v2090_v58  ;;  %v2199_v58 = vld [vmem:[#allocation2 + $0x6b8] sm:$0xff] }
 0xb64   : > { %5418 = vmatprep.subr.mxu1 %v2105_v59  ;;  %v2183_v59 = vld [vmem:[#allocation2 + $0x638] sm:$0xff] }
 0xb65   : > { %5419 = vmatpush3.msra.mxu1 %v2089_v60 }
 0xb66   : > { %5420 = vmatprep.subr.mxu1 %v2104_v62 }
 0xb67   : > { %5421 = vmatpush3.msra.mxu1 %v2088_v63 }
 0xb68   : > { %5422 = vmatprep.subr.mxu1 %v2103_v1  ;;  %v1854_v1 = vld [vmem:[#allocation2 + $0x528] sm:$0xff] }
 0xb69   : > { %5423 = vmatpush3.msra.mxu1 %v2087_v4 }
 0xb6a   : > { %5424 = vmatprep.subr.mxu1 %v2102_v5 }
 0xb6b   : > { %5425 = vmatpush3.msra.mxu1 %v2086_v6 }
 0xb6c   : > { %5426 = vmatprep.subr.mxu1 %v2101_v9  ;;  %v2096_v9 = vld [vmem:[#allocation2 + $0x5b0] sm:$0xff] }
 0xb6d   : > { %5427 = vmatpush3.msra.mxu1 %v2085_v15 }
 0xb6e   : > { %5428 = vmatprep.subr.mxu1 %v2100_v0 }
 0xb6f   : > { %5429 = vmatpush3.msra.mxu1 %v2084_v10  ;;  %v6940_v10 = vld [vmem:[#allocation2 + $0xbf8] sm:$0xff] }
 0xb70   : > { %5430 = vmatprep.subr.mxu1 %v2099_v17  ;;  %v2284_v17 = vld [vmem:[#allocation2 + $0x30] sm:$0xff] }
 0xb71   : > { %5431 = vmatpush3.msra.mxu1 %v2083_v18 }
 0xb72   : > { %5432 = vmatprep.subr.mxu1 %v2098_v19 }
 0xb73   : > { %5433 = vmatpush3.msra.mxu1 %v2082_v20 }
 0xb74   : > { %5434 = vmatprep.subr.mxu1 %v2097_v34 }
 0xb75   : > { %5435 = vmatpush3.msra.mxu1 %v2081_v3 }
 0xb76   : > { %5436 = vmatprep.subr.mxu1 %v2096_v9 }
 0xbd1   : > { %v1681_v27 = vpop.xlane.xlu0 %1680 }
 0xbd2   : > { %v1682_v28 = vrot.slane %v1681_v27, 4 }
 0xbd3   : > { %v1694_v29 = vpop.xlane.xlu1 %1693 }
 0xbd4   : > { %v1683_v30 = vadd.f32 %v1682_v28, %v1681_v27  ;;  %v1695_v31 = vrot.slane %v1694_v29, 4 }
 0xbd6   : > { %v1684_v32 = vrot.slane %v1683_v30, 2  ;;  %v1696_v36 = vadd.f32 %v1695_v31, %v1694_v29  ;;  %v2213_v29 = vld [vmem:[#allocation2 + $0x728] sm:$0xff]  ;;  %v2212_v31 = vld [vmem:[#allocation2 + $0x720] sm:$0xff] }
 0xbd8   : > { %v1697_v38 = vrot.slane %v1696_v36, 2  ;;  %v1685_v39 = vadd.f32 %v1684_v32, %v1683_v30  ;;  %v2197_v30 = vld [vmem:[#allocation2 + $0x6a8] sm:$0xff]  ;;  %v2211_v32 = vld [vmem:[#allocation2 + $0x718] sm:$0xff] }
 0xbda   : > { %v1686_v41 = vrot.slane %v1685_v39, 1  ;;  %v1698_v42 = vadd.f32 %v1697_v38, %v1696_v36  ;;  %v2195_v36 = vld [vmem:[#allocation2 + $0x698] sm:$0xff]  ;;  %v2194_v38 = vld [vmem:[#allocation2 + $0x690] sm:$0xff] }
 0xbdc   : > { %v1687_v35 = vadd.f32 %v1686_v41, %v1685_v39  ;;  %v1699_v44 = vrot.slane %v1698_v42, 1  ;;  %v2209_v39 = vld [vmem:[#allocation2 + $0x708] sm:$0xff]  ;;  %v2208_v41 = vld [vmem:[#allocation2 + $0x700] sm:$0xff] }
 0xbde   : > { %6847 = vpush %v1687_v35  ;;  %v1700_v45 = vadd.f32 %v1699_v44, %v1698_v42  ;;  %v2192_v42 = vld [vmem:[#allocation2 + $0x680] sm:$0xff]  ;;  %v2206_v35 = vld [vmem:[#allocation2 + $0x6f0] sm:$0xff] }
 0xbdf   : > { %v2190_v44 = vld [vmem:[#allocation2 + $0x670] sm:$0xff] }
 0xbe0   : > { %6849 = vpush %v1700_v45  ;;  %v2205_v45 = vld [vmem:[#allocation2 + $0x6e8] sm:$0xff] }
 0xc06   : > { %v5379_v11 = vpop.f32.mrf.mxu1 }
 0xc08   : > { %v5380_v2 = vpop.f32.mrf.mxu1 }
 0xc09   : > { %v7661_v13 = vadd.f32 %v5380_v2, %v5379_v11  ;;  %v2198_v11 = vld [vmem:[#allocation2 + $0x6b0] sm:$0xff] }
 0xc0a   : > { %v5382_v60 = vpop.f32.mrf.mxu1  ;;  %v2080_v2 = vld [vmem:[#allocation2 + $0x530] sm:$0xff] }
 0xc0b   : > { %5437 = vmatpush3.msra.mxu1 %v2080_v2 }
 0xc0c   : > { %v5383_v62 = vpop.f32.mrf.mxu1 }
 0xc0d   : > { %v5384_v63 = vadd.f32 %v5383_v62, %v5382_v60 }
 0xc0f   : > { %s6848_s21 = spop %6847  ;;  %v1927_v4 = vadd.f32 %v5384_v63, %v1854_v1 }
 0xc10   : > { %s1691_s22 = smul.f32 0.0009765625, %s6848_s21 }
 0xc11   : > { %s6850_s23 = spop %6849 }
 0xc12   : > { %s1705_s24 = smul.f32 %s1691_s22, %s1691_s22  ;;  %v1707_v21 = vstv %s1691_s22 }
 0xc13   : > { %s1704_s25 = smul.f32 0.0009765625, %s6850_s23  ;;  %v1708_v22 = vsub.f32 %v7653_v16, %v1707_v21  ;;  %v2196_v16 = vld [vmem:[#allocation2 + $0x6a0] sm:$0xff] }
 0xc15   : > { %s1706_s26 = ssub.f32 %s1704_s25, %s1705_s24 }
 0xc17   : > { %s1709_s27 = sadd.f32 1e-05, %s1706_s26 }
 0xc19   : > { %v1710_v14 = vstv %s1709_s27 }
 0xc1a   : > { %6918 = vrsqrt.f32 %v1710_v14  ;;  %v2182_v14 = vld [vmem:[#allocation2 + $0x630] sm:$0xff] }
 0xc1f   : > { %v6331_v5 = vpop.f32.mrf.mxu0 }
 0xc20   : > { %v7670_v6 = vadd.f32 %v6331_v5, %v1927_v4 }
 0xc21   : > { %v7672_v15 = vpop.f32.mrf.mxu0 }
 0xc27   : > { %v6919_v7 = vpop.eup %6918 }
 0xc28   : > { %6851 = vpush %v6919_v7 }
 0xc59   : > { %s6852_s28 = spop %6851 }
 0xc5a   : > { %v1713_v12 = vstv %s6852_s28 }
 0xc5b   : > { %v1714_v24 = vmul.f32 %v1713_v12, %v1708_v22  ;;  %v2285_v22 = vld [vmem:[#allocation2 + $0x38] sm:$0xff]  ;;  %v6941_v12 = vld [vmem:[#allocation2 + $0xc80] sm:$0xff] }
 0xc5d   : > { %v1716_v26 = vmul.f32 %v1715_v23, %v1714_v24  ;;  %v6942_v23 = vld [vmem:[#allocation2 + $0xc78] sm:$0xff]  ;;  %v6943_v24 = vld [vmem:[#allocation2 + $0xc70] sm:$0xff] }
 0xc5f   : > { %v1718_v27 = vadd.f32 %v1717_v25, %v1716_v26  ;;  %v6944_v25 = vld [vmem:[#allocation2 + $0xc68] sm:$0xff]  ;;  %v6945_v26 = vld [vmem:[#allocation2 + $0xc60] sm:$0xff] }
 0xc61   : > { %v7664_v28 = vmax.f32 %v1718_v27, 0.0  ;;  %v6946_v27 = vld [vmem:[#allocation2 + $0xc58] sm:$0xff] }
 0xc63   : > { %6332 = vmatprep.subr.mxu0 %v7664_v28 }
 0xc64   : > { %6333 = vmatpush3.msra.mxu0 %v7664_v28 }
 0xc65   : > { %6335 = vmatmul.mubr.msk.f32.vlgmr.msra.gmra.mxu0 %vm1105_vm2, %v7589_v33  ;;  %5441 = vmatprep.subr.mxu0 %v2213_v29  ;;  %v2207_v33 = vld [vmem:[#allocation2 + $0x6f8] sm:$0xff]  ;;  %v6947_v29 = vld [vmem:[#allocation2 + $0xc50] sm:$0xff] }
 0xc66   : > { %5442 = vmatpush3.msra.mxu0 %v2197_v30  ;;  %v6948_v30 = vld [vmem:[#allocation2 + $0xc48] sm:$0xff] }
 0xc67   : > { %5443 = vmatprep.subr.mxu0 %v2212_v31  ;;  %v6949_v31 = vld [vmem:[#allocation2 + $0xc40] sm:$0xff] }
 0xc68   : > { %5444 = vmatpush3.msra.mxu0 %v2196_v16  ;;  %v6950_v16 = vld [vmem:[#allocation2 + $0xc38] sm:$0xff] }
 0xc69   : > { %5445 = vmatprep.subr.mxu0 %v2211_v32  ;;  %v6951_v32 = vld [vmem:[#allocation2 + $0xc30] sm:$0xff] }
 0xc6a   : > { %5446 = vmatpush3.msra.mxu0 %v2195_v36  ;;  %v6952_v36 = vld [vmem:[#allocation2 + $0xc28] sm:$0xff] }
 0xc6b   : > { %5447 = vmatprep.subr.mxu0 %v2210_v37  ;;  %v6953_v37 = vld [vmem:[#allocation2 + $0xc20] sm:$0xff] }
 0xc6c   : > { %5448 = vmatpush3.msra.mxu0 %v2194_v38  ;;  %v6954_v38 = vld [vmem:[#allocation2 + $0xc18] sm:$0xff] }
 0xc6d   : > { %5449 = vmatprep.subr.mxu0 %v2209_v39  ;;  %v6955_v39 = vld [vmem:[#allocation2 + $0xc10] sm:$0xff] }
 0xc6e   : > { %5450 = vmatpush3.msra.mxu0 %v2193_v40  ;;  %v6956_v40 = vld [vmem:[#allocation2 + $0xc08] sm:$0xff] }
 0xc6f   : > { %5451 = vmatprep.subr.mxu0 %v2208_v41  ;;  %v1853_v41 = vld [vmem:[#allocation2 + $0x520] sm:$0xff] }
 0xc70   : > { %5452 = vmatpush3.msra.mxu0 %v2192_v42  ;;  %v2287_v42 = vld [vmem:[#allocation2 + $0x738] sm:$0xff] }
 0xc71   : > { %5453 = vmatprep.subr.mxu0 %v2207_v33  ;;  %v1922_v33 = vadd.f32 %v7661_v13, %v1853_v41  ;;  %v6970_v41 = vld [vmem:[#allocation2 + $0xcc0] sm:$0xff] }
 0xc72   : > { %5454 = vmatpush3.msra.mxu0 %v2191_v43 }
 0xc73   : > { %5455 = vmatprep.subr.mxu0 %v2206_v35  ;;  %v2286_v35 = vld [vmem:[#allocation2 + $0x730] sm:$0xff] }
 0xc74   : > { %5456 = vmatpush3.msra.mxu0 %v2190_v44 }
 0xc75   : > { %5457 = vmatprep.subr.mxu0 %v2205_v45 }
 0xc76   : > { %5458 = vmatpush3.msra.mxu0 %v2189_v46  ;;  %v1997_v46 = vadd.f32 %v7672_v15, %v1922_v33  ;;  %v6972_v33 = vld [vmem:[#allocation2 + $0xcb0] sm:$0xff] }
 0xc77   : > { %5459 = vmatprep.subr.mxu0 %v2204_v49 }
 0xc78   : > { %5460 = vmatpush3.msra.mxu0 %v2188_v50 }
 0xc79   : > { %5461 = vmatprep.subr.mxu0 %v2203_v51 }
 0xc7a   : > { %5462 = vmatpush3.msra.mxu0 %v2187_v52 }
 0xc7b   : > { %5463 = vmatprep.subr.mxu0 %v2202_v53 }
 0xc7c   : > { %5464 = vmatpush3.msra.mxu0 %v2186_v54 }
 0xc7d   : > { %5465 = vmatprep.subr.mxu0 %v2201_v55 }
 0xc7e   : > { %5466 = vmatpush3.msra.mxu0 %v2185_v56 }
 0xc7f   : > { %5467 = vmatprep.subr.mxu0 %v2200_v61 }
 0xc80   : > { %5468 = vmatpush3.msra.mxu0 %v2184_v57 }
 0xc81   : > { %5469 = vmatprep.subr.mxu0 %v2199_v58 }
 0xc82   : > { %5470 = vmatpush3.msra.mxu0 %v2183_v59 }
 0xc83   : > { %5471 = vmatprep.subr.mxu0 %v2198_v11 }
 0xc84   : > { %5472 = vmatpush3.msra.mxu0 %v2182_v14 }
 0xd25   : > { %v7674_v0 = vpop.f32.mrf.mxu0 }
 0xd26   : > { %2176 = vmatprep.mubr.f32.mxu1 %v7674_v0  ;;  %2278 = vmatprep.mubr.f32.mxu0 %v7674_v0 }
 0xd27   : > { %2177 = vmatmul.mubr.f32.vlgmr.msra.gmra.mxu1 %v7664_v28  ;;  %2279 = vmatmul.mubr.f32.vlgmr.msra.gmra.mxu0 %v7664_v28  ;;  %v7682_v18 = vpop.f32.mrf.mxu0 }
 0xd28   : > { %6348 = vmatprep.mubr.msk.f32.mxu1 %vm163_vm0, %v6940_v10  ;;  %6341 = vmatprep.mubr.msk.f32.mxu0 %vm163_vm0, %v2284_v17 }
 0xde7   : > { %v5438_v19 = vpop.f32.mrf.mxu1  ;;  %v5473_v20 = vpop.f32.mrf.mxu0 }
 0xde9   : > { %v5439_v34 = vpop.f32.mrf.mxu1  ;;  %v5474_v3 = vpop.f32.mrf.mxu0 }
 0xdea   : > { %v5475_v7 = vadd.f32 %v5474_v3, %v5473_v20  ;;  %v5440_v21 = vadd.f32 %v5439_v34, %v5438_v19 }
 0xdec   : > { %6337 = vmatprep.subr.mxu0 %v5475_v7 }
 0xded   : > { %6338 = vmatpush3.msra.mxu0 %v5475_v7  ;;  %v6957_v7 = vld [vmem:[#allocation2 + $0x380] sm:$0xff] }
 0xdee   : > { %6339 = vmatprep.subr.mxu0 %v5440_v21 }
 0xdef   : > { %6340 = vmatpush3.msra.mxu0 %v5440_v21 }
 0xdf0   : > { %6342 = vmatmul.mubr.msk.f32.vlgmr.msra.gmra.mxu0 %vm163_vm0, %v2285_v22  ;;  %6351 = vmatprep.subr.mxu0 %v7436_v8  ;;  %v6958_v22 = vld [vmem:[#allocation2 + $0x388] sm:$0xff] }
 0xdf1   : > { %6352 = vmatpush3.msra.mxu0 %v6941_v12  ;;  %6383 = vmatprep.mubr.msk.f32.mxu0 %vm7437_vm1, %v7436_v8 }
 0xdf2   : > { %6353 = vmatprep.subr.mxu0 %v7436_v8 }
 0xdf3   : > { %6354 = vmatpush3.msra.mxu0 %v6942_v23  ;;  %v6959_v23 = vld [vmem:[#allocation2 + $0x390] sm:$0xff] }
 0xdf4   : > { %6355 = vmatprep.subr.mxu0 %v7436_v8 }
 0xdf5   : > { %6356 = vmatpush3.msra.mxu0 %v6943_v24 }
 0xdf6   : > { %6357 = vmatprep.subr.mxu0 %v7436_v8 }
 0xdf7   : > { %6358 = vmatpush3.msra.mxu0 %v6944_v25  ;;  %v6960_v25 = vld [vmem:[#allocation2 + $0x398] sm:$0xff] }
 0xdf8   : > { %6359 = vmatprep.subr.mxu0 %v7436_v8 }
 0xdf9   : > { %6360 = vmatpush3.msra.mxu0 %v6945_v26 }
 0xdfa   : > { %6361 = vmatprep.subr.mxu0 %v7436_v8 }
 0xdfb   : > { %6362 = vmatpush3.msra.mxu0 %v6946_v27 }
 0xdfc   : > { %6363 = vmatprep.subr.mxu0 %v7436_v8 }
 0xdfd   : > { %6364 = vmatpush3.msra.mxu0 %v6947_v29 }
 0xdfe   : > { %6365 = vmatprep.subr.mxu0 %v7436_v8 }
 0xdff   : > { %6366 = vmatpush3.msra.mxu0 %v6948_v30  ;;  %v6961_v30 = vld [vmem:[#allocation2 + $0xc00] sm:$0xff] }
 0xe00   : > { %6367 = vmatprep.subr.mxu0 %v7436_v8 }
 0xe01   : > { %6368 = vmatpush3.msra.mxu0 %v6949_v31  ;;  %v6962_v31 = vld [vmem:[#allocation2 + $0xd00] sm:$0xff] }
 0xe02   : > { %6369 = vmatprep.subr.mxu0 %v7436_v8 }
 0xe03   : > { %6370 = vmatpush3.msra.mxu0 %v6950_v16  ;;  %v6963_v16 = vld [vmem:[#allocation2 + $0xcf8] sm:$0xff] }
 0xe04   : > { %6371 = vmatprep.subr.mxu0 %v7436_v8 }
 0xe05   : > { %6372 = vmatpush3.msra.mxu0 %v6951_v32  ;;  %v6964_v32 = vld [vmem:[#allocation2 + $0xcf0] sm:$0xff] }
 0xe06   : > { %6373 = vmatprep.subr.mxu0 %v7436_v8 }
 0xe07   : > { %6374 = vmatpush3.msra.mxu0 %v6952_v36  ;;  %v6965_v36 = vld [vmem:[#allocation2 + $0xce8] sm:$0xff] }
 0xe08   : > { %6375 = vmatprep.subr.mxu0 %v7436_v8 }
 0xe09   : > { %6376 = vmatpush3.msra.mxu0 %v6953_v37  ;;  %v6966_v37 = vld [vmem:[#allocation2 + $0xce0] sm:$0xff] }
 0xe0a   : > { %6377 = vmatprep.subr.mxu0 %v7436_v8 }
 0xe0b   : > { %6378 = vmatpush3.msra.mxu0 %v6954_v38  ;;  %v6967_v38 = vld [vmem:[#allocation2 + $0xcd8] sm:$0xff] }
 0xe0c   : > { %6379 = vmatprep.subr.mxu0 %v7436_v8 }
 0xe0d   : > { %6380 = vmatpush3.msra.mxu0 %v6955_v39  ;;  %v6968_v39 = vld [vmem:[#allocation2 + $0xcd0] sm:$0xff] }
 0xe0e   : > { %6381 = vmatprep.subr.mxu0 %v7436_v8 }
 0xe0f   : > { %6382 = vmatpush3.msra.mxu0 %v6956_v40  ;;  %v6969_v40 = vld [vmem:[#allocation2 + $0xcc8] sm:$0xff] }
 0xeb0   : > { %v6343_v43 = vpop.f32.mrf.mxu0 }
 0xeb1   : > { %v2366_v44 = vadd.f32 %v6343_v43, %v2287_v42  ;;  %v6971_v42 = vld [vmem:[#allocation2 + $0xcb8] sm:$0xff]  ;;  %v6973_v43 = vld [vmem:[#allocation2 + $0xca8] sm:$0xff] }
 0xeb2   : > { %v2360_v45 = vpop.f32.mrf.mxu0 }
 0xeb3   : > { %v2370_v49 = vadd.f32 %v2366_v44, %v7670_v6  ;;  %v2361_v50 = vadd.f32 %v2360_v45, %v2286_v35  ;;  %v6974_v35 = vld [vmem:[#allocation2 + $0xca0] sm:$0xff]  ;;  %v6975_v44 = vld [vmem:[#allocation2 + $0xc98] sm:$0xff]  ;;  %v6976_v45 = vld [vmem:[#allocation2 + $0xc90] sm:$0xff] }
 0xeb5   : > { %v2372_v51 = vadd.f32 %v2370_v49, %v7527_v47  ;;  %v2369_v52 = vadd.f32 %v2361_v50, %v1997_v46  ;;  %v6977_v46 = vld [vmem:[#allocation2 + $0xc88] sm:$0xff]  ;;  %v6978_v49 = vld [vmem:[#allocation2 + $0x838] sm:$0xff] }
 0xeb7   : > { %v2371_v53 = vadd.f32 %v2369_v52, %v7529_v48  ;;  %v2387_v56 = vmul.f32 %v2372_v51, %v2372_v51 }
 0xeb9   : > { %v2373_v54 = vadd.f32 %v2372_v51, %v2371_v53  ;;  %v2386_v55 = vmul.f32 %v2371_v53, %v2371_v53 }
 0xebb   : > { %2374 = vadd.xlane.f32.xlu0 %v2373_v54  ;;  %v2388_v61 = vadd.f32 %v2387_v56, %v2386_v55  ;;  %v6980_v54 = vld [vmem:[#allocation2 + $0x7b8] sm:$0xff]  ;;  %v6981_v55 = vld [vmem:[#allocation2 + $0x830] sm:$0xff] }
 0xebc   : > { %v6982_v56 = vld [vmem:[#allocation2 + $0x7b0] sm:$0xff] }
 0xebd   : > { %2389 = vadd.xlane.f32.xlu1 %v2388_v61  ;;  %v6983_v61 = vld [vmem:[#allocation2 + $0x828] sm:$0xff] }
 0xf44   : > { %v2375_v13 = vpop.xlane.xlu0 %2374 }
 0xf45   : > { %v2376_v57 = vrot.slane %v2375_v13, 4 }
 0xf46   : > { %v2390_v58 = vpop.xlane.xlu1 %2389 }
 0xf47   : > { %v2377_v59 = vadd.f32 %v2376_v57, %v2375_v13  ;;  %v2391_v60 = vrot.slane %v2390_v58, 4  ;;  %v6984_v13 = vld [vmem:[#allocation2 + $0x7a8] sm:$0xff]  ;;  %v6985_v57 = vld [vmem:[#allocation2 + $0x820] sm:$0xff] }
 0xf49   : > { %v2378_v62 = vrot.slane %v2377_v59, 2  ;;  %v2392_v63 = vadd.f32 %v2391_v60, %v2390_v58  ;;  %v6986_v58 = vld [vmem:[#allocation2 + $0x7a0] sm:$0xff]  ;;  %v6988_v60 = vld [vmem:[#allocation2 + $0x798] sm:$0xff] }
 0xf4b   : > { %v2393_v1 = vrot.slane %v2392_v63, 2  ;;  %v2379_v4 = vadd.f32 %v2378_v62, %v2377_v59  ;;  %v6987_v59 = vld [vmem:[#allocation2 + $0x818] sm:$0xff]  ;;  %v6989_v62 = vld [vmem:[#allocation2 + $0x810] sm:$0xff] }
 0xf4d   : > { %v2380_v5 = vrot.slane %v2379_v4, 1  ;;  %v2394_v6 = vadd.f32 %v2393_v1, %v2392_v63  ;;  %v6990_v63 = vld [vmem:[#allocation2 + $0x790] sm:$0xff]  ;;  %v6991_v1 = vld [vmem:[#allocation2 + $0x808] sm:$0xff] }
 0xf4f   : > { %v2381_v9 = vadd.f32 %v2380_v5, %v2379_v4  ;;  %v2395_v11 = vrot.slane %v2394_v6, 1  ;;  %v6992_v4 = vld [vmem:[#allocation2 + $0x788] sm:$0xff]  ;;  %v6993_v5 = vld [vmem:[#allocation2 + $0x800] sm:$0xff] }
 0xf51   : > { %6853 = vpush %v2381_v9  ;;  %v2396_v2 = vadd.f32 %v2395_v11, %v2394_v6  ;;  %v6994_v6 = vld [vmem:[#allocation2 + $0x780] sm:$0xff]  ;;  %v6995_v9 = vld [vmem:[#allocation2 + $0x7f8] sm:$0xff] }
 0xf52   : > { %v6996_v11 = vld [vmem:[#allocation2 + $0x778] sm:$0xff] }
 0xf53   : > { %6855 = vpush %v2396_v2  ;;  %v6997_v2 = vld [vmem:[#allocation2 + $0x7f0] sm:$0xff] }
 0xf82   : > { %s6854_s29 = spop %6853 }
 0xf83   : > { %s2385_s30 = smul.f32 0.00048828125, %s6854_s29 }
 0xf84   : > { %s6856_s3 = spop %6855 }
 0xf85   : > { %s2401_s4 = smul.f32 %s2385_s30, %s2385_s30  ;;  %v2403_v10 = vstv %s2385_s30 }
 0xf86   : > { %s2400_s5 = smul.f32 0.00048828125, %s6856_s3  ;;  %v2404_v17 = vsub.f32 %v2371_v53, %v2403_v10  ;;  %v2405_v19 = vsub.f32 %v2372_v51, %v2403_v10  ;;  %v7735_v53 = vld [vmem:[#allocation2 + $0x20] sm:$0xff]  ;;  %v7000_v10 = vld [vmem:[#allocation2 + $0x768] sm:$0xff] }
 0xf88   : > { %s2402_s6 = ssub.f32 %s2400_s5, %s2401_s4 }
 0xf8a   : > { %s2406_s7 = sadd.f32 1e-05, %s2402_s6 }
 0xf8c   : > { %v2407_v14 = vstv %s2406_s7 }
 0xf8d   : > { %6920 = vrsqrt.f32 %v2407_v14  ;;  %v6998_v14 = vld [vmem:[#allocation2 + $0x770] sm:$0xff] }
 0xf9a   : > { %v6921_v15 = vpop.eup %6920 }
 0xf9b   : > { %6857 = vpush %v6921_v15  ;;  %v6999_v15 = vld [vmem:[#allocation2 + $0x7e8] sm:$0xff] }
 0xfcc   : > { %s6858_s8 = spop %6857 }
 0xfcd   : > { %v2410_v20 = vstv %s6858_s8 }
 0xfce   : > { %v2411_v34 = vmul.f32 %v2410_v20, %v2404_v17  ;;  %v2412_v3 = vmul.f32 %v2410_v20, %v2405_v19  ;;  %v7001_v17 = vld [vmem:[#allocation2 + $0x7e0] sm:$0xff]  ;;  %v7003_v20 = vld [vmem:[#allocation2 + $0x7d8] sm:$0xff] }
 0xfcf   : > { %v7002_v19 = vld [vmem:[#allocation2 + $0x760] sm:$0xff] }
 0xfd0   : > { %v2413_v21 = vmul.f32 %v6957_v7, %v2411_v34  ;;  %v2414_v12 = vmul.f32 %v6958_v22, %v2412_v3  ;;  %v7004_v34 = vld [vmem:[#allocation2 + $0x758] sm:$0xff]  ;;  %v7005_v3 = vld [vmem:[#allocation2 + $0x7d0] sm:$0xff]  ;;  %v7008_v22 = vld [vmem:[#allocation2 + $0x748] sm:$0xff] }
 0xfd1   : > { %v7006_v7 = vld [vmem:[#allocation2 + $0x750] sm:$0xff] }
 0xfd2   : > { %v2415_v24 = vadd.f32 %v6959_v23, %v2413_v21  ;;  %v2416_v26 = vadd.f32 %v6960_v25, %v2414_v12  ;;  %v7007_v21 = vld [vmem:[#allocation2 + $0x7c8] sm:$0xff]  ;;  %v7009_v12 = vld [vmem:[#allocation2 + $0x7c0] sm:$0xff] }
 0xfd3   : > { %v7010_v23 = vld [vmem:[#allocation2 + $0x740] sm:$0xff] }
 0xfd4   : > { %v7708_v27 = vmax.f32 %v2416_v26, 0.0  ;;  %v7710_v29 = vmax.f32 %v2415_v24, 0.0 }
 0xfd6   : > { %6344 = vmatprep.subr.mxu1 %v7708_v27 }
 0xfd7   : > { %6345 = vmatpush3.msra.mxu1 %v7708_v27 }
 0xfd8   : > { %6346 = vmatprep.subr.mxu1 %v7710_v29 }
 0xfd9   : > { %6347 = vmatpush3.msra.mxu1 %v7710_v29 }
 0xfda   : > { %6349 = vmatmul.mubr.msk.f32.vlgmr.msra.gmra.mxu1 %vm163_vm0, %v6961_v30  ;;  %6386 = vmatprep.subr.mxu1 %v7436_v8 }
 0xfdb   : > { %6387 = vmatpush3.msra.mxu1 %v6962_v31  ;;  %6418 = vmatprep.mubr.msk.f32.mxu1 %vm7437_vm1, %v7436_v8 }
 0xfdc   : > { %6388 = vmatprep.subr.mxu1 %v7436_v8 }
 0xfdd   : > { %6389 = vmatpush3.msra.mxu1 %v6963_v16  ;;  %v7739_v16 = vld [vmem:[#allocation2 + $0x28] sm:$0xff] }
 0xfde   : > { %6390 = vmatprep.subr.mxu1 %v7436_v8 }
 0xfdf   : > { %6391 = vmatpush3.msra.mxu1 %v6964_v32  ;;  %v7012_v32 = vld [vmem:[#allocation2 + $0x8b8] sm:$0xff] }
 0xfe0   : > { %6392 = vmatprep.subr.mxu1 %v7436_v8 }
 0xfe1   : > { %6393 = vmatpush3.msra.mxu1 %v6965_v36  ;;  %v7013_v36 = vld [vmem:[#allocation2 + $0x8b0] sm:$0xff] }
 0xfe2   : > { %6394 = vmatprep.subr.mxu1 %v7436_v8 }
 0xfe3   : > { %6395 = vmatpush3.msra.mxu1 %v6966_v37  ;;  %v7014_v37 = vld [vmem:[#allocation2 + $0x8a8] sm:$0xff] }
 0xfe4   : > { %6396 = vmatprep.subr.mxu1 %v7436_v8 }
 0xfe5   : > { %6397 = vmatpush3.msra.mxu1 %v6967_v38  ;;  %v7015_v38 = vld [vmem:[#allocation2 + $0x8a0] sm:$0xff] }
 0xfe6   : > { %6398 = vmatprep.subr.mxu1 %v7436_v8 }
 0xfe7   : > { %6399 = vmatpush3.msra.mxu1 %v6968_v39  ;;  %v7016_v39 = vld [vmem:[#allocation2 + $0x898] sm:$0xff] }
 0xfe8   : > { %6400 = vmatprep.subr.mxu1 %v7436_v8 }
 0xfe9   : > { %6401 = vmatpush3.msra.mxu1 %v6969_v40  ;;  %v7017_v40 = vld [vmem:[#allocation2 + $0x890] sm:$0xff] }
 0xfea   : > { %6402 = vmatprep.subr.mxu1 %v7436_v8 }
 0xfeb   : > { %6403 = vmatpush3.msra.mxu1 %v6970_v41  ;;  %v7018_v41 = vld [vmem:[#allocation2 + $0x888] sm:$0xff] }
 0xfec   : > { %6404 = vmatprep.subr.mxu1 %v7436_v8 }
 0xfed   : > { %6405 = vmatpush3.msra.mxu1 %v6971_v42  ;;  %v7019_v42 = vld [vmem:[#allocation2 + $0x880] sm:$0xff] }
 0xfee   : > { %6406 = vmatprep.subr.mxu1 %v7436_v8 }
 0xfef   : > { %6407 = vmatpush3.msra.mxu1 %v6972_v33  ;;  %v7020_v33 = vld [vmem:[#allocation2 + $0x878] sm:$0xff] }
 0xff0   : > { %6408 = vmatprep.subr.mxu1 %v7436_v8 }
 0xff1   : > { %6409 = vmatpush3.msra.mxu1 %v6973_v43  ;;  %v7021_v43 = vld [vmem:[#allocation2 + $0x870] sm:$0xff] }
 0xff2   : > { %6410 = vmatprep.subr.mxu1 %v7436_v8 }
 0xff3   : > { %6411 = vmatpush3.msra.mxu1 %v6974_v35  ;;  %v7022_v35 = vld [vmem:[#allocation2 + $0x868] sm:$0xff] }
 0xff4   : > { %6412 = vmatprep.subr.mxu1 %v7436_v8 }
 0xff5   : > { %6413 = vmatpush3.msra.mxu1 %v6975_v44  ;;  %v7023_v44 = vld [vmem:[#allocation2 + $0x860] sm:$0xff] }
 0xff6   : > { %6414 = vmatprep.subr.mxu1 %v7436_v8 }
 0xff7   : > { %6415 = vmatpush3.msra.mxu1 %v6976_v45  ;;  %v7024_v45 = vld [vmem:[#allocation2 + $0x858] sm:$0xff] }
 0xff8   : > { %6416 = vmatprep.subr.mxu1 %v7436_v8 }
 0xff9   : > { %6417 = vmatpush3.msra.mxu1 %v6977_v46  ;;  %v7025_v46 = vld [vmem:[#allocation2 + $0x850] sm:$0xff] }
 0xffa   : > { %5521 = vmatprep.subr.mxu1 %v6978_v49  ;;  %v7026_v49 = vld [vmem:[#allocation2 + $0x848] sm:$0xff] }
0x109a   : > { %v6350_v50 = vpop.f32.mrf.mxu1 }
0x109c   : > { %v2485_v51 = vpop.f32.mrf.mxu1 }
0x109d   : > { %v2494_v52 = vmax.f32 %v2485_v51, %v6350_v50  ;;  %v7027_v50 = vld [vmem:[#allocation2 + $0x840] sm:$0xff]  ;;  %v7028_v51 = vld [vmem:[#allocation2 + $0x9d0] sm:$0xff] }
0x109f   : > { %6384 = vmatmul.mubr.f32.vlgmr.msra.gmra.mxu0 %v2494_v52  ;;  %6419 = vmatmul.mubr.f32.vlgmr.msra.gmra.mxu1 %v2494_v52 }
0x10a0   : > { %6423 = vmatprep.mubr.msk.f32.mxu0 %vm1105_vm2, %v7735_v53  ;;  %5522 = vmatpush3.msra.mxu1 %v6980_v54 }
0x10a1   : > { %5523 = vmatprep.subr.mxu1 %v6981_v55  ;;  %v7029_v55 = vld [vmem:[#allocation2 + $0x950] sm:$0xff] }
0x10a2   : > { %5524 = vmatpush3.msra.mxu1 %v6982_v56  ;;  %v7030_v56 = vld [vmem:[#allocation2 + $0x9c8] sm:$0xff] }
0x10a3   : > { %5525 = vmatprep.subr.mxu1 %v6983_v61  ;;  %v7031_v61 = vld [vmem:[#allocation2 + $0x948] sm:$0xff] }
0x10a4   : > { %5526 = vmatpush3.msra.mxu1 %v6984_v13  ;;  %v7032_v13 = vld [vmem:[#allocation2 + $0x9c0] sm:$0xff] }
0x10a5   : > { %5527 = vmatprep.subr.mxu1 %v6985_v57  ;;  %v7033_v57 = vld [vmem:[#allocation2 + $0x940] sm:$0xff] }
0x10a6   : > { %5528 = vmatpush3.msra.mxu1 %v6986_v58  ;;  %v7034_v58 = vld [vmem:[#allocation2 + $0x9b8] sm:$0xff] }
0x10a7   : > { %5529 = vmatprep.subr.mxu1 %v6987_v59  ;;  %v7035_v59 = vld [vmem:[#allocation2 + $0x938] sm:$0xff] }
0x10a8   : > { %5530 = vmatpush3.msra.mxu1 %v6988_v60  ;;  %v7036_v60 = vld [vmem:[#allocation2 + $0x9b0] sm:$0xff] }
0x10a9   : > { %5531 = vmatprep.subr.mxu1 %v6989_v62  ;;  %v7037_v62 = vld [vmem:[#allocation2 + $0x930] sm:$0xff] }
0x10aa   : > { %5532 = vmatpush3.msra.mxu1 %v6990_v63  ;;  %v7038_v63 = vld [vmem:[#allocation2 + $0x9a8] sm:$0xff] }
0x10ab   : > { %5533 = vmatprep.subr.mxu1 %v6991_v1  ;;  %v7039_v1 = vld [vmem:[#allocation2 + $0x928] sm:$0xff] }
0x10ac   : > { %5534 = vmatpush3.msra.mxu1 %v6992_v4  ;;  %v7040_v4 = vld [vmem:[#allocation2 + $0x9a0] sm:$0xff] }
0x10ad   : > { %5535 = vmatprep.subr.mxu1 %v6993_v5  ;;  %v7041_v5 = vld [vmem:[#allocation2 + $0x920] sm:$0xff] }
0x10ae   : > { %5536 = vmatpush3.msra.mxu1 %v6994_v6  ;;  %v7042_v6 = vld [vmem:[#allocation2 + $0x998] sm:$0xff] }
0x10af   : > { %5537 = vmatprep.subr.mxu1 %v6995_v9  ;;  %v7043_v9 = vld [vmem:[#allocation2 + $0x918] sm:$0xff] }
0x10b0   : > { %5538 = vmatpush3.msra.mxu1 %v6996_v11  ;;  %v7044_v11 = vld [vmem:[#allocation2 + $0x990] sm:$0xff] }
0x10b1   : > { %5539 = vmatprep.subr.mxu1 %v6997_v2  ;;  %v7045_v2 = vld [vmem:[#allocation2 + $0x910] sm:$0xff] }
0x10b2   : > { %5540 = vmatpush3.msra.mxu1 %v6998_v14  ;;  %v7046_v14 = vld [vmem:[#allocation2 + $0x988] sm:$0xff] }
0x10b3   : > { %5541 = vmatprep.subr.mxu1 %v6999_v15  ;;  %v7047_v15 = vld [vmem:[#allocation2 + $0x908] sm:$0xff] }
0x10b4   : > { %5542 = vmatpush3.msra.mxu1 %v7000_v10  ;;  %v7048_v10 = vld [vmem:[#allocation2 + $0x980] sm:$0xff] }
0x10b5   : > { %5543 = vmatprep.subr.mxu1 %v7001_v17  ;;  %v7049_v17 = vld [vmem:[#allocation2 + $0x900] sm:$0xff] }
0x10b6   : > { %5544 = vmatpush3.msra.mxu1 %v7002_v19  ;;  %v7050_v19 = vld [vmem:[#allocation2 + $0x978] sm:$0xff] }
0x10b7   : > { %5545 = vmatprep.subr.mxu1 %v7003_v20  ;;  %v7051_v20 = vld [vmem:[#allocation2 + $0x8f8] sm:$0xff] }
0x10b8   : > { %5546 = vmatpush3.msra.mxu1 %v7004_v34  ;;  %v7052_v34 = vld [vmem:[#allocation2 + $0x970] sm:$0xff] }
0x10b9   : > { %5547 = vmatprep.subr.mxu1 %v7005_v3  ;;  %v7053_v3 = vld [vmem:[#allocation2 + $0x8f0] sm:$0xff] }
0x10ba   : > { %5548 = vmatpush3.msra.mxu1 %v7006_v7  ;;  %v7054_v7 = vld [vmem:[#allocation2 + $0x968] sm:$0xff] }
0x10bb   : > { %5549 = vmatprep.subr.mxu1 %v7007_v21  ;;  %v7055_v21 = vld [vmem:[#allocation2 + $0x8e8] sm:$0xff] }
0x10bc   : > { %5550 = vmatpush3.msra.mxu1 %v7008_v22  ;;  %v7056_v22 = vld [vmem:[#allocation2 + $0x960] sm:$0xff] }
0x10bd   : > { %5551 = vmatprep.subr.mxu1 %v7009_v12  ;;  %v7057_v12 = vld [vmem:[#allocation2 + $0x8e0] sm:$0xff] }
0x10be   : > { %5552 = vmatpush3.msra.mxu1 %v7010_v23  ;;  %v7058_v23 = vld [vmem:[#allocation2 + $0x958] sm:$0xff] }
0x115f   : > { %v2561_v24 = vpop.f32.mrf.mxu0  ;;  %v2631_v25 = vpop.f32.mrf.mxu1 }
0x1160   : > { %v2635_v26 = vmax.f32 %v2561_v24, %v2631_v25  ;;  %v7059_v24 = vld [vmem:[#allocation2 + $0x8d8] sm:$0xff] }
0x1161   : > { %v6385_v30 = vpop.f32.mrf.mxu0  ;;  %v6420_v31 = vpop.f32.mrf.mxu1 }
0x1162   : > { %6421 = vmatprep.subr.mxu0 %v2635_v26  ;;  %2775 = vmatprep.mubr.f32.mxu1 %v2635_v26 }
0x1163   : > { %6422 = vmatpush3.msra.mxu0 %v2635_v26 }
0x1164   : > { %6424 = vmatmul.mubr.msk.f32.vlgmr.msra.gmra.mxu0 %vm1105_vm2, %v7739_v16  ;;  %6426 = vmatprep.subr.mxu0 %v7436_v8 }
0x1165   : > { %6427 = vmatpush3.msra.mxu0 %v7012_v32  ;;  %6458 = vmatprep.mubr.msk.f32.mxu0 %vm7437_vm1, %v7436_v8 }
0x1166   : > { %6428 = vmatprep.subr.mxu0 %v7436_v8 }
0x1167   : > { %6429 = vmatpush3.msra.mxu0 %v7013_v36  ;;  %v7060_v36 = vld [vmem:[#allocation2 + $0x8c0] sm:$0xff] }
0x1168   : > { %6430 = vmatprep.subr.mxu0 %v7436_v8 }
0x1169   : > { %6431 = vmatpush3.msra.mxu0 %v7014_v37 }
0x116a   : > { %6432 = vmatprep.subr.mxu0 %v7436_v8 }
0x116b   : > { %6433 = vmatpush3.msra.mxu0 %v7015_v38 }
0x116c   : > { %6434 = vmatprep.subr.mxu0 %v7436_v8 }
0x116d   : > { %6435 = vmatpush3.msra.mxu0 %v7016_v39 }
0x116e   : > { %6436 = vmatprep.subr.mxu0 %v7436_v8 }
0x116f   : > { %6437 = vmatpush3.msra.mxu0 %v7017_v40 }
0x1170   : > { %6438 = vmatprep.subr.mxu0 %v7436_v8 }
0x1171   : > { %6439 = vmatpush3.msra.mxu0 %v7018_v41 }
0x1172   : > { %6440 = vmatprep.subr.mxu0 %v7436_v8 }
0x1173   : > { %6441 = vmatpush3.msra.mxu0 %v7019_v42 }
0x1174   : > { %6442 = vmatprep.subr.mxu0 %v7436_v8 }
0x1175   : > { %6443 = vmatpush3.msra.mxu0 %v7020_v33 }
0x1176   : > { %6444 = vmatprep.subr.mxu0 %v7436_v8 }
0x1177   : > { %6445 = vmatpush3.msra.mxu0 %v7021_v43 }
0x1178   : > { %6446 = vmatprep.subr.mxu0 %v7436_v8 }
0x1179   : > { %6447 = vmatpush3.msra.mxu0 %v7022_v35 }
0x117a   : > { %6448 = vmatprep.subr.mxu0 %v7436_v8 }
0x117b   : > { %6449 = vmatpush3.msra.mxu0 %v7023_v44 }
0x117c   : > { %6450 = vmatprep.subr.mxu0 %v7436_v8 }
0x117d   : > { %6451 = vmatpush3.msra.mxu0 %v7024_v45 }
0x117e   : > { %6452 = vmatprep.subr.mxu0 %v7436_v8 }
0x117f   : > { %6453 = vmatpush3.msra.mxu0 %v7025_v46 }
0x1180   : > { %6454 = vmatprep.subr.mxu0 %v7436_v8 }
0x1181   : > { %6455 = vmatpush3.msra.mxu0 %v7026_v49 }
0x1182   : > { %6456 = vmatprep.subr.mxu0 %v7436_v8 }
0x1183   : > { %6457 = vmatpush3.msra.mxu0 %v7027_v50 }
0x1184   : > { %5576 = vmatprep.subr.mxu0 %v7028_v51 }
0x1224   : > { %v6425_v52 = vpop.f32.mrf.mxu0 }
0x1225   : > { %6459 = vmatmul.mubr.f32.vlgmr.msra.gmra.mxu0 %v6425_v52 }
0x1226   : > { %v2702_v54 = vpop.f32.mrf.mxu0  ;;  %5577 = vmatpush3.msra.mxu0 %v7029_v55 }
0x1227   : > { %2776 = vmatmul.mubr.f32.vlgmr.msra.gmra.mxu1 %v2702_v54  ;;  %5578 = vmatprep.subr.mxu0 %v7030_v56 }
0x1228   : > { %6463 = vmatprep.mubr.msk.f32.mxu1 %vm1105_vm2, %v7735_v53  ;;  %5579 = vmatpush3.msra.mxu0 %v7031_v61 }
0x1229   : > { %5580 = vmatprep.subr.mxu0 %v7032_v13 }
0x122a   : > { %5581 = vmatpush3.msra.mxu0 %v7033_v57 }
0x122b   : > { %5582 = vmatprep.subr.mxu0 %v7034_v58 }
0x122c   : > { %5583 = vmatpush3.msra.mxu0 %v7035_v59  ;;  %v7061_v59 = vld [vmem:[#allocation2 + $0x8c8] sm:$0xff] }
0x122d   : > { %5584 = vmatprep.subr.mxu0 %v7036_v60 }
0x122e   : > { %5585 = vmatpush3.msra.mxu0 %v7037_v62  ;;  %v7062_v62 = vld [vmem:[#allocation2 + $0x8d0] sm:$0xff] }
0x122f   : > { %5586 = vmatprep.subr.mxu0 %v7038_v63 }
0x1230   : > { %5587 = vmatpush3.msra.mxu0 %v7039_v1 }
0x1231   : > { %5588 = vmatprep.subr.mxu0 %v7040_v4  ;;  %v7063_v4 = vld [vmem:[#allocation2 + $0xa50] sm:$0xff] }
0x1232   : > { %5589 = vmatpush3.msra.mxu0 %v7041_v5  ;;  %v7064_v5 = vld [vmem:[#allocation2 + $0xa48] sm:$0xff] }
0x1233   : > { %5590 = vmatprep.subr.mxu0 %v7042_v6  ;;  %v7065_v6 = vld [vmem:[#allocation2 + $0xa40] sm:$0xff] }
0x1234   : > { %5591 = vmatpush3.msra.mxu0 %v7043_v9  ;;  %v7066_v9 = vld [vmem:[#allocation2 + $0xa38] sm:$0xff] }
0x1235   : > { %5592 = vmatprep.subr.mxu0 %v7044_v11  ;;  %v7067_v11 = vld [vmem:[#allocation2 + $0xa30] sm:$0xff] }
0x1236   : > { %5593 = vmatpush3.msra.mxu0 %v7045_v2  ;;  %v7068_v2 = vld [vmem:[#allocation2 + $0xa28] sm:$0xff] }
0x1237   : > { %5594 = vmatprep.subr.mxu0 %v7046_v14  ;;  %v7069_v14 = vld [vmem:[#allocation2 + $0xa20] sm:$0xff] }
0x1238   : > { %5595 = vmatpush3.msra.mxu0 %v7047_v15  ;;  %v7070_v15 = vld [vmem:[#allocation2 + $0xa18] sm:$0xff] }
0x1239   : > { %5596 = vmatprep.subr.mxu0 %v7048_v10  ;;  %v7071_v10 = vld [vmem:[#allocation2 + $0xa10] sm:$0xff] }
0x123a   : > { %5597 = vmatpush3.msra.mxu0 %v7049_v17  ;;  %v7072_v17 = vld [vmem:[#allocation2 + $0xa08] sm:$0xff] }
0x123b   : > { %5598 = vmatprep.subr.mxu0 %v7050_v19  ;;  %v7073_v19 = vld [vmem:[#allocation2 + $0xa00] sm:$0xff] }
0x123c   : > { %5599 = vmatpush3.msra.mxu0 %v7051_v20  ;;  %v7074_v20 = vld [vmem:[#allocation2 + $0x9f8] sm:$0xff] }
0x123d   : > { %5600 = vmatprep.subr.mxu0 %v7052_v34  ;;  %v7075_v34 = vld [vmem:[#allocation2 + $0x9f0] sm:$0xff] }
0x123e   : > { %5601 = vmatpush3.msra.mxu0 %v7053_v3  ;;  %v7076_v3 = vld [vmem:[#allocation2 + $0x9e8] sm:$0xff] }
0x123f   : > { %5602 = vmatprep.subr.mxu0 %v7054_v7  ;;  %v7077_v7 = vld [vmem:[#allocation2 + $0x9e0] sm:$0xff] }
0x1240   : > { %5603 = vmatpush3.msra.mxu0 %v7055_v21  ;;  %v7078_v21 = vld [vmem:[#allocation2 + $0x9d8] sm:$0xff] }
0x1241   : > { %5604 = vmatprep.subr.mxu0 %v7056_v22  ;;  %v3135_v22 = vld [vmem:[#allocation2 + $0xb68] sm:$0xff] }
0x1242   : > { %5605 = vmatpush3.msra.mxu0 %v7057_v12  ;;  %v3151_v12 = vld [vmem:[#allocation2 + $0xbe8] sm:$0xff] }
0x1243   : > { %5606 = vmatprep.subr.mxu0 %v7058_v23 }
0x1244   : > { %5607 = vmatpush3.msra.mxu0 %v7059_v24  ;;  %v3119_v24 = vld [vmem:[#allocation2 + $0xae8] sm:$0xff] }
0x1245   : > { %5628 = vmatprep.subr.mxu0 %v3135_v22  ;;  %v7085_v22 = vld [vmem:[#allocation2 + $0x488] sm:$0xff] }
0x12e5   : > { %v2847_v25 = vpop.f32.mrf.mxu0 }
0x12e7   : > { %v5553_v26 = vpop.f32.mrf.mxu1  ;;  %v6460_v30 = vpop.f32.mrf.mxu0 }
0x12e8   : > { %v3134_v30 = vld [vmem:[#allocation2 + $0xb60] sm:$0xff] }
0x12e9   : > { %v5554_v31 = vpop.f32.mrf.mxu1 }
0x12ea   : > { %v5555_v32 = vadd.f32 %v5554_v31, %v5553_v26  ;;  %v3118_v31 = vld [vmem:[#allocation2 + $0xae0] sm:$0xff] }
0x12ec   : > { %v2778_v37 = vadd.f32 %v7060_v36, %v5555_v32  ;;  %v3149_v32 = vld [vmem:[#allocation2 + $0xbd8] sm:$0xff] }
0x12ed   : > { %v3133_v36 = vld [vmem:[#allocation2 + $0xb58] sm:$0xff] }
0x12ee   : > { %v2848_v38 = vadd.f32 %v2847_v25, %v2778_v37  ;;  %v3150_v25 = vld [vmem:[#allocation2 + $0xbe0] sm:$0xff]  ;;  %v3117_v37 = vld [vmem:[#allocation2 + $0xad8] sm:$0xff] }
0x12f0   : > { %2851 = vadd.xlane.f32.xlu0 %v2848_v38  ;;  %v2863_v39 = vmul.f32 %v2848_v38, %v2848_v38 }
0x12f2   : > { %2864 = vadd.xlane.f32.xlu1 %v2863_v39  ;;  %v3132_v39 = vld [vmem:[#allocation2 + $0xb50] sm:$0xff] }
0x1379   : > { %v2852_v40 = vpop.xlane.xlu0 %2851 }
0x137a   : > { %v2853_v41 = vrot.slane %v2852_v40, 4 }
0x137b   : > { %v2865_v42 = vpop.xlane.xlu1 %2864 }
0x137c   : > { %v2854_v33 = vadd.f32 %v2853_v41, %v2852_v40  ;;  %v2866_v43 = vrot.slane %v2865_v42, 4  ;;  %v3116_v40 = vld [vmem:[#allocation2 + $0xad0] sm:$0xff]  ;;  %v3147_v41 = vld [vmem:[#allocation2 + $0xbc8] sm:$0xff] }
0x137e   : > { %v2855_v35 = vrot.slane %v2854_v33, 2  ;;  %v2867_v44 = vadd.f32 %v2866_v43, %v2865_v42  ;;  %v3131_v42 = vld [vmem:[#allocation2 + $0xb48] sm:$0xff]  ;;  %v3146_v43 = vld [vmem:[#allocation2 + $0xbc0] sm:$0xff] }
0x1380   : > { %v2868_v45 = vrot.slane %v2867_v44, 2  ;;  %v2856_v46 = vadd.f32 %v2855_v35, %v2854_v33  ;;  %v3115_v33 = vld [vmem:[#allocation2 + $0xac8] sm:$0xff]  ;;  %v3130_v35 = vld [vmem:[#allocation2 + $0xb40] sm:$0xff] }
0x1382   : > { %v2857_v49 = vrot.slane %v2856_v46, 1  ;;  %v2869_v50 = vadd.f32 %v2868_v45, %v2867_v44  ;;  %v3114_v44 = vld [vmem:[#allocation2 + $0xac0] sm:$0xff]  ;;  %v3145_v45 = vld [vmem:[#allocation2 + $0xbb8] sm:$0xff] }
0x1384   : > { %v2858_v51 = vadd.f32 %v2857_v49, %v2856_v46  ;;  %v2870_v52 = vrot.slane %v2869_v50, 1  ;;  %v3129_v46 = vld [vmem:[#allocation2 + $0xb38] sm:$0xff] }
0x1385   : > { %v3113_v49 = vld [vmem:[#allocation2 + $0xab8] sm:$0xff] }
0x1386   : > { %6859 = vpush %v2858_v51  ;;  %v2871_v54 = vadd.f32 %v2870_v52, %v2869_v50  ;;  %v3144_v50 = vld [vmem:[#allocation2 + $0xbb0] sm:$0xff] }
0x1387   : > { %v3128_v51 = vld [vmem:[#allocation2 + $0xb30] sm:$0xff] }
0x1388   : > { %6861 = vpush %v2871_v54  ;;  %v3112_v52 = vld [vmem:[#allocation2 + $0xab0] sm:$0xff]  ;;  %v3143_v54 = vld [vmem:[#allocation2 + $0xba8] sm:$0xff] }
0x13b7   : > { %s6860_s11 = spop %6859 }
0x13b8   : > { %s2862_s12 = smul.f32 0.0009765625, %s6860_s11 }
0x13b9   : > { %s6862_s13 = spop %6861 }
0x13ba   : > { %s2876_s14 = smul.f32 %s2862_s12, %s2862_s12  ;;  %v2878_v61 = vstv %s2862_s12 }
0x13bb   : > { %s2875_s15 = smul.f32 0.0009765625, %s6862_s13  ;;  %v2879_v13 = vsub.f32 %v2848_v38, %v2878_v61  ;;  %v3148_v38 = vld [vmem:[#allocation2 + $0xbd0] sm:$0xff]  ;;  %v3142_v61 = vld [vmem:[#allocation2 + $0xba0] sm:$0xff] }
0x13bd   : > { %s2877_s16 = ssub.f32 %s2875_s15, %s2876_s14 }
0x13bf   : > { %s2880_s17 = sadd.f32 1e-05, %s2877_s16 }
0x13c1   : > { %v2881_v55 = vstv %s2880_s17 }
0x13c2   : > { %6922 = vrsqrt.f32 %v2881_v55  ;;  %v3127_v55 = vld [vmem:[#allocation2 + $0xb28] sm:$0xff] }
0x13cf   : > { %v6923_v56 = vpop.eup %6922 }
0x13d0   : > { %6863 = vpush %v6923_v56  ;;  %v3111_v56 = vld [vmem:[#allocation2 + $0xaa8] sm:$0xff] }
0x1401   : > { %s6864_s18 = spop %6863 }
0x1402   : > { %v2884_v57 = vstv %s6864_s18 }
0x1403   : > { %v2885_v58 = vmul.f32 %v2884_v57, %v2879_v13  ;;  %v3126_v13 = vld [vmem:[#allocation2 + $0xb20] sm:$0xff] }
0x1404   : > { %v3110_v57 = vld [vmem:[#allocation2 + $0xaa0] sm:$0xff] }
0x1405   : > { %v2886_v60 = vmul.f32 %v7061_v59, %v2885_v58  ;;  %v3141_v58 = vld [vmem:[#allocation2 + $0xb98] sm:$0xff] }
0x1406   : > { %v3125_v59 = vld [vmem:[#allocation2 + $0xb18] sm:$0xff] }
0x1407   : > { %v2887_v63 = vadd.f32 %v7062_v62, %v2886_v60  ;;  %v3109_v60 = vld [vmem:[#allocation2 + $0xa98] sm:$0xff]  ;;  %v3140_v62 = vld [vmem:[#allocation2 + $0xb90] sm:$0xff] }
0x1409   : > { %v2888_v1 = vmax.f32 %v2887_v63, 0.0  ;;  %v3124_v63 = vld [vmem:[#allocation2 + $0xb10] sm:$0xff] }
0x140b   : > { %6461 = vmatprep.subr.mxu1 %v2888_v1  ;;  %3028 = vmatprep.mubr.f32.mxu0 %v2888_v1 }
0x140c   : > { %6462 = vmatpush3.msra.mxu1 %v2888_v1  ;;  %v3108_v1 = vld [vmem:[#allocation2 + $0xa90] sm:$0xff] }
0x140d   : > { %6464 = vmatmul.mubr.msk.f32.vlgmr.msra.gmra.mxu1 %vm1105_vm2, %v7739_v16  ;;  %6466 = vmatprep.subr.mxu1 %v7436_v8 }
0x140e   : > { %6467 = vmatpush3.msra.mxu1 %v7063_v4  ;;  %6498 = vmatprep.mubr.msk.f32.mxu1 %vm7437_vm1, %v7436_v8  ;;  %v3139_v4 = vld [vmem:[#allocation2 + $0xb88] sm:$0xff] }
0x140f   : > { %6468 = vmatprep.subr.mxu1 %v7436_v8 }
0x1410   : > { %6469 = vmatpush3.msra.mxu1 %v7064_v5  ;;  %v3123_v5 = vld [vmem:[#allocation2 + $0xb08] sm:$0xff] }
0x1411   : > { %6470 = vmatprep.subr.mxu1 %v7436_v8 }
0x1412   : > { %6471 = vmatpush3.msra.mxu1 %v7065_v6  ;;  %v3107_v6 = vld [vmem:[#allocation2 + $0xa88] sm:$0xff] }
0x1413   : > { %6472 = vmatprep.subr.mxu1 %v7436_v8 }
0x1414   : > { %6473 = vmatpush3.msra.mxu1 %v7066_v9  ;;  %v3138_v9 = vld [vmem:[#allocation2 + $0xb80] sm:$0xff] }
0x1415   : > { %6474 = vmatprep.subr.mxu1 %v7436_v8 }
0x1416   : > { %6475 = vmatpush3.msra.mxu1 %v7067_v11  ;;  %v3122_v11 = vld [vmem:[#allocation2 + $0xb00] sm:$0xff] }
0x1417   : > { %6476 = vmatprep.subr.mxu1 %v7436_v8 }
0x1418   : > { %6477 = vmatpush3.msra.mxu1 %v7068_v2  ;;  %v3106_v2 = vld [vmem:[#allocation2 + $0xa80] sm:$0xff] }
0x1419   : > { %6478 = vmatprep.subr.mxu1 %v7436_v8 }
0x141a   : > { %6479 = vmatpush3.msra.mxu1 %v7069_v14  ;;  %v3137_v14 = vld [vmem:[#allocation2 + $0xb78] sm:$0xff] }
0x141b   : > { %6480 = vmatprep.subr.mxu1 %v7436_v8 }
0x141c   : > { %6481 = vmatpush3.msra.mxu1 %v7070_v15  ;;  %v3121_v15 = vld [vmem:[#allocation2 + $0xaf8] sm:$0xff] }
0x141d   : > { %6482 = vmatprep.subr.mxu1 %v7436_v8 }
0x141e   : > { %6483 = vmatpush3.msra.mxu1 %v7071_v10  ;;  %v3105_v10 = vld [vmem:[#allocation2 + $0xa78] sm:$0xff] }
0x141f   : > { %6484 = vmatprep.subr.mxu1 %v7436_v8 }
0x1420   : > { %6485 = vmatpush3.msra.mxu1 %v7072_v17  ;;  %v3136_v17 = vld [vmem:[#allocation2 + $0xb70] sm:$0xff] }
0x1421   : > { %6486 = vmatprep.subr.mxu1 %v7436_v8 }
0x1422   : > { %6487 = vmatpush3.msra.mxu1 %v7073_v19  ;;  %v3120_v19 = vld [vmem:[#allocation2 + $0xaf0] sm:$0xff] }
0x1423   : > { %6488 = vmatprep.subr.mxu1 %v7436_v8 }
0x1424   : > { %6489 = vmatpush3.msra.mxu1 %v7074_v20  ;;  %v3104_v20 = vld [vmem:[#allocation2 + $0xa70] sm:$0xff] }
0x1425   : > { %6490 = vmatprep.subr.mxu1 %v7436_v8 }
0x1426   : > { %6491 = vmatpush3.msra.mxu1 %v7075_v34  ;;  %v7079_v34 = vld [vmem:[#allocation2] sm:$0xff] }
0x1427   : > { %6492 = vmatprep.subr.mxu1 %v7436_v8 }
0x1428   : > { %6493 = vmatpush3.msra.mxu1 %v7076_v3  ;;  %v7080_v3 = vld [vmem:[#allocation2 + $0x498] sm:$0xff] }
0x1429   : > { %6494 = vmatprep.subr.mxu1 %v7436_v8 }
0x142a   : > { %6495 = vmatpush3.msra.mxu1 %v7077_v7  ;;  %v7081_v7 = vld [vmem:[#allocation2 + $0x418] sm:$0xff] }
0x142b   : > { %6496 = vmatprep.subr.mxu1 %v7436_v8 }
0x142c   : > { %6497 = vmatpush3.msra.mxu1 %v7078_v21  ;;  %v7083_v21 = vld [vmem:[#allocation2 + $0x8] sm:$0xff] }
0x142d   : > { %6501 = vmatprep.subr.mxu1 %v7436_v8 }
0x14cd   : > { %v6465_v23 = vpop.f32.mrf.mxu1 }
0x14ce   : > { %6499 = vmatmul.mubr.f32.vlgmr.msra.gmra.mxu1 %v6465_v23  ;;  %v7087_v23 = vld [vmem:[#allocation2 + $0x408] sm:$0xff] }
0x14cf   : > { %6502 = vmatpush3.msra.mxu1 %v3151_v12  ;;  %v2955_v26 = vpop.f32.mrf.mxu1  ;;  %6533 = vmatprep.mubr.msk.f32.mxu1 %vm7437_vm1, %v7436_v8  ;;  %v7086_v12 = vld [vmem:[#allocation2 + $0x10] sm:$0xff] }
0x14d0   : > { %6503 = vmatprep.subr.mxu1 %v7436_v8  ;;  %3029 = vmatmul.mubr.f32.vlgmr.msra.gmra.mxu0 %v2955_v26  ;;  %v7091_v26 = vld [vmem:[#allocation2 + $0x18] sm:$0xff] }
0x14d1   : > { %5629 = vmatpush3.msra.mxu0 %v3119_v24  ;;  %6504 = vmatpush3.msra.mxu1 %v3150_v25  ;;  %v7088_v24 = vld [vmem:[#allocation2 + $0x518] sm:$0xff]  ;;  %v7089_v25 = vld [vmem:[#allocation2 + $0x480] sm:$0xff] }
0x14d2   : > { %5630 = vmatprep.subr.mxu0 %v3134_v30  ;;  %3217 = vmatprep.mubr.f32.mxu0 %v7664_v28  ;;  %v7092_v30 = vld [vmem:[#allocation2 + $0x478] sm:$0xff] }
0x14d3   : > { %6505 = vmatprep.subr.mxu1 %v7436_v8  ;;  %5631 = vmatpush3.msra.mxu0 %v3118_v31  ;;  %v7093_v31 = vld [vmem:[#allocation2 + $0x510] sm:$0xff] }
0x14d4   : > { %6506 = vmatpush3.msra.mxu1 %v3149_v32  ;;  %5632 = vmatprep.subr.mxu0 %v3133_v36  ;;  %v7094_v32 = vld [vmem:[#allocation2 + $0x3f8] sm:$0xff]  ;;  %v7095_v36 = vld [vmem:[#allocation2 + $0x470] sm:$0xff] }
0x14d5   : > { %6507 = vmatprep.subr.mxu1 %v7436_v8  ;;  %5633 = vmatpush3.msra.mxu0 %v3117_v37  ;;  %v7096_v37 = vld [vmem:[#allocation2 + $0x508] sm:$0xff] }
0x14d6   : > { %6508 = vmatpush3.msra.mxu1 %v3148_v38  ;;  %5634 = vmatprep.subr.mxu0 %v3132_v39  ;;  %v7097_v38 = vld [vmem:[#allocation2 + $0x3f0] sm:$0xff]  ;;  %v7098_v39 = vld [vmem:[#allocation2 + $0x468] sm:$0xff] }
0x14d7   : > { %6509 = vmatprep.subr.mxu1 %v7436_v8  ;;  %5635 = vmatpush3.msra.mxu0 %v3116_v40  ;;  %v7099_v40 = vld [vmem:[#allocation2 + $0x500] sm:$0xff] }
0x14d8   : > { %6510 = vmatpush3.msra.mxu1 %v3147_v41  ;;  %5636 = vmatprep.subr.mxu0 %v3131_v42  ;;  %v7100_v41 = vld [vmem:[#allocation2 + $0x3e8] sm:$0xff]  ;;  %v7101_v42 = vld [vmem:[#allocation2 + $0x460] sm:$0xff] }
0x14d9   : > { %6511 = vmatprep.subr.mxu1 %v7436_v8  ;;  %5637 = vmatpush3.msra.mxu0 %v3115_v33  ;;  %v7102_v33 = vld [vmem:[#allocation2 + $0x4f8] sm:$0xff] }
0x14da   : > { %6512 = vmatpush3.msra.mxu1 %v3146_v43  ;;  %5638 = vmatprep.subr.mxu0 %v3130_v35  ;;  %v7103_v43 = vld [vmem:[#allocation2 + $0x3e0] sm:$0xff]  ;;  %v7104_v35 = vld [vmem:[#allocation2 + $0x458] sm:$0xff] }
0x14db   : > { %6513 = vmatprep.subr.mxu1 %v7436_v8  ;;  %5639 = vmatpush3.msra.mxu0 %v3114_v44  ;;  %v7105_v44 = vld [vmem:[#allocation2 + $0x4f0] sm:$0xff] }
0x14dc   : > { %6514 = vmatpush3.msra.mxu1 %v3145_v45  ;;  %5640 = vmatprep.subr.mxu0 %v3129_v46  ;;  %v7106_v45 = vld [vmem:[#allocation2 + $0x3d8] sm:$0xff]  ;;  %v7107_v46 = vld [vmem:[#allocation2 + $0x450] sm:$0xff] }
0x14dd   : > { %6515 = vmatprep.subr.mxu1 %v7436_v8  ;;  %5641 = vmatpush3.msra.mxu0 %v3113_v49  ;;  %v7108_v49 = vld [vmem:[#allocation2 + $0x4e8] sm:$0xff] }
0x14de   : > { %6516 = vmatpush3.msra.mxu1 %v3144_v50  ;;  %5642 = vmatprep.subr.mxu0 %v3128_v51  ;;  %v7109_v50 = vld [vmem:[#allocation2 + $0x3d0] sm:$0xff]  ;;  %v7110_v51 = vld [vmem:[#allocation2 + $0x448] sm:$0xff] }
0x14df   : > { %6517 = vmatprep.subr.mxu1 %v7436_v8  ;;  %5643 = vmatpush3.msra.mxu0 %v3112_v52  ;;  %v7111_v52 = vld [vmem:[#allocation2 + $0x4e0] sm:$0xff] }
0x14e0   : > { %6518 = vmatpush3.msra.mxu1 %v3143_v54  ;;  %5644 = vmatprep.subr.mxu0 %v3127_v55  ;;  %v7112_v54 = vld [vmem:[#allocation2 + $0x3c8] sm:$0xff]  ;;  %v7113_v55 = vld [vmem:[#allocation2 + $0x440] sm:$0xff] }
0x14e1   : > { %6519 = vmatprep.subr.mxu1 %v7436_v8  ;;  %5645 = vmatpush3.msra.mxu0 %v3111_v56  ;;  %v7114_v56 = vld [vmem:[#allocation2 + $0x4d8] sm:$0xff] }
0x14e2   : > { %6520 = vmatpush3.msra.mxu1 %v3142_v61  ;;  %5646 = vmatprep.subr.mxu0 %v3126_v13  ;;  %v7115_v61 = vld [vmem:[#allocation2 + $0x3c0] sm:$0xff]  ;;  %v7116_v13 = vld [vmem:[#allocation2 + $0x438] sm:$0xff] }
0x14e3   : > { %6521 = vmatprep.subr.mxu1 %v7436_v8  ;;  %5647 = vmatpush3.msra.mxu0 %v3110_v57  ;;  %v7117_v57 = vld [vmem:[#allocation2 + $0x4d0] sm:$0xff] }
0x14e4   : > { %6522 = vmatpush3.msra.mxu1 %v3141_v58  ;;  %5648 = vmatprep.subr.mxu0 %v3125_v59  ;;  %v7118_v58 = vld [vmem:[#allocation2 + $0x3b8] sm:$0xff]  ;;  %v7119_v59 = vld [vmem:[#allocation2 + $0x430] sm:$0xff] }
0x14e5   : > { %6523 = vmatprep.subr.mxu1 %v7436_v8  ;;  %5649 = vmatpush3.msra.mxu0 %v3109_v60  ;;  %v7120_v60 = vld [vmem:[#allocation2 + $0x4c8] sm:$0xff] }
0x14e6   : > { %6524 = vmatpush3.msra.mxu1 %v3140_v62  ;;  %5650 = vmatprep.subr.mxu0 %v3124_v63  ;;  %v7121_v62 = vld [vmem:[#allocation2 + $0x3b0] sm:$0xff]  ;;  %v7122_v63 = vld [vmem:[#allocation2 + $0x428] sm:$0xff] }
0x14e7   : > { %6525 = vmatprep.subr.mxu1 %v7436_v8  ;;  %5651 = vmatpush3.msra.mxu0 %v3108_v1  ;;  %v7123_v1 = vld [vmem:[#allocation2 + $0x4c0] sm:$0xff] }
0x14e8   : > { %6526 = vmatpush3.msra.mxu1 %v3139_v4  ;;  %5652 = vmatprep.subr.mxu0 %v3123_v5  ;;  %v7124_v4 = vld [vmem:[#allocation2 + $0x3a8] sm:$0xff]  ;;  %v7125_v5 = vld [vmem:[#allocation2 + $0x420] sm:$0xff] }
0x14e9   : > { %6527 = vmatprep.subr.mxu1 %v7436_v8  ;;  %5653 = vmatpush3.msra.mxu0 %v3107_v6  ;;  %v7126_v6 = vld [vmem:[#allocation2 + $0x4b8] sm:$0xff] }
0x14ea   : > { %6528 = vmatpush3.msra.mxu1 %v3138_v9  ;;  %5654 = vmatprep.subr.mxu0 %v3122_v11  ;;  %v7127_v9 = vld [vmem:[#allocation2 + $0x3a0] sm:$0xff]  ;;  %v7128_v11 = vld [vmem:[#allocation2 + $0x4b0] sm:$0xff] }
0x14eb   : > { %6529 = vmatprep.subr.mxu1 %v7436_v8  ;;  %5655 = vmatpush3.msra.mxu0 %v3106_v2  ;;  %v7129_v2 = vld [vmem:[#allocation2 + $0x628] sm:$0xff] }
0x14ec   : > { %6530 = vmatpush3.msra.mxu1 %v3137_v14  ;;  %5656 = vmatprep.subr.mxu0 %v3121_v15  ;;  %v7130_v14 = vld [vmem:[#allocation2 + $0x4a8] sm:$0xff]  ;;  %v7131_v15 = vld [vmem:[#allocation2 + $0x4a0] sm:$0xff] }
0x14ed   : > { %6531 = vmatprep.subr.mxu1 %v7436_v8  ;;  %5657 = vmatpush3.msra.mxu0 %v3105_v10 }
0x14ee   : > { %6532 = vmatpush3.msra.mxu1 %v3136_v17  ;;  %5658 = vmatprep.subr.mxu0 %v3120_v19 }
0x14ef   : > { %6534 = vmatmul.mubr.f32.vlgmr.msra.gmra.mxu1 %v7674_v0  ;;  %5659 = vmatpush3.msra.mxu0 %v3104_v20  ;;  %v7082_v0 = vld [vmem:[#allocation2 + $0x490] sm:$0xff] }
0x14f0   : > { %3481 = vmatprep.mubr.f32.mxu1 %v7710_v29  ;;  %3218 = vmatmul.mubr.f32.vlgmr.msra.gmra.mxu0 %v7682_v18  ;;  %v7084_v18 = vld [vmem:[#allocation2 + $0x410] sm:$0xff] }
0x14f1   : > { %6536 = vmatprep.subr.mxu0 %v7708_v27  ;;  %6540 = vmatprep.mubr.msk.f32.mxu0 %vm163_vm0, %v7079_v34 }
0x14f2   : > { %6537 = vmatpush3.msra.mxu0 %v7708_v27  ;;  %5686 = vmatprep.subr.mxu1 %v7080_v3 }
0x14f3   : > { %6538 = vmatprep.subr.mxu0 %v7710_v29  ;;  %5687 = vmatpush3.msra.mxu1 %v7081_v7 }
0x14f4   : > { %6539 = vmatpush3.msra.mxu0 %v7710_v29  ;;  %5688 = vmatprep.subr.mxu1 %v7082_v0  ;;  %v7090_v29 = vld [vmem:[#allocation2 + $0x400] sm:$0xff] }
0x14f5   : > { %6541 = vmatmul.mubr.msk.f32.vlgmr.msra.gmra.mxu0 %vm163_vm0, %v7083_v21  ;;  %5689 = vmatpush3.msra.mxu1 %v7084_v18  ;;  %v3152_v21 = vld [vmem:[#allocation2 + $0xbf0] sm:$0xff] }
0x14f6   : > { %5690 = vmatprep.subr.mxu1 %v7085_v22  ;;  %6543 = vmatprep.mubr.msk.f32.mxu0 %vm163_vm0, %v7086_v12  ;;  %v7132_v22 = vld [vmem:[#allocation2 + $0xa58] sm:$0xff] }
0x14f7   : > { %5691 = vmatpush3.msra.mxu1 %v7087_v23  ;;  %6546 = vmatprep.subr.mxu0 %v7088_v24 }
0x14f8   : > { %5692 = vmatprep.subr.mxu1 %v7089_v25  ;;  %6547 = vmatpush3.msra.mxu0 %v7088_v24 }
0x14f9   : > { %5693 = vmatpush3.msra.mxu1 %v7090_v29  ;;  %6544 = vmatmul.mubr.msk.f32.gmra.mxu0 %vm163_vm0, %v7091_v26 }
0x14fa   : > { %5694 = vmatprep.subr.mxu1 %v7092_v30  ;;  %6548 = vmatprep.subr.mxu0 %v7093_v31 }
0x14fb   : > { %5695 = vmatpush3.msra.mxu1 %v7094_v32  ;;  %6549 = vmatpush3.msra.mxu0 %v7093_v31  ;;  %v7133_v32 = vld [vmem:[#allocation2 + $0x5a8] sm:$0xff] }
0x14fc   : > { %5696 = vmatprep.subr.mxu1 %v7095_v36  ;;  %6550 = vmatprep.subr.mxu0 %v7096_v37  ;;  %v7134_v36 = vld [vmem:[#allocation2 + $0x620] sm:$0xff] }
0x14fd   : > { %5697 = vmatpush3.msra.mxu1 %v7097_v38  ;;  %6551 = vmatpush3.msra.mxu0 %v7096_v37  ;;  %v7135_v38 = vld [vmem:[#allocation2 + $0x5a0] sm:$0xff] }
0x14fe   : > { %5698 = vmatprep.subr.mxu1 %v7098_v39  ;;  %6552 = vmatprep.subr.mxu0 %v7099_v40  ;;  %v7136_v39 = vld [vmem:[#allocation2 + $0x618] sm:$0xff] }
0x14ff   : > { %5699 = vmatpush3.msra.mxu1 %v7100_v41  ;;  %6553 = vmatpush3.msra.mxu0 %v7099_v40  ;;  %v7137_v40 = vld [vmem:[#allocation2 + $0x598] sm:$0xff]  ;;  %v7139_v41 = vld [vmem:[#allocation2 + $0x590] sm:$0xff] }
0x1500   : > { %5700 = vmatprep.subr.mxu1 %v7101_v42  ;;  %6554 = vmatprep.subr.mxu0 %v7102_v33  ;;  %v7140_v42 = vld [vmem:[#allocation2 + $0x608] sm:$0xff] }
0x1501   : > { %5701 = vmatpush3.msra.mxu1 %v7103_v43  ;;  %6555 = vmatpush3.msra.mxu0 %v7102_v33  ;;  %v7141_v33 = vld [vmem:[#allocation2 + $0x588] sm:$0xff]  ;;  %v7142_v43 = vld [vmem:[#allocation2 + $0x600] sm:$0xff] }
0x1502   : > { %5702 = vmatprep.subr.mxu1 %v7104_v35  ;;  %6556 = vmatprep.subr.mxu0 %v7105_v44  ;;  %v7143_v35 = vld [vmem:[#allocation2 + $0x580] sm:$0xff] }
0x1503   : > { %5703 = vmatpush3.msra.mxu1 %v7106_v45  ;;  %6557 = vmatpush3.msra.mxu0 %v7105_v44  ;;  %v7144_v44 = vld [vmem:[#allocation2 + $0x5f8] sm:$0xff] }
0x1504   : > { %5704 = vmatprep.subr.mxu1 %v7107_v46  ;;  %6558 = vmatprep.subr.mxu0 %v7108_v49  ;;  %v7145_v45 = vld [vmem:[#allocation2 + $0x578] sm:$0xff]  ;;  %v7146_v46 = vld [vmem:[#allocation2 + $0x5f0] sm:$0xff] }
0x1505   : > { %5705 = vmatpush3.msra.mxu1 %v7109_v50  ;;  %6559 = vmatpush3.msra.mxu0 %v7108_v49  ;;  %v7147_v49 = vld [vmem:[#allocation2 + $0x570] sm:$0xff]  ;;  %v7148_v50 = vld [vmem:[#allocation2 + $0x5e8] sm:$0xff] }
0x1506   : > { %5706 = vmatprep.subr.mxu1 %v7110_v51  ;;  %6560 = vmatprep.subr.mxu0 %v7111_v52  ;;  %v7149_v51 = vld [vmem:[#allocation2 + $0x568] sm:$0xff] }
0x1507   : > { %5707 = vmatpush3.msra.mxu1 %v7112_v54  ;;  %6561 = vmatpush3.msra.mxu0 %v7111_v52  ;;  %v7150_v52 = vld [vmem:[#allocation2 + $0x5e0] sm:$0xff] }
0x1508   : > { %5708 = vmatprep.subr.mxu1 %v7113_v55  ;;  %6562 = vmatprep.subr.mxu0 %v7114_v56  ;;  %v7151_v54 = vld [vmem:[#allocation2 + $0x560] sm:$0xff]  ;;  %v7152_v55 = vld [vmem:[#allocation2 + $0x5d8] sm:$0xff] }
0x1509   : > { %5709 = vmatpush3.msra.mxu1 %v7115_v61  ;;  %6563 = vmatpush3.msra.mxu0 %v7114_v56  ;;  %v7153_v56 = vld [vmem:[#allocation2 + $0x558] sm:$0xff]  ;;  %v7154_v61 = vld [vmem:[#allocation2 + $0x5d0] sm:$0xff] }
0x150a   : > { %5710 = vmatprep.subr.mxu1 %v7116_v13  ;;  %6564 = vmatprep.subr.mxu0 %v7117_v57  ;;  %v7155_v13 = vld [vmem:[#allocation2 + $0x550] sm:$0xff] }
0x150b   : > { %5711 = vmatpush3.msra.mxu1 %v7118_v58  ;;  %6565 = vmatpush3.msra.mxu0 %v7117_v57  ;;  %v7156_v57 = vld [vmem:[#allocation2 + $0x5c8] sm:$0xff] }
0x150c   : > { %5712 = vmatprep.subr.mxu1 %v7119_v59  ;;  %6566 = vmatprep.subr.mxu0 %v7120_v60  ;;  %v7157_v58 = vld [vmem:[#allocation2 + $0x548] sm:$0xff]  ;;  %v7158_v59 = vld [vmem:[#allocation2 + $0x5c0] sm:$0xff] }
0x150d   : > { %5713 = vmatpush3.msra.mxu1 %v7121_v62  ;;  %6567 = vmatpush3.msra.mxu0 %v7120_v60  ;;  %v7159_v60 = vld [vmem:[#allocation2 + $0x540] sm:$0xff]  ;;  %v7160_v62 = vld [vmem:[#allocation2 + $0x5b8] sm:$0xff] }
0x150e   : > { %5714 = vmatprep.subr.mxu1 %v7122_v63  ;;  %6568 = vmatprep.subr.mxu0 %v7123_v1  ;;  %v7161_v63 = vld [vmem:[#allocation2 + $0x538] sm:$0xff] }
0x150f   : > { %5715 = vmatpush3.msra.mxu1 %v7124_v4  ;;  %6569 = vmatpush3.msra.mxu0 %v7123_v1  ;;  %v7162_v1 = vld [vmem:[#allocation2 + $0x5b0] sm:$0xff] }
0x1510   : > { %5716 = vmatprep.subr.mxu1 %v7125_v5  ;;  %6570 = vmatprep.subr.mxu0 %v7126_v6  ;;  %v7163_v4 = vld [vmem:[#allocation2 + $0x530] sm:$0xff] }
0x1511   : > { %5717 = vmatpush3.msra.mxu1 %v7127_v9  ;;  %6571 = vmatpush3.msra.mxu0 %v7126_v6 }
0x1512   : > { %6572 = vmatprep.subr.mxu0 %v7128_v11  ;;  %5745 = vmatprep.subr.mxu1 %v7129_v2 }
0x1513   : > { %6573 = vmatpush3.msra.mxu0 %v7128_v11 }
0x1514   : > { %6574 = vmatprep.subr.mxu0 %v7130_v14 }
0x1515   : > { %6575 = vmatpush3.msra.mxu0 %v7130_v14 }
0x1516   : > { %6576 = vmatprep.subr.mxu0 %v7131_v15 }
0x1517   : > { %6577 = vmatpush3.msra.mxu0 %v7131_v15 }
0x158e   : > { %v3100_v10 = vpop.f32.mrf.mxu1 }
0x1590   : > { %v6500_v17 = vpop.f32.mrf.mxu1  ;;  %v5608_v19 = vpop.f32.mrf.mxu0 }
0x1592   : > { %v5609_v20 = vpop.f32.mrf.mxu0 }
0x1593   : > { %v5610_v34 = vadd.f32 %v5609_v20, %v5608_v19 }
0x1595   : > { %v3031_v12 = vadd.f32 %v7132_v22, %v5610_v34 }
0x1597   : > { %v3101_v29 = vadd.f32 %v3100_v10, %v3031_v12 }
0x15af   : > { %v3289_v3 = vpop.f32.mrf.mxu1 }
0x15b0   : > { %v5660_v7 = vpop.f32.mrf.mxu0 }
0x15b1   : > { %v6535_v0 = vpop.f32.mrf.mxu1 }
0x15b2   : > { %v5661_v18 = vpop.f32.mrf.mxu0 }
0x15b3   : > { %v5662_v23 = vadd.f32 %v5661_v18, %v5660_v7 }
0x15b5   : > { %v3220_v24 = vadd.f32 %v5662_v23, %v3152_v21  ;;  %v6542_v25 = vpop.f32.mrf.mxu0 }
0x15b7   : > { %v3290_v26 = vadd.f32 %v3289_v3, %v3220_v24  ;;  %v3398_v30 = vpop.f32.mrf.mxu0 }
0x15b8   : > { %3482 = vmatmul.mubr.f32.vlgmr.msra.gmra.mxu1 %v3398_v30  ;;  %v7164_v30 = vld [vmem:[#allocation2 + $0xa60] sm:$0xff] }
0x15b9   : > { %3486 = vmatprep.mubr.f32.mxu1 %v7708_v27  ;;  %v7814_v31 = vadd.f32 %v3290_v26, %v3101_v29  ;;  %5746 = vmatpush3.msra.mxu1 %v7133_v32  ;;  %v7138_v27 = vld [vmem:[#allocation2 + $0x610] sm:$0xff]  ;;  %v6545_v10 = vpop.f32.mrf.mxu0 }
0x15ba   : > { %5747 = vmatprep.subr.mxu1 %v7134_v36  ;;  %v7165_v36 = vld [vmem:[#allocation2 + $0xa68] sm:$0xff] }
0x15bb   : > { %3294 = vadd.xlane.f32.xlu0 %v7814_v31  ;;  %v3306_v37 = vmul.f32 %v7814_v31, %v7814_v31  ;;  %5748 = vmatpush3.msra.mxu1 %v7135_v38  ;;  %v3408_v3 = vpop.f32.mrf.mxu0 }
0x15bc   : > { %3487 = vmatmul.mubr.f32.gmra.mxu1 %v6542_v25  ;;  %5749 = vmatprep.subr.mxu1 %v7136_v39  ;;  %v7166_v39 = vld [vmem:[#allocation2 + $0x728] sm:$0xff] }
0x15bd   : > { %3307 = vadd.xlane.f32.xlu1 %v3306_v37  ;;  %5750 = vmatpush3.msra.mxu1 %v7137_v40  ;;  %v7167_v40 = vld [vmem:[#allocation2 + $0x6a8] sm:$0xff] }
0x15be   : > { %5751 = vmatprep.subr.mxu1 %v7138_v27  ;;  %6578 = vmatprep.mubr.f32.mxu0 %v3408_v3  ;;  %v7169_v27 = vld [vmem:[#allocation2 + $0x6a0] sm:$0xff] }
0x15bf   : > { %5752 = vmatpush3.msra.mxu1 %v7139_v41  ;;  %6579 = vmatmul.mubr.f32.vlgmr.msra.gmra.mxu0 %v6545_v10  ;;  %v7170_v41 = vld [vmem:[#allocation2 + $0x718] sm:$0xff]  ;;  %v7200_v3 = vld [vmem:[#allocation2 + $0xc80] sm:$0xff] }
0x15c0   : > { %5753 = vmatprep.subr.mxu1 %v7140_v42  ;;  %6583 = vmatprep.mubr.msk.f32.mxu0 %vm1105_vm2, %v7735_v53  ;;  %v7171_v42 = vld [vmem:[#allocation2 + $0x698] sm:$0xff] }
0x15c1   : > { %5754 = vmatpush3.msra.mxu1 %v7141_v33  ;;  %v7172_v33 = vld [vmem:[#allocation2 + $0x710] sm:$0xff] }
0x15c2   : > { %5755 = vmatprep.subr.mxu1 %v7142_v43  ;;  %v7173_v43 = vld [vmem:[#allocation2 + $0x690] sm:$0xff] }
0x15c3   : > { %5756 = vmatpush3.msra.mxu1 %v7143_v35  ;;  %v7174_v35 = vld [vmem:[#allocation2 + $0x708] sm:$0xff] }
0x15c4   : > { %5757 = vmatprep.subr.mxu1 %v7144_v44  ;;  %v7175_v44 = vld [vmem:[#allocation2 + $0x688] sm:$0xff] }
0x15c5   : > { %5758 = vmatpush3.msra.mxu1 %v7145_v45  ;;  %v7177_v45 = vld [vmem:[#allocation2 + $0x680] sm:$0xff] }
0x15c6   : > { %5759 = vmatprep.subr.mxu1 %v7146_v46  ;;  %v7178_v46 = vld [vmem:[#allocation2 + $0x6f8] sm:$0xff] }
0x15c7   : > { %5760 = vmatpush3.msra.mxu1 %v7147_v49  ;;  %v7179_v49 = vld [vmem:[#allocation2 + $0x678] sm:$0xff] }
0x15c8   : > { %5761 = vmatprep.subr.mxu1 %v7148_v50  ;;  %v7180_v50 = vld [vmem:[#allocation2 + $0x6f0] sm:$0xff] }
0x15c9   : > { %5762 = vmatpush3.msra.mxu1 %v7149_v51  ;;  %v7181_v51 = vld [vmem:[#allocation2 + $0x670] sm:$0xff] }
0x15ca   : > { %5763 = vmatprep.subr.mxu1 %v7150_v52  ;;  %v7182_v52 = vld [vmem:[#allocation2 + $0x6e8] sm:$0xff] }
0x15cb   : > { %5764 = vmatpush3.msra.mxu1 %v7151_v54  ;;  %v7183_v54 = vld [vmem:[#allocation2 + $0x668] sm:$0xff] }
0x15cc   : > { %5765 = vmatprep.subr.mxu1 %v7152_v55  ;;  %v7184_v55 = vld [vmem:[#allocation2 + $0x6e0] sm:$0xff] }
0x15cd   : > { %5766 = vmatpush3.msra.mxu1 %v7153_v56  ;;  %v7185_v56 = vld [vmem:[#allocation2 + $0x660] sm:$0xff] }
0x15ce   : > { %5767 = vmatprep.subr.mxu1 %v7154_v61  ;;  %v7186_v61 = vld [vmem:[#allocation2 + $0x6d8] sm:$0xff] }
0x15cf   : > { %5768 = vmatpush3.msra.mxu1 %v7155_v13  ;;  %v7187_v13 = vld [vmem:[#allocation2 + $0x658] sm:$0xff] }
0x15d0   : > { %5769 = vmatprep.subr.mxu1 %v7156_v57  ;;  %v7188_v57 = vld [vmem:[#allocation2 + $0x6d0] sm:$0xff] }
0x15d1   : > { %5770 = vmatpush3.msra.mxu1 %v7157_v58  ;;  %v7189_v58 = vld [vmem:[#allocation2 + $0x650] sm:$0xff] }
0x15d2   : > { %5771 = vmatprep.subr.mxu1 %v7158_v59  ;;  %v7190_v59 = vld [vmem:[#allocation2 + $0x6c8] sm:$0xff] }
0x15d3   : > { %5772 = vmatpush3.msra.mxu1 %v7159_v60  ;;  %v7191_v60 = vld [vmem:[#allocation2 + $0x648] sm:$0xff] }
0x15d4   : > { %5773 = vmatprep.subr.mxu1 %v7160_v62  ;;  %v7192_v62 = vld [vmem:[#allocation2 + $0x6c0] sm:$0xff] }
0x15d5   : > { %5774 = vmatpush3.msra.mxu1 %v7161_v63  ;;  %v7193_v63 = vld [vmem:[#allocation2 + $0x640] sm:$0xff] }
0x15d6   : > { %5775 = vmatprep.subr.mxu1 %v7162_v1  ;;  %v7194_v1 = vld [vmem:[#allocation2 + $0x6b8] sm:$0xff] }
0x15d7   : > { %5776 = vmatpush3.msra.mxu1 %v7163_v4  ;;  %v7195_v4 = vld [vmem:[#allocation2 + $0x638] sm:$0xff] }
0x1644   : > { %v3295_v5 = vpop.xlane.xlu0 %3294 }
0x1645   : > { %v3296_v6 = vrot.slane %v3295_v5, 4 }
0x1646   : > { %v3308_v9 = vpop.xlane.xlu1 %3307 }
0x1647   : > { %v3297_v11 = vadd.f32 %v3296_v6, %v3295_v5  ;;  %v3309_v2 = vrot.slane %v3308_v9, 4  ;;  %v7196_v5 = vld [vmem:[#allocation2 + $0x6b0] sm:$0xff] }
0x1648   : > { %v7197_v6 = vld [vmem:[#allocation2 + $0x630] sm:$0xff] }
0x1649   : > { %v3298_v14 = vrot.slane %v3297_v11, 2  ;;  %v3310_v15 = vadd.f32 %v3309_v2, %v3308_v9 }
0x164b   : > { %v3311_v17 = vrot.slane %v3310_v15, 2  ;;  %v3299_v19 = vadd.f32 %v3298_v14, %v3297_v11  ;;  %v7198_v14 = vld [vmem:[#allocation2 + $0x528] sm:$0xff] }
0x164d   : > { %v3300_v20 = vrot.slane %v3299_v19, 1  ;;  %v3312_v34 = vadd.f32 %v3311_v17, %v3310_v15 }
0x164f   : > { %v3301_v7 = vadd.f32 %v3300_v20, %v3299_v19  ;;  %v3313_v0 = vrot.slane %v3312_v34, 1 }
0x1651   : > { %6865 = vpush %v3301_v7  ;;  %v3314_v21 = vadd.f32 %v3313_v0, %v3312_v34  ;;  %v7199_v34 = vld [vmem:[#allocation2 + $0x30] sm:$0xff]  ;;  %v7201_v7 = vld [vmem:[#allocation2 + $0xc78] sm:$0xff] }
0x1652   : > { %v7202_v0 = vld [vmem:[#allocation2 + $0xc70] sm:$0xff] }
0x1653   : > { %6867 = vpush %v3314_v21  ;;  %v7203_v21 = vld [vmem:[#allocation2 + $0xc68] sm:$0xff] }
0x1678   : > { %v5718_v18 = vpop.f32.mrf.mxu1 }
0x167a   : > { %v5719_v22 = vpop.f32.mrf.mxu1 }
0x167b   : > { %v7821_v12 = vadd.f32 %v5719_v22, %v5718_v18  ;;  %v7204_v18 = vld [vmem:[#allocation2 + $0xc60] sm:$0xff]  ;;  %v7205_v22 = vld [vmem:[#allocation2 + $0xc58] sm:$0xff] }
0x167c   : > { %v5721_v9 = vpop.f32.mrf.mxu1 }
0x167e   : > { %v5722_v11 = vpop.f32.mrf.mxu1 }
0x167f   : > { %v5723_v2 = vadd.f32 %v5722_v11, %v5721_v9  ;;  %v6580_v10 = vpop.f32.mrf.mxu0 }
0x1681   : > { %v3489_v15 = vadd.f32 %v7198_v14, %v5723_v2  ;;  %v7833_v19 = vpop.f32.mrf.mxu0 }
0x1682   : > { %s6866_s19 = spop %6865 }
0x1683   : > { %s3305_s20 = smul.f32 0.0009765625, %s6866_s19  ;;  %v7831_v17 = vadd.f32 %v6580_v10, %v3489_v15 }
0x1684   : > { %s6868_s21 = spop %6867 }
0x1685   : > { %s3319_s22 = smul.f32 %s3305_s20, %s3305_s20  ;;  %v3321_v25 = vstv %s3305_s20 }
0x1686   : > { %s3318_s23 = smul.f32 0.0009765625, %s6868_s21  ;;  %v3322_v53 = vsub.f32 %v7814_v31, %v3321_v25  ;;  %v7168_v31 = vld [vmem:[#allocation2 + $0x720] sm:$0xff] }
0x1687   : > { %v7208_v25 = vld [vmem:[#allocation2 + $0xc40] sm:$0xff] }
0x1688   : > { %s3320_s24 = ssub.f32 %s3318_s23, %s3319_s22 }
0x168a   : > { %s3323_s25 = sadd.f32 1e-05, %s3320_s24 }
0x168c   : > { %v3324_v23 = vstv %s3323_s25  ;;  %s5022_s25 = sshll.u32 %s8002_s10, 2 }
0x168d   : > { %6924 = vrsqrt.f32 %v3324_v23  ;;  %v7206_v23 = vld [vmem:[#allocation2 + $0xc50] sm:$0xff] }
0x169a   : > { %v6925_v24 = vpop.eup %6924 }
0x169b   : > { %6869 = vpush %v6925_v24  ;;  %v7207_v24 = vld [vmem:[#allocation2 + $0xc48] sm:$0xff] }
0x16cc   : > { %s6870_s26 = spop %6869 }
0x16cd   : > { %v3327_v29 = vstv %s6870_s26 }
0x16ce   : > { %v3328_v26 = vmul.f32 %v3327_v29, %v3322_v53  ;;  %v7209_v53 = vld [vmem:[#allocation2 + $0xc38] sm:$0xff]  ;;  %v7210_v29 = vld [vmem:[#allocation2 + $0xc30] sm:$0xff] }
0x16d0   : > { %v3329_v32 = vmul.f32 %v7164_v30, %v3328_v26  ;;  %v7211_v26 = vld [vmem:[#allocation2 + $0xc28] sm:$0xff]  ;;  %v7212_v30 = vld [vmem:[#allocation2 + $0xc20] sm:$0xff] }
0x16d2   : > { %v3330_v37 = vadd.f32 %v7165_v36, %v3329_v32  ;;  %v7213_v32 = vld [vmem:[#allocation2 + $0xc18] sm:$0xff]  ;;  %v7214_v36 = vld [vmem:[#allocation2 + $0xc10] sm:$0xff] }
0x16d4   : > { %v7824_v38 = vmax.f32 %v3330_v37, 0.0  ;;  %v7215_v37 = vld [vmem:[#allocation2 + $0xc08] sm:$0xff] }
0x16d6   : > { %6581 = vmatprep.subr.mxu0 %v7824_v38 }
0x16d7   : > { %6582 = vmatpush3.msra.mxu0 %v7824_v38 }
0x16d8   : > { %6584 = vmatmul.mubr.msk.f32.vlgmr.msra.gmra.mxu0 %vm1105_vm2, %v7739_v16  ;;  %5780 = vmatprep.subr.mxu0 %v7166_v39  ;;  %v7176_v16 = vld [vmem:[#allocation2 + $0x700] sm:$0xff] }
0x16d9   : > { %5781 = vmatpush3.msra.mxu0 %v7167_v40 }
0x16da   : > { %5782 = vmatprep.subr.mxu0 %v7168_v31 }
0x16db   : > { %5783 = vmatpush3.msra.mxu0 %v7169_v27 }
0x16dc   : > { %5784 = vmatprep.subr.mxu0 %v7170_v41 }
0x16dd   : > { %5785 = vmatpush3.msra.mxu0 %v7171_v42 }
0x16de   : > { %5786 = vmatprep.subr.mxu0 %v7172_v33 }
0x16df   : > { %5787 = vmatpush3.msra.mxu0 %v7173_v43  ;;  %v7216_v43 = vld [vmem:[#allocation2 + $0x38] sm:$0xff] }
0x16e0   : > { %5788 = vmatprep.subr.mxu0 %v7174_v35  ;;  %v7217_v35 = vld [vmem:[#allocation2 + $0xbf8] sm:$0xff] }
0x16e1   : > { %5789 = vmatpush3.msra.mxu0 %v7175_v44  ;;  %v7218_v44 = vld [vmem:[#allocation2 + $0x520] sm:$0xff] }
0x16e2   : > { %5790 = vmatprep.subr.mxu0 %v7176_v16  ;;  %v3484_v16 = vadd.f32 %v7218_v44, %v7821_v12  ;;  %v7235_v44 = vld [vmem:[#allocation2 + $0xcb8] sm:$0xff] }
0x16e3   : > { %5791 = vmatpush3.msra.mxu0 %v7177_v45 }
0x16e4   : > { %5792 = vmatprep.subr.mxu0 %v7178_v46  ;;  %v7219_v46 = vld [vmem:[#allocation2 + $0x738] sm:$0xff] }
0x16e5   : > { %5793 = vmatpush3.msra.mxu0 %v7179_v49 }
0x16e6   : > { %5794 = vmatprep.subr.mxu0 %v7180_v50 }
0x16e7   : > { %5795 = vmatpush3.msra.mxu0 %v7181_v51  ;;  %v3559_v51 = vadd.f32 %v7833_v19, %v3484_v16  ;;  %v7236_v16 = vld [vmem:[#allocation2 + $0xcb0] sm:$0xff] }
0x16e8   : > { %5796 = vmatprep.subr.mxu0 %v7182_v52 }
0x16e9   : > { %5797 = vmatpush3.msra.mxu0 %v7183_v54  ;;  %v7220_v54 = vld [vmem:[#allocation2 + $0x730] sm:$0xff] }
0x16ea   : > { %5798 = vmatprep.subr.mxu0 %v7184_v55 }
0x16eb   : > { %5799 = vmatpush3.msra.mxu0 %v7185_v56 }
0x16ec   : > { %5800 = vmatprep.subr.mxu0 %v7186_v61 }
0x16ed   : > { %5801 = vmatpush3.msra.mxu0 %v7187_v13 }
0x16ee   : > { %5802 = vmatprep.subr.mxu0 %v7188_v57 }
0x16ef   : > { %5803 = vmatpush3.msra.mxu0 %v7189_v58 }
0x16f0   : > { %5804 = vmatprep.subr.mxu0 %v7190_v59 }
0x16f1   : > { %5805 = vmatpush3.msra.mxu0 %v7191_v60 }
0x16f2   : > { %5806 = vmatprep.subr.mxu0 %v7192_v62 }
0x16f3   : > { %5807 = vmatpush3.msra.mxu0 %v7193_v63 }
0x16f4   : > { %5808 = vmatprep.subr.mxu0 %v7194_v1 }
0x16f5   : > { %5809 = vmatpush3.msra.mxu0 %v7195_v4 }
0x16f6   : > { %5810 = vmatprep.subr.mxu0 %v7196_v5 }
0x16f7   : > { %5811 = vmatpush3.msra.mxu0 %v7197_v6 }
0x16f8   : > { %6600 = vmatprep.subr.mxu0 %v7436_v8 }
0x1798   : > { %v7835_v20 = vpop.f32.mrf.mxu0 }
0x1799   : > { %3706 = vmatprep.mubr.f32.mxu1 %v7835_v20  ;;  %3776 = vmatprep.mubr.f32.mxu0 %v7835_v20 }
0x179a   : > { %3707 = vmatmul.mubr.f32.vlgmr.msra.gmra.mxu1 %v7824_v38  ;;  %3777 = vmatmul.mubr.f32.vlgmr.msra.gmra.mxu0 %v7824_v38  ;;  %v7859_v39 = vpop.f32.mrf.mxu0 }
0x179b   : > { %6590 = vmatprep.mubr.msk.f32.mxu1 %vm163_vm0, %v7199_v34  ;;  %6601 = vmatpush3.msra.mxu0 %v7200_v3 }
0x179c   : > { %6602 = vmatprep.subr.mxu0 %v7436_v8  ;;  %6632 = vmatprep.mubr.msk.f32.mxu0 %vm7437_vm1, %v7436_v8 }
0x179d   : > { %6603 = vmatpush3.msra.mxu0 %v7201_v7 }
0x179e   : > { %6604 = vmatprep.subr.mxu0 %v7436_v8 }
0x179f   : > { %6605 = vmatpush3.msra.mxu0 %v7202_v0 }
0x17a0   : > { %6606 = vmatprep.subr.mxu0 %v7436_v8 }
0x17a1   : > { %6607 = vmatpush3.msra.mxu0 %v7203_v21 }
0x17a2   : > { %6608 = vmatprep.subr.mxu0 %v7436_v8 }
0x17a3   : > { %6609 = vmatpush3.msra.mxu0 %v7204_v18  ;;  %v7221_v18 = vld [vmem:[#allocation2 + $0x380] sm:$0xff] }
0x17a4   : > { %6610 = vmatprep.subr.mxu0 %v7436_v8 }
0x17a5   : > { %6611 = vmatpush3.msra.mxu0 %v7205_v22 }
0x17a6   : > { %6612 = vmatprep.subr.mxu0 %v7436_v8 }
0x17a7   : > { %6613 = vmatpush3.msra.mxu0 %v7206_v23  ;;  %v7222_v23 = vld [vmem:[#allocation2 + $0x388] sm:$0xff] }
0x17a8   : > { %6614 = vmatprep.subr.mxu0 %v7436_v8 }
0x17a9   : > { %6615 = vmatpush3.msra.mxu0 %v7207_v24 }
0x17aa   : > { %6616 = vmatprep.subr.mxu0 %v7436_v8 }
0x17ab   : > { %6617 = vmatpush3.msra.mxu0 %v7208_v25  ;;  %v7223_v25 = vld [vmem:[#allocation2 + $0x398] sm:$0xff] }
0x17ac   : > { %6618 = vmatprep.subr.mxu0 %v7436_v8 }
0x17ad   : > { %6619 = vmatpush3.msra.mxu0 %v7209_v53 }
0x17ae   : > { %6620 = vmatprep.subr.mxu0 %v7436_v8 }
0x17af   : > { %6621 = vmatpush3.msra.mxu0 %v7210_v29  ;;  %v7224_v29 = vld [vmem:[#allocation2 + $0x390] sm:$0xff] }
0x17b0   : > { %6622 = vmatprep.subr.mxu0 %v7436_v8 }
0x17b1   : > { %6623 = vmatpush3.msra.mxu0 %v7211_v26 }
0x17b2   : > { %6624 = vmatprep.subr.mxu0 %v7436_v8 }
0x17b3   : > { %6625 = vmatpush3.msra.mxu0 %v7212_v30 }
0x17b4   : > { %6626 = vmatprep.subr.mxu0 %v7436_v8 }
0x17b5   : > { %6627 = vmatpush3.msra.mxu0 %v7213_v32 }
0x17b6   : > { %6628 = vmatprep.subr.mxu0 %v7436_v8 }
0x17b7   : > { %6629 = vmatpush3.msra.mxu0 %v7214_v36  ;;  %v7225_v36 = vld [vmem:[#allocation2 + $0xc00] sm:$0xff] }
0x17b8   : > { %6630 = vmatprep.subr.mxu0 %v7436_v8 }
0x17b9   : > { %6631 = vmatpush3.msra.mxu0 %v7215_v37  ;;  %v7226_v37 = vld [vmem:[#allocation2 + $0xd00] sm:$0xff] }
0x185a   : > { %v5777_v40 = vpop.f32.mrf.mxu1  ;;  %v5812_v31 = vpop.f32.mrf.mxu0 }
0x185c   : > { %v5778_v27 = vpop.f32.mrf.mxu1  ;;  %v5813_v41 = vpop.f32.mrf.mxu0 }
0x185d   : > { %v5814_v42 = vadd.f32 %v5813_v41, %v5812_v31  ;;  %v5779_v33 = vadd.f32 %v5778_v27, %v5777_v40  ;;  %v7227_v40 = vld [vmem:[#allocation2 + $0xcf8] sm:$0xff]  ;;  %v7228_v31 = vld [vmem:[#allocation2 + $0xcf0] sm:$0xff]  ;;  %v7229_v27 = vld [vmem:[#allocation2 + $0xce8] sm:$0xff] }
0x185e   : > { %v7230_v41 = vld [vmem:[#allocation2 + $0xce0] sm:$0xff] }
0x185f   : > { %6586 = vmatprep.subr.mxu1 %v5814_v42 }
0x1860   : > { %6587 = vmatpush3.msra.mxu1 %v5814_v42  ;;  %v7231_v42 = vld [vmem:[#allocation2 + $0xcd8] sm:$0xff] }
0x1861   : > { %6588 = vmatprep.subr.mxu1 %v5779_v33 }
0x1862   : > { %6589 = vmatpush3.msra.mxu1 %v5779_v33  ;;  %v7232_v33 = vld [vmem:[#allocation2 + $0xcd0] sm:$0xff] }
0x1863   : > { %6591 = vmatmul.mubr.msk.f32.vlgmr.msra.gmra.mxu1 %vm163_vm0, %v7216_v43  ;;  %v7233_v43 = vld [vmem:[#allocation2 + $0xcc8] sm:$0xff] }
0x1864   : > { %6597 = vmatprep.mubr.msk.f32.mxu1 %vm163_vm0, %v7217_v35  ;;  %v7234_v35 = vld [vmem:[#allocation2 + $0xcc0] sm:$0xff] }
0x1923   : > { %v6592_v45 = vpop.f32.mrf.mxu1 }
0x1924   : > { %v3854_v49 = vadd.f32 %v7219_v46, %v6592_v45  ;;  %v7237_v45 = vld [vmem:[#allocation2 + $0xca8] sm:$0xff]  ;;  %v7238_v46 = vld [vmem:[#allocation2 + $0xca0] sm:$0xff] }
0x1925   : > { %v3848_v50 = vpop.f32.mrf.mxu1 }
0x1926   : > { %v3858_v52 = vadd.f32 %v3854_v49, %v7831_v17  ;;  %v3849_v55 = vadd.f32 %v7220_v54, %v3848_v50  ;;  %v7239_v49 = vld [vmem:[#allocation2 + $0xc98] sm:$0xff]  ;;  %v7240_v50 = vld [vmem:[#allocation2 + $0xc90] sm:$0xff] }
0x1928   : > { %v3860_v56 = vadd.f32 %v3858_v52, %v7527_v47  ;;  %v3857_v61 = vadd.f32 %v3849_v55, %v3559_v51  ;;  %v7241_v51 = vld [vmem:[#allocation2 + $0xc88] sm:$0xff]  ;;  %v7242_v52 = vld [vmem:[#allocation2 + $0x838] sm:$0xff] }
0x192a   : > { %v3859_v13 = vadd.f32 %v3857_v61, %v7529_v48  ;;  %v3875_v59 = vmul.f32 %v3860_v56, %v3860_v56  ;;  %v7887_v61 = vld [vmem:[#allocation2 + $0x20] sm:$0xff] }
0x192c   : > { %v3861_v57 = vadd.f32 %v3860_v56, %v3859_v13  ;;  %v3874_v58 = vmul.f32 %v3859_v13, %v3859_v13 }
0x192e   : > { %3862 = vadd.xlane.f32.xlu0 %v3861_v57  ;;  %v3876_v12 = vadd.f32 %v3875_v59, %v3874_v58  ;;  %v7245_v57 = vld [vmem:[#allocation2 + $0x830] sm:$0xff]  ;;  %v7247_v59 = vld [vmem:[#allocation2 + $0x828] sm:$0xff] }
0x192f   : > { %v7246_v58 = vld [vmem:[#allocation2 + $0x7b0] sm:$0xff] }
0x1930   : > { %3877 = vadd.xlane.f32.xlu1 %v3876_v12  ;;  %v7248_v12 = vld [vmem:[#allocation2 + $0x7a8] sm:$0xff] }
0x19b7   : > { %v3863_v60 = vpop.xlane.xlu0 %3862 }
0x19b8   : > { %v3864_v62 = vrot.slane %v3863_v60, 4 }
0x19b9   : > { %v3878_v63 = vpop.xlane.xlu1 %3877 }
0x19ba   : > { %v3865_v1 = vadd.f32 %v3864_v62, %v3863_v60  ;;  %v3879_v4 = vrot.slane %v3878_v63, 4  ;;  %v7249_v60 = vld [vmem:[#allocation2 + $0x820] sm:$0xff] }
0x19bb   : > { %v7250_v62 = vld [vmem:[#allocation2 + $0x7a0] sm:$0xff] }
0x19bc   : > { %v3866_v5 = vrot.slane %v3865_v1, 2  ;;  %v3880_v6 = vadd.f32 %v3879_v4, %v3878_v63  ;;  %v7251_v63 = vld [vmem:[#allocation2 + $0x818] sm:$0xff]  ;;  %v7253_v4 = vld [vmem:[#allocation2 + $0x810] sm:$0xff] }
0x19be   : > { %v3881_v9 = vrot.slane %v3880_v6, 2  ;;  %v3867_v11 = vadd.f32 %v3866_v5, %v3865_v1  ;;  %v7252_v1 = vld [vmem:[#allocation2 + $0x798] sm:$0xff]  ;;  %v7254_v5 = vld [vmem:[#allocation2 + $0x790] sm:$0xff] }
0x19c0   : > { %v3868_v2 = vrot.slane %v3867_v11, 1  ;;  %v3882_v47 = vadd.f32 %v3881_v9, %v3880_v6  ;;  %v7255_v6 = vld [vmem:[#allocation2 + $0x808] sm:$0xff] }
0x19c1   : > { %v7256_v9 = vld [vmem:[#allocation2 + $0x788] sm:$0xff] }
0x19c2   : > { %v3869_v14 = vadd.f32 %v3868_v2, %v3867_v11  ;;  %v3883_v15 = vrot.slane %v3882_v47, 1  ;;  %v7257_v11 = vld [vmem:[#allocation2 + $0x800] sm:$0xff] }
0x19c3   : > { %v7258_v2 = vld [vmem:[#allocation2 + $0x780] sm:$0xff] }
0x19c4   : > { %6871 = vpush %v3869_v14  ;;  %v3884_v48 = vadd.f32 %v3883_v15, %v3882_v47  ;;  %v7259_v47 = vld [vmem:[#allocation2 + $0x7f8] sm:$0xff]  ;;  %v7261_v15 = vld [vmem:[#allocation2 + $0x7f0] sm:$0xff] }
0x19c5   : > { %v7260_v14 = vld [vmem:[#allocation2 + $0x778] sm:$0xff] }
0x19c6   : > { %6873 = vpush %v3884_v48  ;;  %v7262_v48 = vld [vmem:[#allocation2 + $0x770] sm:$0xff] }
0x19f5   : > { %s6872_s27 = spop %6871 }
0x19f6   : > { %s3873_s28 = smul.f32 0.00048828125, %s6872_s27 }
0x19f7   : > { %s6874_s29 = spop %6873 }
0x19f8   : > { %s3889_s30 = smul.f32 %s3873_s28, %s3873_s28  ;;  %v3891_v19 = vstv %s3873_s28  ;;  %s156_s28 = scalar_lea.vmem %s7999_s2, %s5022_s25 }
0x19f9   : > { %s3888_s3 = smul.f32 0.00048828125, %s6874_s29  ;;  %v3892_v34 = vsub.f32 %v3859_v13, %v3891_v19  ;;  %v3893_v3 = vsub.f32 %v3860_v56, %v3891_v19  ;;  %v7244_v13 = vld [vmem:[#allocation2 + $0x7b8] sm:$0xff]  ;;  %v7265_v19 = vld [vmem:[#allocation2 + $0x7e0] sm:$0xff] }
0x19fb   : > { %s3890_s4 = ssub.f32 %s3888_s3, %s3889_s30 }
0x19fd   : > { %s3894_s5 = sadd.f32 1e-05, %s3890_s4 }
0x19ff   : > { %v3895_v10 = vstv %s3894_s5 }
0x1a00   : > { %6926 = vrsqrt.f32 %v3895_v10  ;;  %v7263_v10 = vld [vmem:[#allocation2 + $0x7e8] sm:$0xff] }
0x1a0d   : > { %v6927_v17 = vpop.eup %6926 }
0x1a0e   : > { %6875 = vpush %v6927_v17  ;;  %v7264_v17 = vld [vmem:[#allocation2 + $0x768] sm:$0xff] }
0x1a3f   : > { %s6876_s6 = spop %6875 }
0x1a40   : > { %v3898_v7 = vstv %s6876_s6 }
0x1a41   : > { %v3899_v0 = vmul.f32 %v3898_v7, %v3892_v34  ;;  %v3900_v21 = vmul.f32 %v3898_v7, %v3893_v3  ;;  %v7266_v34 = vld [vmem:[#allocation2 + $0x760] sm:$0xff]  ;;  %v7267_v3 = vld [vmem:[#allocation2 + $0x7d8] sm:$0xff] }
0x1a42   : > { %v7268_v7 = vld [vmem:[#allocation2 + $0x758] sm:$0xff] }
0x1a43   : > { %v3901_v22 = vmul.f32 %v7221_v18, %v3899_v0  ;;  %v3902_v24 = vmul.f32 %v7222_v23, %v3900_v21  ;;  %v7269_v0 = vld [vmem:[#allocation2 + $0x7d0] sm:$0xff]  ;;  %v7271_v18 = vld [vmem:[#allocation2 + $0x7c8] sm:$0xff]  ;;  %v7273_v23 = vld [vmem:[#allocation2 + $0x7c0] sm:$0xff] }
0x1a44   : > { %v7270_v21 = vld [vmem:[#allocation2 + $0x750] sm:$0xff] }
0x1a45   : > { %v3904_v53 = vadd.f32 %v7223_v25, %v3902_v24  ;;  %v3903_v26 = vadd.f32 %v7224_v29, %v3901_v22  ;;  %v7272_v22 = vld [vmem:[#allocation2 + $0x748] sm:$0xff]  ;;  %v7274_v24 = vld [vmem:[#allocation2 + $0x740] sm:$0xff] }
0x1a47   : > { %v3906_v30 = vmax.f32 %v3904_v53, 0.0  ;;  %v3905_v32 = vmax.f32 %v3903_v26, 0.0 }
0x1a49   : > { %6593 = vmatprep.subr.mxu1 %v3906_v30 }
0x1a4a   : > { %6594 = vmatpush3.msra.mxu1 %v3906_v30 }
0x1a4b   : > { %6595 = vmatprep.subr.mxu1 %v3905_v32 }
0x1a4c   : > { %6596 = vmatpush3.msra.mxu1 %v3905_v32  ;;  %v7891_v32 = vld [vmem:[#allocation2 + $0x28] sm:$0xff] }
0x1a4d   : > { %6598 = vmatmul.mubr.msk.f32.vlgmr.msra.gmra.mxu1 %vm163_vm0, %v7225_v36  ;;  %6635 = vmatprep.subr.mxu1 %v7436_v8  ;;  %v7276_v36 = vld [vmem:[#allocation2 + $0x8b8] sm:$0xff] }
0x1a4e   : > { %6636 = vmatpush3.msra.mxu1 %v7226_v37  ;;  %6667 = vmatprep.mubr.msk.f32.mxu1 %vm7437_vm1, %v7436_v8  ;;  %v7277_v37 = vld [vmem:[#allocation2 + $0x8b0] sm:$0xff] }
0x1a4f   : > { %6637 = vmatprep.subr.mxu1 %v7436_v8 }
0x1a50   : > { %6638 = vmatpush3.msra.mxu1 %v7227_v40  ;;  %v7278_v40 = vld [vmem:[#allocation2 + $0x8a8] sm:$0xff] }
0x1a51   : > { %6639 = vmatprep.subr.mxu1 %v7436_v8 }
0x1a52   : > { %6640 = vmatpush3.msra.mxu1 %v7228_v31  ;;  %v7279_v31 = vld [vmem:[#allocation2 + $0x8a0] sm:$0xff] }
0x1a53   : > { %6641 = vmatprep.subr.mxu1 %v7436_v8 }
0x1a54   : > { %6642 = vmatpush3.msra.mxu1 %v7229_v27  ;;  %v7280_v27 = vld [vmem:[#allocation2 + $0x898] sm:$0xff] }
0x1a55   : > { %6643 = vmatprep.subr.mxu1 %v7436_v8 }
0x1a56   : > { %6644 = vmatpush3.msra.mxu1 %v7230_v41  ;;  %v7281_v41 = vld [vmem:[#allocation2 + $0x890] sm:$0xff] }
0x1a57   : > { %6645 = vmatprep.subr.mxu1 %v7436_v8 }
0x1a58   : > { %6646 = vmatpush3.msra.mxu1 %v7231_v42  ;;  %v7282_v42 = vld [vmem:[#allocation2 + $0x888] sm:$0xff] }
0x1a59   : > { %6647 = vmatprep.subr.mxu1 %v7436_v8 }
0x1a5a   : > { %6648 = vmatpush3.msra.mxu1 %v7232_v33  ;;  %v7283_v33 = vld [vmem:[#allocation2 + $0x880] sm:$0xff] }
0x1a5b   : > { %6649 = vmatprep.subr.mxu1 %v7436_v8 }
0x1a5c   : > { %6650 = vmatpush3.msra.mxu1 %v7233_v43  ;;  %v7284_v43 = vld [vmem:[#allocation2 + $0x878] sm:$0xff] }
0x1a5d   : > { %6651 = vmatprep.subr.mxu1 %v7436_v8 }
0x1a5e   : > { %6652 = vmatpush3.msra.mxu1 %v7234_v35  ;;  %v7285_v35 = vld [vmem:[#allocation2 + $0x870] sm:$0xff] }
0x1a5f   : > { %6653 = vmatprep.subr.mxu1 %v7436_v8 }
0x1a60   : > { %6654 = vmatpush3.msra.mxu1 %v7235_v44  ;;  %v7286_v44 = vld [vmem:[#allocation2 + $0x868] sm:$0xff] }
0x1a61   : > { %6655 = vmatprep.subr.mxu1 %v7436_v8 }
0x1a62   : > { %6656 = vmatpush3.msra.mxu1 %v7236_v16  ;;  %v7287_v16 = vld [vmem:[#allocation2 + $0x860] sm:$0xff] }
0x1a63   : > { %6657 = vmatprep.subr.mxu1 %v7436_v8 }
0x1a64   : > { %6658 = vmatpush3.msra.mxu1 %v7237_v45  ;;  %v7288_v45 = vld [vmem:[#allocation2 + $0x858] sm:$0xff] }
0x1a65   : > { %6659 = vmatprep.subr.mxu1 %v7436_v8 }
0x1a66   : > { %6660 = vmatpush3.msra.mxu1 %v7238_v46  ;;  %v7289_v46 = vld [vmem:[#allocation2 + $0x850] sm:$0xff] }
0x1a67   : > { %6661 = vmatprep.subr.mxu1 %v7436_v8 }
0x1a68   : > { %6662 = vmatpush3.msra.mxu1 %v7239_v49  ;;  %v7290_v49 = vld [vmem:[#allocation2 + $0x848] sm:$0xff] }
0x1a69   : > { %6663 = vmatprep.subr.mxu1 %v7436_v8 }
0x1a6a   : > { %6664 = vmatpush3.msra.mxu1 %v7240_v50  ;;  %v7291_v50 = vld [vmem:[#allocation2 + $0x840] sm:$0xff] }
0x1a6b   : > { %6665 = vmatprep.subr.mxu1 %v7436_v8 }
0x1a6c   : > { %6666 = vmatpush3.msra.mxu1 %v7241_v51  ;;  %v7292_v51 = vld [vmem:[#allocation2 + $0x9d0] sm:$0xff] }
0x1a6d   : > { %5860 = vmatprep.subr.mxu1 %v7242_v52 }
0x1b0d   : > { %v6599_v54 = vpop.f32.mrf.mxu1 }
0x1b0f   : > { %v3973_v55 = vpop.f32.mrf.mxu1 }
0x1b10   : > { %v3982_v56 = vmax.f32 %v3973_v55, %v6599_v54  ;;  %v7293_v55 = vld [vmem:[#allocation2 + $0x950] sm:$0xff] }
0x1b12   : > { %6633 = vmatmul.mubr.f32.vlgmr.msra.gmra.mxu0 %v3982_v56  ;;  %6668 = vmatmul.mubr.f32.vlgmr.msra.gmra.mxu1 %v3982_v56  ;;  %v7294_v56 = vld [vmem:[#allocation2 + $0x9c8] sm:$0xff] }
0x1b13   : > { %6672 = vmatprep.mubr.msk.f32.mxu0 %vm1105_vm2, %v7887_v61  ;;  %5861 = vmatpush3.msra.mxu1 %v7244_v13  ;;  %v7295_v13 = vld [vmem:[#allocation2 + $0x948] sm:$0xff] }
0x1b14   : > { %5862 = vmatprep.subr.mxu1 %v7245_v57  ;;  %v7296_v57 = vld [vmem:[#allocation2 + $0x9c0] sm:$0xff] }
0x1b15   : > { %5863 = vmatpush3.msra.mxu1 %v7246_v58  ;;  %v7297_v58 = vld [vmem:[#allocation2 + $0x940] sm:$0xff] }
0x1b16   : > { %5864 = vmatprep.subr.mxu1 %v7247_v59  ;;  %v7298_v59 = vld [vmem:[#allocation2 + $0x9b8] sm:$0xff] }
0x1b17   : > { %5865 = vmatpush3.msra.mxu1 %v7248_v12  ;;  %v7299_v12 = vld [vmem:[#allocation2 + $0x938] sm:$0xff] }
0x1b18   : > { %5866 = vmatprep.subr.mxu1 %v7249_v60  ;;  %v7300_v60 = vld [vmem:[#allocation2 + $0x9b0] sm:$0xff] }
0x1b19   : > { %5867 = vmatpush3.msra.mxu1 %v7250_v62  ;;  %v7301_v62 = vld [vmem:[#allocation2 + $0x930] sm:$0xff] }
0x1b1a   : > { %5868 = vmatprep.subr.mxu1 %v7251_v63  ;;  %v7302_v63 = vld [vmem:[#allocation2 + $0x9a8] sm:$0xff] }
0x1b1b   : > { %5869 = vmatpush3.msra.mxu1 %v7252_v1  ;;  %v7303_v1 = vld [vmem:[#allocation2 + $0x928] sm:$0xff] }
0x1b1c   : > { %5870 = vmatprep.subr.mxu1 %v7253_v4  ;;  %v7304_v4 = vld [vmem:[#allocation2 + $0x9a0] sm:$0xff] }
0x1b1d   : > { %5871 = vmatpush3.msra.mxu1 %v7254_v5  ;;  %v7306_v5 = vld [vmem:[#allocation2 + $0x998] sm:$0xff] }
0x1b1e   : > { %5872 = vmatprep.subr.mxu1 %v7255_v6  ;;  %v7307_v6 = vld [vmem:[#allocation2 + $0x918] sm:$0xff] }
0x1b1f   : > { %5873 = vmatpush3.msra.mxu1 %v7256_v9  ;;  %v7308_v9 = vld [vmem:[#allocation2 + $0x990] sm:$0xff] }
0x1b20   : > { %5874 = vmatprep.subr.mxu1 %v7257_v11  ;;  %v7309_v11 = vld [vmem:[#allocation2 + $0x910] sm:$0xff] }
0x1b21   : > { %5875 = vmatpush3.msra.mxu1 %v7258_v2  ;;  %v7310_v2 = vld [vmem:[#allocation2 + $0x988] sm:$0xff] }
0x1b22   : > { %5876 = vmatprep.subr.mxu1 %v7259_v47  ;;  %v7311_v47 = vld [vmem:[#allocation2 + $0x908] sm:$0xff] }
0x1b23   : > { %5877 = vmatpush3.msra.mxu1 %v7260_v14  ;;  %v7312_v14 = vld [vmem:[#allocation2 + $0x980] sm:$0xff] }
0x1b24   : > { %5878 = vmatprep.subr.mxu1 %v7261_v15  ;;  %v7313_v15 = vld [vmem:[#allocation2 + $0x900] sm:$0xff] }
0x1b25   : > { %5879 = vmatpush3.msra.mxu1 %v7262_v48  ;;  %v7314_v48 = vld [vmem:[#allocation2 + $0x978] sm:$0xff] }
0x1b26   : > { %5880 = vmatprep.subr.mxu1 %v7263_v10  ;;  %v7315_v10 = vld [vmem:[#allocation2 + $0x8f8] sm:$0xff] }
0x1b27   : > { %5881 = vmatpush3.msra.mxu1 %v7264_v17  ;;  %v7316_v17 = vld [vmem:[#allocation2 + $0x970] sm:$0xff] }
0x1b28   : > { %5882 = vmatprep.subr.mxu1 %v7265_v19  ;;  %v7317_v19 = vld [vmem:[#allocation2 + $0x8f0] sm:$0xff] }
0x1b29   : > { %5883 = vmatpush3.msra.mxu1 %v7266_v34  ;;  %v7318_v34 = vld [vmem:[#allocation2 + $0x968] sm:$0xff] }
0x1b2a   : > { %5884 = vmatprep.subr.mxu1 %v7267_v3  ;;  %v7319_v3 = vld [vmem:[#allocation2 + $0x8e8] sm:$0xff] }
0x1b2b   : > { %5885 = vmatpush3.msra.mxu1 %v7268_v7  ;;  %v7320_v7 = vld [vmem:[#allocation2 + $0x960] sm:$0xff] }
0x1b2c   : > { %5886 = vmatprep.subr.mxu1 %v7269_v0  ;;  %v7321_v0 = vld [vmem:[#allocation2 + $0x8e0] sm:$0xff] }
0x1b2d   : > { %5887 = vmatpush3.msra.mxu1 %v7270_v21  ;;  %v7322_v21 = vld [vmem:[#allocation2 + $0x958] sm:$0xff] }
0x1b2e   : > { %5888 = vmatprep.subr.mxu1 %v7271_v18  ;;  %v7323_v18 = vld [vmem:[#allocation2 + $0x8d8] sm:$0xff] }
0x1b2f   : > { %5889 = vmatpush3.msra.mxu1 %v7272_v22  ;;  %v7324_v22 = vld [vmem:[#allocation2 + $0xb68] sm:$0xff] }
0x1b30   : > { %5890 = vmatprep.subr.mxu1 %v7273_v23 }
0x1b31   : > { %5891 = vmatpush3.msra.mxu1 %v7274_v24 }
0x1bd2   : > { %v4049_v25 = vpop.f32.mrf.mxu0  ;;  %v4119_v53 = vpop.f32.mrf.mxu1 }
0x1bd3   : > { %v4123_v29 = vmax.f32 %v4049_v25, %v4119_v53 }
0x1bd4   : > { %v6634_v26 = vpop.f32.mrf.mxu0  ;;  %v6669_v30 = vpop.f32.mrf.mxu1 }
0x1bd5   : > { %6670 = vmatprep.subr.mxu0 %v4123_v29  ;;  %4263 = vmatprep.mubr.f32.mxu1 %v4123_v29  ;;  %v7325_v26 = vld [vmem:[#allocation2 + $0x8c0] sm:$0xff] }
0x1bd6   : > { %6671 = vmatpush3.msra.mxu0 %v4123_v29 }
0x1bd7   : > { %6673 = vmatmul.mubr.msk.f32.vlgmr.msra.gmra.mxu0 %vm1105_vm2, %v7891_v32  ;;  %6675 = vmatprep.subr.mxu0 %v7436_v8 }
0x1bd8   : > { %6676 = vmatpush3.msra.mxu0 %v7276_v36  ;;  %6707 = vmatprep.mubr.msk.f32.mxu0 %vm7437_vm1, %v7436_v8 }
0x1bd9   : > { %6677 = vmatprep.subr.mxu0 %v7436_v8 }
0x1bda   : > { %6678 = vmatpush3.msra.mxu0 %v7277_v37 }
0x1bdb   : > { %6679 = vmatprep.subr.mxu0 %v7436_v8 }
0x1bdc   : > { %6680 = vmatpush3.msra.mxu0 %v7278_v40 }
0x1bdd   : > { %6681 = vmatprep.subr.mxu0 %v7436_v8 }
0x1bde   : > { %6682 = vmatpush3.msra.mxu0 %v7279_v31 }
0x1bdf   : > { %6683 = vmatprep.subr.mxu0 %v7436_v8 }
0x1be0   : > { %6684 = vmatpush3.msra.mxu0 %v7280_v27 }
0x1be1   : > { %6685 = vmatprep.subr.mxu0 %v7436_v8 }
0x1be2   : > { %6686 = vmatpush3.msra.mxu0 %v7281_v41 }
0x1be3   : > { %6687 = vmatprep.subr.mxu0 %v7436_v8 }
0x1be4   : > { %6688 = vmatpush3.msra.mxu0 %v7282_v42 }
0x1be5   : > { %6689 = vmatprep.subr.mxu0 %v7436_v8 }
0x1be6   : > { %6690 = vmatpush3.msra.mxu0 %v7283_v33 }
0x1be7   : > { %6691 = vmatprep.subr.mxu0 %v7436_v8 }
0x1be8   : > { %6692 = vmatpush3.msra.mxu0 %v7284_v43 }
0x1be9   : > { %6693 = vmatprep.subr.mxu0 %v7436_v8 }
0x1bea   : > { %6694 = vmatpush3.msra.mxu0 %v7285_v35 }
0x1beb   : > { %6695 = vmatprep.subr.mxu0 %v7436_v8 }
0x1bec   : > { %6696 = vmatpush3.msra.mxu0 %v7286_v44 }
0x1bed   : > { %6697 = vmatprep.subr.mxu0 %v7436_v8 }
0x1bee   : > { %6698 = vmatpush3.msra.mxu0 %v7287_v16 }
0x1bef   : > { %6699 = vmatprep.subr.mxu0 %v7436_v8 }
0x1bf0   : > { %6700 = vmatpush3.msra.mxu0 %v7288_v45 }
0x1bf1   : > { %6701 = vmatprep.subr.mxu0 %v7436_v8 }
0x1bf2   : > { %6702 = vmatpush3.msra.mxu0 %v7289_v46 }
0x1bf3   : > { %6703 = vmatprep.subr.mxu0 %v7436_v8 }
0x1bf4   : > { %6704 = vmatpush3.msra.mxu0 %v7290_v49 }
0x1bf5   : > { %6705 = vmatprep.subr.mxu0 %v7436_v8 }
0x1bf6   : > { %6706 = vmatpush3.msra.mxu0 %v7291_v50 }
0x1bf7   : > { %5915 = vmatprep.subr.mxu0 %v7292_v51 }
0x1c97   : > { %v6674_v52 = vpop.f32.mrf.mxu0 }
0x1c98   : > { %6708 = vmatmul.mubr.f32.vlgmr.msra.gmra.mxu0 %v6674_v52 }
0x1c99   : > { %v4190_v54 = vpop.f32.mrf.mxu0  ;;  %5916 = vmatpush3.msra.mxu0 %v7293_v55 }
0x1c9a   : > { %4264 = vmatmul.mubr.f32.vlgmr.msra.gmra.mxu1 %v4190_v54  ;;  %5917 = vmatprep.subr.mxu0 %v7294_v56 }
0x1c9b   : > { %6712 = vmatprep.mubr.msk.f32.mxu1 %vm1105_vm2, %v7887_v61  ;;  %5918 = vmatpush3.msra.mxu0 %v7295_v13  ;;  %v7305_v61 = vld [vmem:[#allocation2 + $0x920] sm:$0xff] }
0x1c9c   : > { %5919 = vmatprep.subr.mxu0 %v7296_v57  ;;  %v7326_v57 = vld [vmem:[#allocation2 + $0x8c8] sm:$0xff] }
0x1c9d   : > { %5920 = vmatpush3.msra.mxu0 %v7297_v58 }
0x1c9e   : > { %5921 = vmatprep.subr.mxu0 %v7298_v59  ;;  %v7327_v59 = vld [vmem:[#allocation2 + $0x8d0] sm:$0xff] }
0x1c9f   : > { %5922 = vmatpush3.msra.mxu0 %v7299_v12 }
0x1ca0   : > { %5923 = vmatprep.subr.mxu0 %v7300_v60 }
0x1ca1   : > { %5924 = vmatpush3.msra.mxu0 %v7301_v62  ;;  %v7328_v62 = vld [vmem:[#allocation2 + $0xa50] sm:$0xff] }
0x1ca2   : > { %5925 = vmatprep.subr.mxu0 %v7302_v63  ;;  %v7329_v63 = vld [vmem:[#allocation2 + $0xa48] sm:$0xff] }
0x1ca3   : > { %5926 = vmatpush3.msra.mxu0 %v7303_v1  ;;  %v7330_v1 = vld [vmem:[#allocation2 + $0xa40] sm:$0xff] }
0x1ca4   : > { %5927 = vmatprep.subr.mxu0 %v7304_v4  ;;  %v7331_v4 = vld [vmem:[#allocation2 + $0xa38] sm:$0xff] }
0x1ca5   : > { %5928 = vmatpush3.msra.mxu0 %v7305_v61  ;;  %v7333_v61 = vld [vmem:[#allocation2 + $0xa28] sm:$0xff] }
0x1ca6   : > { %5929 = vmatprep.subr.mxu0 %v7306_v5  ;;  %v7334_v5 = vld [vmem:[#allocation2 + $0xa20] sm:$0xff] }
0x1ca7   : > { %5930 = vmatpush3.msra.mxu0 %v7307_v6  ;;  %v7335_v6 = vld [vmem:[#allocation2 + $0xa18] sm:$0xff] }
0x1ca8   : > { %5931 = vmatprep.subr.mxu0 %v7308_v9  ;;  %v7336_v9 = vld [vmem:[#allocation2 + $0xa10] sm:$0xff] }
0x1ca9   : > { %5932 = vmatpush3.msra.mxu0 %v7309_v11  ;;  %v7337_v11 = vld [vmem:[#allocation2 + $0xa08] sm:$0xff] }
0x1caa   : > { %5933 = vmatprep.subr.mxu0 %v7310_v2  ;;  %v7338_v2 = vld [vmem:[#allocation2 + $0xa00] sm:$0xff] }
0x1cab   : > { %5934 = vmatpush3.msra.mxu0 %v7311_v47  ;;  %v7339_v47 = vld [vmem:[#allocation2 + $0x9f8] sm:$0xff] }
0x1cac   : > { %5935 = vmatprep.subr.mxu0 %v7312_v14  ;;  %v7340_v14 = vld [vmem:[#allocation2 + $0x9f0] sm:$0xff] }
0x1cad   : > { %5936 = vmatpush3.msra.mxu0 %v7313_v15  ;;  %v7341_v15 = vld [vmem:[#allocation2 + $0x9e8] sm:$0xff] }
0x1cae   : > { %5937 = vmatprep.subr.mxu0 %v7314_v48  ;;  %v7342_v48 = vld [vmem:[#allocation2 + $0x9e0] sm:$0xff] }
0x1caf   : > { %5938 = vmatpush3.msra.mxu0 %v7315_v10  ;;  %v7343_v10 = vld [vmem:[#allocation2 + $0x9d8] sm:$0xff] }
0x1cb0   : > { %5939 = vmatprep.subr.mxu0 %v7316_v17 }
0x1cb1   : > { %5940 = vmatpush3.msra.mxu0 %v7317_v19  ;;  %v7344_v19 = vld [vmem:[#allocation2 + $0xbe8] sm:$0xff] }
0x1cb2   : > { %5941 = vmatprep.subr.mxu0 %v7318_v34 }
0x1cb3   : > { %5942 = vmatpush3.msra.mxu0 %v7319_v3  ;;  %v7345_v3 = vld [vmem:[#allocation2 + $0xae8] sm:$0xff] }
0x1cb4   : > { %5943 = vmatprep.subr.mxu0 %v7320_v7  ;;  %v7346_v7 = vld [vmem:[#allocation2 + $0xbe0] sm:$0xff] }
0x1cb5   : > { %5944 = vmatpush3.msra.mxu0 %v7321_v0  ;;  %v7347_v0 = vld [vmem:[#allocation2 + $0xb60] sm:$0xff] }
0x1cb6   : > { %5945 = vmatprep.subr.mxu0 %v7322_v21  ;;  %v7348_v21 = vld [vmem:[#allocation2 + $0xae0] sm:$0xff] }
0x1cb7   : > { %5946 = vmatpush3.msra.mxu0 %v7323_v18  ;;  %v7349_v18 = vld [vmem:[#allocation2 + $0xbd8] sm:$0xff] }
0x1cb8   : > { %5967 = vmatprep.subr.mxu0 %v7324_v22  ;;  %v7350_v22 = vld [vmem:[#allocation2 + $0xb58] sm:$0xff] }
0x1d58   : > { %v4335_v23 = vpop.f32.mrf.mxu0 }
0x1d5a   : > { %v5892_v24 = vpop.f32.mrf.mxu1  ;;  %v6709_v25 = vpop.f32.mrf.mxu0 }
0x1d5b   : > { %v7353_v25 = vld [vmem:[#allocation2 + $0xb50] sm:$0xff] }
0x1d5c   : > { %v5893_v53 = vpop.f32.mrf.mxu1 }
0x1d5d   : > { %v5894_v29 = vadd.f32 %v5893_v53, %v5892_v24  ;;  %v7352_v24 = vld [vmem:[#allocation2 + $0xbd0] sm:$0xff] }
0x1d5e   : > { %v7354_v53 = vld [vmem:[#allocation2 + $0xad0] sm:$0xff] }
0x1d5f   : > { %v4266_v30 = vadd.f32 %v7325_v26, %v5894_v29  ;;  %v7355_v29 = vld [vmem:[#allocation2 + $0xbc8] sm:$0xff] }
0x1d60   : > { %v7356_v26 = vld [vmem:[#allocation2 + $0xb48] sm:$0xff] }
0x1d61   : > { %v4336_v36 = vadd.f32 %v4335_v23, %v4266_v30  ;;  %v7351_v23 = vld [vmem:[#allocation2 + $0xad8] sm:$0xff]  ;;  %v7357_v30 = vld [vmem:[#allocation2 + $0xac8] sm:$0xff] }
0x1d63   : > { %4339 = vadd.xlane.f32.xlu0 %v4336_v36  ;;  %v4351_v37 = vmul.f32 %v4336_v36, %v4336_v36 }
0x1d65   : > { %4352 = vadd.xlane.f32.xlu1 %v4351_v37  ;;  %v7359_v37 = vld [vmem:[#allocation2 + $0xb40] sm:$0xff] }
0x1dec   : > { %v4340_v40 = vpop.xlane.xlu0 %4339 }
0x1ded   : > { %v4341_v31 = vrot.slane %v4340_v40, 4 }
0x1dee   : > { %v4353_v27 = vpop.xlane.xlu1 %4352 }
0x1def   : > { %v4342_v41 = vadd.f32 %v4341_v31, %v4340_v40  ;;  %v4354_v42 = vrot.slane %v4353_v27, 4  ;;  %v7360_v40 = vld [vmem:[#allocation2 + $0xac0] sm:$0xff]  ;;  %v7361_v31 = vld [vmem:[#allocation2 + $0xbb8] sm:$0xff] }
0x1df1   : > { %v4343_v33 = vrot.slane %v4342_v41, 2  ;;  %v4355_v43 = vadd.f32 %v4354_v42, %v4353_v27  ;;  %v7362_v27 = vld [vmem:[#allocation2 + $0xb38] sm:$0xff]  ;;  %v7364_v42 = vld [vmem:[#allocation2 + $0xbb0] sm:$0xff] }
0x1df3   : > { %v4356_v35 = vrot.slane %v4355_v43, 2  ;;  %v4344_v44 = vadd.f32 %v4343_v33, %v4342_v41  ;;  %v7363_v41 = vld [vmem:[#allocation2 + $0xab8] sm:$0xff]  ;;  %v7365_v33 = vld [vmem:[#allocation2 + $0xb30] sm:$0xff] }
0x1df5   : > { %v4345_v16 = vrot.slane %v4344_v44, 1  ;;  %v4357_v45 = vadd.f32 %v4356_v35, %v4355_v43  ;;  %v7366_v43 = vld [vmem:[#allocation2 + $0xab0] sm:$0xff]  ;;  %v7367_v35 = vld [vmem:[#allocation2 + $0xba8] sm:$0xff] }
0x1df7   : > { %v4346_v46 = vadd.f32 %v4345_v16, %v4344_v44  ;;  %v4358_v49 = vrot.slane %v4357_v45, 1  ;;  %v7368_v44 = vld [vmem:[#allocation2 + $0xb28] sm:$0xff] }
0x1df8   : > { %v7369_v16 = vld [vmem:[#allocation2 + $0xaa8] sm:$0xff] }
0x1df9   : > { %6877 = vpush %v4346_v46  ;;  %v4359_v50 = vadd.f32 %v4358_v49, %v4357_v45  ;;  %v7370_v45 = vld [vmem:[#allocation2 + $0xba0] sm:$0xff] }
0x1dfa   : > { %v7371_v46 = vld [vmem:[#allocation2 + $0xb20] sm:$0xff] }
0x1dfb   : > { %6879 = vpush %v4359_v50  ;;  %v7372_v49 = vld [vmem:[#allocation2 + $0xaa0] sm:$0xff]  ;;  %v7373_v50 = vld [vmem:[#allocation2 + $0xb98] sm:$0xff] }
0x1e2a   : > { %s6878_s7 = spop %6877 }
0x1e2b   : > { %s4350_s8 = smul.f32 0.0009765625, %s6878_s7 }
0x1e2c   : > { %s6880_s11 = spop %6879 }
0x1e2d   : > { %s4364_s12 = smul.f32 %s4350_s8, %s4350_s8  ;;  %v4366_v54 = vstv %s4350_s8 }
0x1e2e   : > { %s4363_s13 = smul.f32 0.0009765625, %s6880_s11  ;;  %v4367_v55 = vsub.f32 %v4336_v36, %v4366_v54  ;;  %v7358_v36 = vld [vmem:[#allocation2 + $0xbc0] sm:$0xff]  ;;  %v7376_v54 = vld [vmem:[#allocation2 + $0xb90] sm:$0xff] }
0x1e30   : > { %s4365_s14 = ssub.f32 %s4363_s13, %s4364_s12 }
0x1e32   : > { %s4368_s15 = sadd.f32 1e-05, %s4365_s14 }
0x1e34   : > { %v4369_v51 = vstv %s4368_s15 }
0x1e35   : > { %6928 = vrsqrt.f32 %v4369_v51  ;;  %v7374_v51 = vld [vmem:[#allocation2 + $0xb18] sm:$0xff] }
0x1e42   : > { %v6929_v52 = vpop.eup %6928 }
0x1e43   : > { %6881 = vpush %v6929_v52  ;;  %v7375_v52 = vld [vmem:[#allocation2 + $0xa98] sm:$0xff] }
0x1e74   : > { %s6882_s16 = spop %6881 }
0x1e75   : > { %v4372_v56 = vstv %s6882_s16 }
0x1e76   : > { %v4373_v13 = vmul.f32 %v4372_v56, %v4367_v55  ;;  %v7377_v55 = vld [vmem:[#allocation2 + $0xb10] sm:$0xff] }
0x1e77   : > { %v7378_v56 = vld [vmem:[#allocation2 + $0xa90] sm:$0xff] }
0x1e78   : > { %v4374_v58 = vmul.f32 %v7326_v57, %v4373_v13  ;;  %v7379_v13 = vld [vmem:[#allocation2 + $0xb88] sm:$0xff] }
0x1e79   : > { %v7380_v57 = vld [vmem:[#allocation2 + $0xb08] sm:$0xff] }
0x1e7a   : > { %v4375_v12 = vadd.f32 %v7327_v59, %v4374_v58  ;;  %v7381_v58 = vld [vmem:[#allocation2 + $0xa88] sm:$0xff]  ;;  %v7382_v59 = vld [vmem:[#allocation2 + $0xb80] sm:$0xff] }
0x1e7c   : > { %v4376_v60 = vmax.f32 %v4375_v12, 0.0  ;;  %v7383_v12 = vld [vmem:[#allocation2 + $0xb00] sm:$0xff] }
0x1e7e   : > { %6710 = vmatprep.subr.mxu1 %v4376_v60  ;;  %4516 = vmatprep.mubr.f32.mxu0 %v4376_v60 }
0x1e7f   : > { %6711 = vmatpush3.msra.mxu1 %v4376_v60  ;;  %v7384_v60 = vld [vmem:[#allocation2 + $0xa80] sm:$0xff] }
0x1e80   : > { %6713 = vmatmul.mubr.msk.f32.vlgmr.msra.gmra.mxu1 %vm1105_vm2, %v7891_v32  ;;  %6715 = vmatprep.subr.mxu1 %v7436_v8  ;;  %v7332_v32 = vld [vmem:[#allocation2 + $0xa30] sm:$0xff] }
0x1e81   : > { %6716 = vmatpush3.msra.mxu1 %v7328_v62  ;;  %6747 = vmatprep.mubr.msk.f32.mxu1 %vm7437_vm1, %v7436_v8  ;;  %v7385_v62 = vld [vmem:[#allocation2 + $0xb78] sm:$0xff] }
0x1e82   : > { %6717 = vmatprep.subr.mxu1 %v7436_v8 }
0x1e83   : > { %6718 = vmatpush3.msra.mxu1 %v7329_v63  ;;  %v7386_v63 = vld [vmem:[#allocation2 + $0xaf8] sm:$0xff] }
0x1e84   : > { %6719 = vmatprep.subr.mxu1 %v7436_v8 }
0x1e85   : > { %6720 = vmatpush3.msra.mxu1 %v7330_v1  ;;  %v7387_v1 = vld [vmem:[#allocation2 + $0xa78] sm:$0xff] }
0x1e86   : > { %6721 = vmatprep.subr.mxu1 %v7436_v8 }
0x1e87   : > { %6722 = vmatpush3.msra.mxu1 %v7331_v4  ;;  %v7388_v4 = vld [vmem:[#allocation2 + $0xb70] sm:$0xff] }
0x1e88   : > { %6723 = vmatprep.subr.mxu1 %v7436_v8 }
0x1e89   : > { %6724 = vmatpush3.msra.mxu1 %v7332_v32  ;;  %v7389_v32 = vld [vmem:[#allocation2 + $0xaf0] sm:$0xff] }
0x1e8a   : > { %6725 = vmatprep.subr.mxu1 %v7436_v8 }
0x1e8b   : > { %6726 = vmatpush3.msra.mxu1 %v7333_v61  ;;  %v7390_v61 = vld [vmem:[#allocation2 + $0xa70] sm:$0xff] }
0x1e8c   : > { %6727 = vmatprep.subr.mxu1 %v7436_v8 }
0x1e8d   : > { %6728 = vmatpush3.msra.mxu1 %v7334_v5 }
0x1e8e   : > { %6729 = vmatprep.subr.mxu1 %v7436_v8 }
0x1e8f   : > { %6730 = vmatpush3.msra.mxu1 %v7335_v6 }
0x1e90   : > { %6731 = vmatprep.subr.mxu1 %v7436_v8 }
0x1e91   : > { %6732 = vmatpush3.msra.mxu1 %v7336_v9 }
0x1e92   : > { %6733 = vmatprep.subr.mxu1 %v7436_v8 }
0x1e93   : > { %6734 = vmatpush3.msra.mxu1 %v7337_v11 }
0x1e94   : > { %6735 = vmatprep.subr.mxu1 %v7436_v8 }
0x1e95   : > { %6736 = vmatpush3.msra.mxu1 %v7338_v2 }
0x1e96   : > { %6737 = vmatprep.subr.mxu1 %v7436_v8 }
0x1e97   : > { %6738 = vmatpush3.msra.mxu1 %v7339_v47 }
0x1e98   : > { %6739 = vmatprep.subr.mxu1 %v7436_v8 }
0x1e99   : > { %6740 = vmatpush3.msra.mxu1 %v7340_v14 }
0x1e9a   : > { %6741 = vmatprep.subr.mxu1 %v7436_v8 }
0x1e9b   : > { %6742 = vmatpush3.msra.mxu1 %v7341_v15 }
0x1e9c   : > { %6743 = vmatprep.subr.mxu1 %v7436_v8 }
0x1e9d   : > { %6744 = vmatpush3.msra.mxu1 %v7342_v48 }
0x1e9e   : > { %6745 = vmatprep.subr.mxu1 %v7436_v8 }
0x1e9f   : > { %6746 = vmatpush3.msra.mxu1 %v7343_v10 }
0x1ea0   : > { %6750 = vmatprep.subr.mxu1 %v7436_v8 }
0x1f40   : > { %v6714_v17 = vpop.f32.mrf.mxu1 }
0x1f41   : > { %6748 = vmatmul.mubr.f32.vlgmr.msra.gmra.mxu1 %v6714_v17  ;;  %v7392_v17 = vld [vmem:[#allocation2 + $0xbf0] sm:$0xff] }
0x1f42   : > { %6751 = vmatpush3.msra.mxu1 %v7344_v19  ;;  %v4443_v34 = vpop.f32.mrf.mxu1  ;;  %6782 = vmatprep.mubr.msk.f32.mxu1 %vm7437_vm1, %v7436_v8 }
0x1f43   : > { %6752 = vmatprep.subr.mxu1 %v7436_v8  ;;  %4517 = vmatmul.mubr.f32.vlgmr.msra.gmra.mxu0 %v4443_v34 }
0x1f44   : > { %5968 = vmatpush3.msra.mxu0 %v7345_v3  ;;  %6753 = vmatpush3.msra.mxu1 %v7346_v7 }
0x1f45   : > { %5969 = vmatprep.subr.mxu0 %v7347_v0  ;;  %4656 = vmatprep.mubr.f32.mxu0 %v7824_v38 }
0x1f46   : > { %6754 = vmatprep.subr.mxu1 %v7436_v8  ;;  %5970 = vmatpush3.msra.mxu0 %v7348_v21 }
0x1f47   : > { %6755 = vmatpush3.msra.mxu1 %v7349_v18  ;;  %5971 = vmatprep.subr.mxu0 %v7350_v22 }
0x1f48   : > { %6756 = vmatprep.subr.mxu1 %v7436_v8  ;;  %5972 = vmatpush3.msra.mxu0 %v7351_v23 }
0x1f49   : > { %6757 = vmatpush3.msra.mxu1 %v7352_v24  ;;  %5973 = vmatprep.subr.mxu0 %v7353_v25 }
0x1f4a   : > { %6758 = vmatprep.subr.mxu1 %v7436_v8  ;;  %5974 = vmatpush3.msra.mxu0 %v7354_v53 }
0x1f4b   : > { %6759 = vmatpush3.msra.mxu1 %v7355_v29  ;;  %5975 = vmatprep.subr.mxu0 %v7356_v26 }
0x1f4c   : > { %6760 = vmatprep.subr.mxu1 %v7436_v8  ;;  %5976 = vmatpush3.msra.mxu0 %v7357_v30 }
0x1f4d   : > { %6761 = vmatpush3.msra.mxu1 %v7358_v36  ;;  %5977 = vmatprep.subr.mxu0 %v7359_v37 }
0x1f4e   : > { %6762 = vmatprep.subr.mxu1 %v7436_v8  ;;  %5978 = vmatpush3.msra.mxu0 %v7360_v40 }
0x1f4f   : > { %6763 = vmatpush3.msra.mxu1 %v7361_v31  ;;  %5979 = vmatprep.subr.mxu0 %v7362_v27  ;;  %v4861_v27 = vld [vmem:[#allocation2 + $0xd80] sm:$0xff] }
0x1f50   : > { %6764 = vmatprep.subr.mxu1 %v7436_v8  ;;  %5980 = vmatpush3.msra.mxu0 %v7363_v41  ;;  %v4860_v41 = vld [vmem:[#allocation2 + $0xd78] sm:$0xff] }
0x1f51   : > { %6765 = vmatpush3.msra.mxu1 %v7364_v42  ;;  %5981 = vmatprep.subr.mxu0 %v7365_v33  ;;  %v4859_v42 = vld [vmem:[#allocation2 + $0xd70] sm:$0xff]  ;;  %v4858_v33 = vld [vmem:[#allocation2 + $0xd68] sm:$0xff] }
0x1f52   : > { %6766 = vmatprep.subr.mxu1 %v7436_v8  ;;  %5982 = vmatpush3.msra.mxu0 %v7366_v43  ;;  %v4857_v43 = vld [vmem:[#allocation2 + $0xd60] sm:$0xff] }
0x1f53   : > { %6767 = vmatpush3.msra.mxu1 %v7367_v35  ;;  %5983 = vmatprep.subr.mxu0 %v7368_v44  ;;  %v4856_v35 = vld [vmem:[#allocation2 + $0xd58] sm:$0xff]  ;;  %v4855_v44 = vld [vmem:[#allocation2 + $0xd50] sm:$0xff] }
0x1f54   : > { %6768 = vmatprep.subr.mxu1 %v7436_v8  ;;  %5984 = vmatpush3.msra.mxu0 %v7369_v16  ;;  %v4854_v16 = vld [vmem:[#allocation2 + $0xd48] sm:$0xff] }
0x1f55   : > { %6769 = vmatpush3.msra.mxu1 %v7370_v45  ;;  %5985 = vmatprep.subr.mxu0 %v7371_v46  ;;  %v4853_v45 = vld [vmem:[#allocation2 + $0xd40] sm:$0xff]  ;;  %v4852_v46 = vld [vmem:[#allocation2 + $0xd38] sm:$0xff] }
0x1f56   : > { %6770 = vmatprep.subr.mxu1 %v7436_v8  ;;  %5986 = vmatpush3.msra.mxu0 %v7372_v49  ;;  %v4851_v49 = vld [vmem:[#allocation2 + $0xd30] sm:$0xff] }
0x1f57   : > { %6771 = vmatpush3.msra.mxu1 %v7373_v50  ;;  %5987 = vmatprep.subr.mxu0 %v7374_v51  ;;  %v4850_v50 = vld [vmem:[#allocation2 + $0xd28] sm:$0xff]  ;;  %v4849_v51 = vld [vmem:[#allocation2 + $0xd20] sm:$0xff] }
0x1f58   : > { %6772 = vmatprep.subr.mxu1 %v7436_v8  ;;  %5988 = vmatpush3.msra.mxu0 %v7375_v52  ;;  %v4848_v52 = vld [vmem:[#allocation2 + $0xd18] sm:$0xff] }
0x1f59   : > { %6773 = vmatpush3.msra.mxu1 %v7376_v54  ;;  %5989 = vmatprep.subr.mxu0 %v7377_v55  ;;  %v4847_v54 = vld [vmem:[#allocation2 + $0xd10] sm:$0xff] }
0x1f5a   : > { %6774 = vmatprep.subr.mxu1 %v7436_v8  ;;  %5990 = vmatpush3.msra.mxu0 %v7378_v56 }
0x1f5b   : > { %6775 = vmatpush3.msra.mxu1 %v7379_v13  ;;  %5991 = vmatprep.subr.mxu0 %v7380_v57 }
0x1f5c   : > { %6776 = vmatprep.subr.mxu1 %v7436_v8  ;;  %5992 = vmatpush3.msra.mxu0 %v7381_v58 }
0x1f5d   : > { %6777 = vmatpush3.msra.mxu1 %v7382_v59  ;;  %5993 = vmatprep.subr.mxu0 %v7383_v12  ;;  %v7393_v12 = vld [vmem:[#allocation2 + $0xa60] sm:$0xff] }
0x1f5e   : > { %6778 = vmatprep.subr.mxu1 %v7436_v8  ;;  %5994 = vmatpush3.msra.mxu0 %v7384_v60 }
0x1f5f   : > { %6779 = vmatpush3.msra.mxu1 %v7385_v62  ;;  %5995 = vmatprep.subr.mxu0 %v7386_v63  ;;  %v7394_v62 = vld [vmem:[#allocation2 + $0xa68] sm:$0xff] }
0x1f60   : > { %6780 = vmatprep.subr.mxu1 %v7436_v8  ;;  %5996 = vmatpush3.msra.mxu0 %v7387_v1 }
0x1f61   : > { %6781 = vmatpush3.msra.mxu1 %v7388_v4  ;;  %5997 = vmatprep.subr.mxu0 %v7389_v32  ;;  %v4771_v4 = vld [vmem:[#allocation2 + $0xd90] sm:$0x7]  ;;  %v4846_v32 = vld [vmem:[#allocation2 + $0xd08] sm:$0xff] }
0x1f62   : > { %6783 = vmatmul.mubr.f32.vlgmr.msra.gmra.mxu1 %v7835_v20  ;;  %5998 = vmatpush3.msra.mxu0 %v7390_v61 }
0x1f63   : > { %4657 = vmatmul.mubr.f32.vlgmr.msra.gmra.mxu0 %v7859_v39  ;;  %6785 = vmatprep.subr.mxu0 %v7436_v8  ;;  %v7391_v39 = vld [vmem:[#allocation2 + $0xa58] sm:$0xff] }
0x1f64   : > { %6791 = vmatprep.mubr.msk.f32.mxu0 %vm7437_vm1, %v7436_v8  ;;  %6794 = vmatprep.subr.mxu1 %v7436_v8 }
0x1f65   : > { %6826 = vmatprep.mubr.msk.f32.mxu1 %vm7437_vm1, %v7436_v8  ;;  %6795 = vmatpush3.msra.mxu1 %v4861_v27 }
0x1f66   : > { %6796 = vmatprep.subr.mxu1 %v7436_v8 }
0x1f67   : > { %6797 = vmatpush3.msra.mxu1 %v4860_v41 }
0x1f68   : > { %6798 = vmatprep.subr.mxu1 %v7436_v8 }
0x1f69   : > { %6799 = vmatpush3.msra.mxu1 %v4859_v42 }
0x1f6a   : > { %6800 = vmatprep.subr.mxu1 %v7436_v8 }
0x1f6b   : > { %6801 = vmatpush3.msra.mxu1 %v4858_v33 }
0x1f6c   : > { %6802 = vmatprep.subr.mxu1 %v7436_v8 }
0x1f6d   : > { %6803 = vmatpush3.msra.mxu1 %v4857_v43 }
0x1f6e   : > { %6804 = vmatprep.subr.mxu1 %v7436_v8 }
0x1f6f   : > { %6805 = vmatpush3.msra.mxu1 %v4856_v35 }
0x1f70   : > { %6806 = vmatprep.subr.mxu1 %v7436_v8 }
0x1f71   : > { %6807 = vmatpush3.msra.mxu1 %v4855_v44 }
0x1f72   : > { %6808 = vmatprep.subr.mxu1 %v7436_v8 }
0x1f73   : > { %6809 = vmatpush3.msra.mxu1 %v4854_v16 }
0x1f74   : > { %6810 = vmatprep.subr.mxu1 %v7436_v8 }
0x1f75   : > { %6811 = vmatpush3.msra.mxu1 %v4853_v45 }
0x1f76   : > { %6812 = vmatprep.subr.mxu1 %v7436_v8 }
0x1f77   : > { %6813 = vmatpush3.msra.mxu1 %v4852_v46 }
0x1f78   : > { %6814 = vmatprep.subr.mxu1 %v7436_v8 }
0x1f79   : > { %6815 = vmatpush3.msra.mxu1 %v4851_v49 }
0x1f7a   : > { %6816 = vmatprep.subr.mxu1 %v7436_v8 }
0x1f7b   : > { %6817 = vmatpush3.msra.mxu1 %v4850_v50 }
0x1f7c   : > { %6818 = vmatprep.subr.mxu1 %v7436_v8 }
0x1f7d   : > { %6819 = vmatpush3.msra.mxu1 %v4849_v51 }
0x1f7e   : > { %6820 = vmatprep.subr.mxu1 %v7436_v8 }
0x1f7f   : > { %6821 = vmatpush3.msra.mxu1 %v4848_v52 }
0x1f80   : > { %6822 = vmatprep.subr.mxu1 %v7436_v8 }
0x1f81   : > { %6823 = vmatpush3.msra.mxu1 %v4847_v54 }
0x1f82   : > { %6824 = vmatprep.subr.mxu1 %v7436_v8 }
0x1f83   : > { %6825 = vmatpush3.msra.mxu1 %v4846_v32 }
0x2001   : > { %v4588_v5 = vpop.f32.mrf.mxu1 }
0x2003   : > { %v6749_v6 = vpop.f32.mrf.mxu1  ;;  %v5947_v9 = vpop.f32.mrf.mxu0 }
0x2004   : > { %v4862_v6 = vld [vmem:[#allocation2 + $0xd88] sm:$0x7] }
0x2005   : > { %v5948_v11 = vpop.f32.mrf.mxu0 }
0x2006   : > { %v5949_v2 = vadd.f32 %v5948_v11, %v5947_v9 }
0x2008   : > { %v4519_v48 = vadd.f32 %v7391_v39, %v5949_v2 }
0x200a   : > { %v4589_v34 = vadd.f32 %v4588_v5, %v4519_v48 }
0x2022   : > { %v4728_v20 = vpop.f32.mrf.mxu1 }
0x2023   : > { %v5999_v47 = vpop.f32.mrf.mxu0 }
0x2024   : > { %v6784_v14 = vpop.f32.mrf.mxu1 }
0x2025   : > { %v6000_v15 = vpop.f32.mrf.mxu0 }
0x2026   : > { %v6001_v10 = vadd.f32 %v6000_v15, %v5999_v47 }
0x2028   : > { %v4659_v19 = vadd.f32 %v7392_v17, %v6001_v10 }
0x202a   : > { %v4729_v3 = vadd.f32 %v4728_v20, %v4659_v19 }
0x202c   : > { %v7962_v7 = vadd.f32 %v4729_v3, %v4589_v34 }
0x202e   : > { %4733 = vadd.xlane.f32.xlu0 %v7962_v7  ;;  %v4745_v0 = vmul.f32 %v7962_v7, %v7962_v7 }
0x2030   : > { %4746 = vadd.xlane.f32.xlu1 %v4745_v0 }
0x20b7   : > { %v4734_v21 = vpop.xlane.xlu0 %4733 }
0x20b8   : > { %v4735_v18 = vrot.slane %v4734_v21, 4 }
0x20b9   : > { %v4747_v22 = vpop.xlane.xlu1 %4746 }
0x20ba   : > { %v4736_v23 = vadd.f32 %v4735_v18, %v4734_v21  ;;  %v4748_v24 = vrot.slane %v4747_v22, 4 }
0x20bc   : > { %v4737_v25 = vrot.slane %v4736_v23, 2  ;;  %v4749_v53 = vadd.f32 %v4748_v24, %v4747_v22 }
0x20be   : > { %v4750_v29 = vrot.slane %v4749_v53, 2  ;;  %v4738_v26 = vadd.f32 %v4737_v25, %v4736_v23 }
0x20c0   : > { %v4739_v30 = vrot.slane %v4738_v26, 1  ;;  %v4751_v36 = vadd.f32 %v4750_v29, %v4749_v53 }
0x20c2   : > { %v4740_v37 = vadd.f32 %v4739_v30, %v4738_v26  ;;  %v4752_v40 = vrot.slane %v4751_v36, 1 }
0x20c4   : > { %6883 = vpush %v4740_v37  ;;  %v4753_v31 = vadd.f32 %v4752_v40, %v4751_v36 }
0x20c6   : > { %6885 = vpush %v4753_v31 }
0x20f5   : > { %s6884_s17 = spop %6883 }
0x20f6   : > { %s4744_s18 = smul.f32 0.0009765625, %s6884_s17 }
0x20f7   : > { %s6886_s19 = spop %6885 }
0x20f8   : > { %s4758_s20 = smul.f32 %s4744_s18, %s4744_s18  ;;  %v4760_v13 = vstv %s4744_s18 }
0x20f9   : > { %s4757_s21 = smul.f32 0.0009765625, %s6886_s19  ;;  %v4761_v57 = vsub.f32 %v7962_v7, %v4760_v13 }
0x20fb   : > { %s4759_s22 = ssub.f32 %s4757_s21, %s4758_s20 }
0x20fd   : > { %s4762_s23 = sadd.f32 1e-05, %s4759_s22 }
0x20ff   : > { %v4763_v55 = vstv %s4762_s23 }
0x2100   : > { %6930 = vrsqrt.f32 %v4763_v55 }
0x210d   : > { %v6931_v56 = vpop.eup %6930 }
0x210e   : > { %6887 = vpush %v6931_v56 }
0x213f   : > { %s6888_s24 = spop %6887 }
0x2140   : > { %v4766_v58 = vstv %s6888_s24 }
0x2141   : > { %v4767_v59 = vmul.f32 %v4766_v58, %v4761_v57 }
0x2143   : > { %v4768_v60 = vmul.f32 %v7393_v12, %v4767_v59 }
0x2145   : > { %v4769_v63 = vadd.f32 %v7394_v62, %v4768_v60 }
0x2147   : > { %v4770_v1 = vmax.f32 %v4769_v63, 0.0 }
0x2149   : > { %6786 = vmatpush3.msra.mxu0 %v4770_v1 }
0x214a   : > { %6787 = vmatprep.subr.mxu0 %v7436_v8 }
0x214b   : > { %6788 = vmatpush3.msra.mxu0 %v7824_v38 }
0x214c   : > { %6789 = vmatprep.subr.mxu0 %v7436_v8 }
0x214d   : > { %6790 = vmatpush3.msra.mxu0 %v7664_v28 }
0x214e   : > { %6792 = vmatmul.mubr.msk.f32.vlgmr.msra.gmra.mxu0 %vm4772_vm3, %v4771_v4 }
0x220e   : > { %v4842_v61 = vpop.f32.mrf.mxu0 }
0x220f   : > { %6827 = vmatmul.mubr.f32.vlgmr.msra.gmra.mxu1 %v4842_v61 }
0x2210   : > { %v6793_v5 = vpop.f32.mrf.mxu0 }
0x22cf   : > { %v4929_v9 = vpop.f32.mrf.mxu1 }
0x22d0   : > { %v4930_v11 = vadd.f32 %v4929_v9, %v4862_v6 }
0x22d1   : > { %v6828_v2 = vpop.f32.mrf.mxu1 }
0x22d2   : > { %v4934_v38 = vsel %vm4933_vm4, %v4930_v11, -inf }
0x22d3   : > { %4935 = vmax.xlane.f32.xlu0 %v4934_v38 }
0x235c   : > { %v4936_v20 = vpop.xlane.xlu0 %4935 }
0x235d   : > { %v4937_v47 = vsub.f32 %v4930_v11, %v4936_v20 }
0x235f   : > { %v4938_v8 = vmul.f32 1.442695, %v4937_v47 }
0x2361   : > { %6932 = vpow2.f32 %v4938_v8 }
0x236e   : > { %v6933_v28 = vpop.eup %6932 }
0x236f   : > { %v4940_v14 = vsel %vm4933_vm4, %v6933_v28, 0.0 }
0x2370   : > { %4941 = vadd.xlane.f32.xlu1 %v4940_v14 }
0x23f9   : > { %v4942_v15 = vpop.xlane.xlu1 %4941 }
0x23fa   : > { %6934 = vlog2.f32 %v4942_v15 }
0x2407   : > { %v6935_v39 = vpop.eup %6934 }
0x2408   : > { %v4944_v48 = vmul.f32 0.6931472, %v6935_v39 }
0x240a   : > { %v4945_v10 = vsub.f32 %v4937_v47, %v4944_v48 }
0x240c   : > { %v4946_v17 = vmax.f32 %v4945_v10, -23.02585 }
0x240e   : > { %4947 = vst.msk [vmem:[%s156_s28] sm:$0x7] %vm4933_vm4, %v4946_v17 }
0x240f PF: > { %s13_s9 = sadd.s32 1, %s7431_s9  }
0x2410   : > { %p10_p1 = scmp.ge.s32.totalorder %s13_s9, 4  }
0x2412   :  { %12 = sbr.rel (!%p10_p1) target bundleno = 1 (0x1), region = 63 }
0x2417   :  { %4967 = vsyncpa [#allocation3], 1 }
0x2418   :  { %4969 = vsyncpa [#allocation3 + $0x1], 1 }

</bundles_post_ra>
